<compile_context>
chip_gen: v6e
topology: v6e:2x2x1
jax: 0.10.0
libtpu: 0.0.40
codegen_flags: <defaults>
</compile_context>

<pallas_src>
import jax
import jax.numpy as jnp
import numpy as np
from jax import lax
from jax.experimental import pallas as pl
from jax.experimental.pallas import tpu as pltpu

# Small, self-consistent stand-ins for the module's `constants`.
NUM_CONV_LAYERS = 3
ENCODED_BITSEQ_LENGTH = 32
WAV_CHUNK_SIZE = 128
INTERMEDIATE_CHANNEL_DIM = 16
FINAL_CHANNELS = 256          # hard-coded `256` in the PyTorch module
KERNEL_SIZE = 2

# reversed([2**i for i in range(NUM_CONV_LAYERS)]) -> [4, 2, 1]
BLOCK_DILATIONS = list(reversed([2 ** i for i in range(NUM_CONV_LAYERS)]))


# --------------------------------------------------------------------------
# Pallas kernel: one grid step = one batch block; a single MXU GEMM
# (bg, ENC) x (ENC, 256*T) with f32 accumulation, then a broadcast bias add.
# --------------------------------------------------------------------------
def _decoder_kernel(z_ref, a_ref, c_ref, out_ref):
    y = jnp.dot(z_ref[...].astype(jnp.bfloat16), a_ref[...],
                preferred_element_type=jnp.float32)      # (bg, 256*T) f32
    out_ref[...] = (y + c_ref[...]).astype(out_ref.dtype)


def _default_batch_block(b_total):
    """Largest multiple-of-8 block <= 32 that still yields >= 2 grid steps.

    >= 2 steps lets ("parallel",) spread work over both v7x TensorCores; the
    <= 32 cap keeps the double-buffered output block + weights within the
    scoped-VMEM limits of v5e/v7x. Falls back to a single full-batch step
    (BlockSpec full-array exemption) when the batch is too small.
    """
    best = b_total
    for cand in range(8, min(32, b_total) + 1, 8):
        if b_total % cand == 0 and b_total // cand >= 2:
            best = cand
    return best


def conv_decoder(z, params, *, batch_block=None, out_dtype=jnp.float32):
    """Pallas wrapper. z: (B, ENCODED_BITSEQ_LENGTH) f32 -> (B, 256, T)."""
    a_flat = params["a_flat"]            # (ENC, 256*T) bf16
    c_row = params["c_row"]              # (1, 256*T) f32
    b_total, enc = z.shape
    ct = a_flat.shape[1]
    c_final = FINAL_CHANNELS
    t = ct // c_final

    if batch_block is None:
        batch_block = _default_batch_block(b_total)
    assert b_total % batch_block == 0
    # z/out block second-minor dim must be a sublane multiple or the full batch.
    assert batch_block == b_total or batch_block % 8 == 0
    steps = b_total // batch_block

    out_bytes = b_total * ct * jnp.dtype(out_dtype).itemsize
    cost = pl.CostEstimate(
        flops=2 * b_total * enc * ct,
        transcendentals=0,
        bytes_accessed=int(z.nbytes) + int(a_flat.nbytes)
                       + int(c_row.nbytes) + out_bytes)

    out_flat = pl.pallas_call(
        _decoder_kernel,
        grid=(steps,),
        in_specs=[
            pl.BlockSpec((batch_block, enc), lambda i: (i, 0)),
            pl.BlockSpec(a_flat.shape, lambda i: (0, 0)),   # VMEM-resident weights
            pl.BlockSpec(c_row.shape, lambda i: (0, 0)),
        ],
        out_specs=pl.BlockSpec((batch_block, ct), lambda i: (i, 0)),
        out_shape=jax.ShapeDtypeStruct((b_total, ct), out_dtype),
        compiler_params=pltpu.CompilerParams(
            dimension_semantics=("parallel",),   # both TCs on v7x; no-op v5e/v6e
            vmem_limit_bytes=32 * 1024 * 1024),
        cost_estimate=cost,
    )(z, a_flat, c_row)

    # Row-major (B, 256*T) and (B, 256, T) are byte-identical -> free bitcast.
    return out_flat.reshape(b_total, c_final, t)


# --------------------------------------------------------------------------
# Host-side parameter construction.
# --------------------------------------------------------------------------
def reference(z, linear_w, linear_b, conv_torch):
    """Pure-JAX f32 reference mirroring the PyTorch forward (NCW layout)."""
    h = z @ linear_w.T + linear_b          # Linear acts on the last dim
    x = h[:, None, :]                      # channel dim -> (B, 1, T)
    for (w, b, d) in conv_torch:           # LeftPaddedConv: causal dilated conv1d
        x = lax.conv_general_dilated(
            x, w, window_strides=(1,),
            padding=[(d * (KERNEL_SIZE - 1), 0)],
            rhs_dilation=(d,),
            dimension_numbers=("NCH", "OIH", "NCH"))
        x = x + b[None, :, None]
    return x


def _affine_collapse(linear_w, linear_b, conv_torch):
    """Collapse the affine stack into (A, C): out = z @ A + C (done once, f32)."""
    enc = linear_w.shape[1]
    basis = jnp.concatenate(
        [jnp.eye(enc, dtype=jnp.float32), jnp.zeros((1, enc), jnp.float32)],
        axis=0)                                            # (enc+1, enc)
    resp = reference(basis, linear_w, linear_b, conv_torch)  # (enc+1, 256, T)
    c = resp[enc]                                          # response to zero input
    a = resp[:enc] - c[None]                               # pure linear part
    a_flat = a.reshape(enc, -1).astype(jnp.bfloat16)       # (enc, 256*T)
    c_row = c.reshape(1, -1).astype(jnp.float32)           # (1, 256*T)
    return a_flat, c_row


def init_params(key):
    """Deterministic synthetic parameters (shapes match the torch module)."""
    ks = jax.random.split(key, 2 + 2 * NUM_CONV_LAYERS)
    linear_w = 0.1 * jax.random.normal(
        ks[0], (WAV_CHUNK_SIZE, ENCODED_BITSEQ_LENGTH), jnp.float32)
    linear_b = 0.1 * jax.random.normal(ks[1], (WAV_CHUNK_SIZE,), jnp.float32)

    conv_torch = []   # torch-layout (w, b, dilation) per conv layer
    c_in = 1
    for i, d in enumerate(BLOCK_DILATIONS):
        c_out = FINAL_CHANNELS if i == NUM_CONV_LAYERS - 1 else INTERMEDIATE_CHANNEL_DIM
        w = 0.2 * jax.random.normal(
            ks[2 + 2 * i], (c_out, c_in, KERNEL_SIZE), jnp.float32)
        b = 0.1 * jax.random.normal(ks[3 + 2 * i], (c_out,), jnp.float32)
        conv_torch.append((w, b, d))
        c_in = c_out

    a_flat, c_row = _affine_collapse(linear_w, linear_b, conv_torch)
    params = {"a_flat": a_flat, "c_row": c_row}
    return params, (linear_w, linear_b, conv_torch)


if __name__ == "__main__":
    key = jax.random.PRNGKey(0)
    kp, kz = jax.random.split(key)
    params, torch_like = init_params(kp)

    B = 16
    z = jax.random.normal(kz, (B, ENCODED_BITSEQ_LENGTH), jnp.float32)

    # Default tiling: batch_block=8 -> grid=(2,) parallel steps.
    out = conv_decoder(z, params)
    out = jax.block_until_ready(out)

    ref = reference(z, *torch_like)
    np.testing.assert_allclose(np.asarray(out), np.asarray(ref),
                               rtol=2e-2, atol=2e-2)
    print("KERNEL_OK")
</pallas_src>

<mosaic_0001>
module attributes {stable_mosaic.version = 11 : i64} {
  func.func @_decoder_kernel(%arg0: i32, %arg1: memref<8x32xf32, #tpu.memory_space<vmem>>, %arg2: memref<32x32768xbf16, #tpu.memory_space<vmem>>, %arg3: memref<1x32768xf32, #tpu.memory_space<vmem>>, %arg4: memref<8x32768xf32, #tpu.memory_space<vmem>>) attributes {dimension_semantics = [#tpu.dimension_semantics<parallel>], iteration_bounds = array<i64: 2>, scalar_prefetch = 0 : i64, scratch_operands = 0 : i64, tpu.core_type = #tpu.core_type<tc>, window_params = [{transform_indices = @transform_0, window_bounds = array<i64: 8, 32>}, {pipeline_mode = #tpu.pipeline_mode<synchronous>, transform_indices = @transform_1, window_bounds = array<i64: 32, 32768>}, {pipeline_mode = #tpu.pipeline_mode<synchronous>, transform_indices = @transform_2, window_bounds = array<i64: 1, 32768>}, {transform_indices = @transform_3, window_bounds = array<i64: 8, 32768>}]} {
    %c0 = arith.constant 0 : index
    %c0_0 = arith.constant 0 : index
    %0 = vector.load %arg1[%c0, %c0_0] : memref<8x32xf32, #tpu.memory_space<vmem>>, vector<8x32xf32>
    %1 = arith.truncf %0 : vector<8x32xf32> to vector<8x32xbf16>
    %c0_1 = arith.constant 0 : index
    %c0_2 = arith.constant 0 : index
    %2 = vector.load %arg2[%c0_1, %c0_2] : memref<32x32768xbf16, #tpu.memory_space<vmem>>, vector<32x32768xbf16>
    %cst = arith.constant dense<0.000000e+00> : vector<8x32768xf32>
    %3 = tpu.matmul %1, %2, %cst {dimension_numbers = #tpu.dot_dimension_numbers<[1], [0], [0], [1], [0, 0, 1, 1], [], []>} : vector<8x32xbf16>, vector<32x32768xbf16>, vector<8x32768xf32> -> vector<8x32768xf32>
    %c0_3 = arith.constant 0 : index
    %c0_4 = arith.constant 0 : index
    %4 = vector.load %arg3[%c0_3, %c0_4] : memref<1x32768xf32, #tpu.memory_space<vmem>>, vector<1x32768xf32>
    %5 = vector.broadcast %4 : vector<1x32768xf32> to vector<8x32768xf32>
    %6 = arith.addf %3, %5 : vector<8x32768xf32>
    %c0_5 = arith.constant 0 : index
    %c0_6 = arith.constant 0 : index
    %7 = vector.load %arg4[%c0_5, %c0_6] : memref<8x32768xf32, #tpu.memory_space<vmem>>, vector<8x32768xf32>
    tpu.vector_store %arg4[%c0_5, %c0_6], %6 {strides = array<i32>} : memref<8x32768xf32, #tpu.memory_space<vmem>>, vector<8x32768xf32>,
    return
  }
  func.func @transform_0(%arg0: i32) -> (i32, i32) {
    %c0_i32 = arith.constant 0 : i32
    %c0_i32_0 = arith.constant 0 : i32
    return %arg0, %c0_i32 : i32, i32
  }
  func.func @transform_1(%arg0: i32) -> (i32, i32) {
    %c0_i32 = arith.constant 0 : i32
    %c0_i32_0 = arith.constant 0 : i32
    %c0_i32_1 = arith.constant 0 : i32
    return %c0_i32, %c0_i32_0 : i32, i32
  }
  func.func @transform_2(%arg0: i32) -> (i32, i32) {
    %c0_i32 = arith.constant 0 : i32
    %c0_i32_0 = arith.constant 0 : i32
    %c0_i32_1 = arith.constant 0 : i32
    return %c0_i32, %c0_i32_0 : i32, i32
  }
  func.func @transform_3(%arg0: i32) -> (i32, i32) {
    %c0_i32 = arith.constant 0 : i32
    %c0_i32_0 = arith.constant 0 : i32
    return %arg0, %c0_i32 : i32, i32
  }
}

</mosaic_0001>

<bundles_post_ra>
// kernel: tpu_custom_call.1
= control target key start
LH: loop header
LB: loop body
LE: loop exit
PB: predicated region body
PF: predicated region fallthrough
CT: control target
= control target key end

     0   :  { %8 = vsyncpa [#allocation3], 0  ;;  %s12460_s0 = inlined_call_operand.hbm [shape: f32[16,32], index: 0, kind: input, shape index: {}]   ;;  %s12461_s1 = inlined_call_operand.hbm [shape: bf16[32,32768], index: 1, kind: input, shape index: {}]   ;;  %s12462_s2 = inlined_call_operand.hbm [shape: f32[1,32768], index: 2, kind: input, shape index: {}]   ;;  %s12463_s3 = inlined_call_operand.hbm [shape: f32[16,32768], index: 3, kind: output, shape index: {}]  }
   0x1   :  { %10 = vsyncpa [#allocation3 + $0x1], 0 }
   0x2   :  { %11 = vsyncpa [#allocation6], 0 }
   0x3   :  { %12 = vsyncpa [#allocation4], 0 }
   0x4   :  { %14 = vsyncpa [#allocation4 + $0x1], 0  ;;  %s11149_s12 = smov 0   ;;  %s11151_s13 = smov 0  }
   0x5   :  { %s11153_s14 = smov 0   ;;  %s11155_s15 = smov 0  }
   0x6 LB: > { %s11170_s16 = sadd.s32 4294967295, %s11120_s15   ;;  %s10244_s17 = sadd.s32 4294967294, %s11120_s15   ;;  %s11120_s15 = sphi %s11155_s15, %s12485_s15   ;;  %s11116_s14 = sphi %s11153_s14, %s12484_s14   ;;  %s11112_s13 = sphi %s11151_s13, %s12483_s13   ;;  %s11108_s12 = sphi %s11149_s12, %s12482_s12  }
   0x7   : > { %p40_p0 = scmp.ne.s32.totalorder %s11112_s13, %s11108_s12  ;;  %p12464_p1 = scmp.eq.s32.totalorder %s11170_s16, 0 }
   0x8   : > { %p112_p3 = scmp.eq.s32.totalorder %s10244_s17, 1  ;;  %p10245_p5 = scmp.ge.s32.totalorder %s11120_s15, 1 }
   0x9   : > { %p11179_p4 = por %p12464_p1, %p40_p0  ;;  %p119_p7 = scmp.lt.s32.totalorder %s11120_s15, 3 }
   0xa   : > { %p11184_p6 = por %p112_p3, %p40_p0  ;;  %s11122_s21 = smov [#allocation5]  }
   0xb   : > { %s12468_s18 = scalar_select %p11179_p4, 1, 0 }
   0xc   : > { %s12469_s19 = scalar_select %p11184_p6, 1, 0 }
   0xd   : > { %p11189_p8 = pnand %p10245_p5, %p119_p7  ;;  %s131_s22 = sshll.u32 %s11122_s21, 4  ;;  %s132_s22 = int_to_ptr.vmem [resolvable:$true] %s131_s22 }
   0xe   : > { %s11123_s24 = smov [#allocation7]   ;;  %s10983_s26 = scalar_lea.vmem %s132_s22, 65536 }
   0xf   : > { %s12470_s20 = scalar_select %p11189_p8, 1, 0 }
  0x10   : > { %p10914_p9 = pneg %p11189_p8  ;;  %s145_s25 = sshll.u32 %s11123_s24, 4  ;;  %s146_s25 = int_to_ptr.vmem [resolvable:$true] %s145_s25 }
  0x11   : > { %p10984_p13 = scmp.ne.s32.totalorder %s132_s22, %s10983_s26  ;;  %p10991_p5 = scmp.lt.s32.totalorder %s132_s22, %s132_s22 }
  0x12   : > { %p11198_p11 = pnand %p10914_p9, %p12464_p1  ;;  %p10992_p7 = scmp.lt.s32.totalorder %s10983_s26, %s10983_s26 }
  0x14   : > { %p10974_p12 = pneg %p11198_p11  ;;  %p10993_p10 = por %p10992_p7, %p10991_p5 }
  0x16   : > { %p10986_p0 = pnand %p10984_p13, %p10974_p12 }
  0x18   : > { %p10987_p3 = pneg %p10986_p0 }
  0x1a   : > { %p10994_p9 = pnand %p10993_p10, %p10987_p3 }
  0x1c   : > { %10997 = shalt.err (!%p10994_p9)
}
  0x1d   : > { %s11124_s27 = smov 16384   ;;  %s11125_s28 = smov 1024  }
  0x1e   : > { %10917 = dma.hbm_to_vmem [thread:$0]  (!%p11198_p11), %s12461_s1, 65536, %s132_s22, [#allocation6], %s11124_s27, %s11124_s27, %s11125_s28  }
  0x1f   : > { %s11009_s4 = scalar_lea.vmem %s146_s25, 4096  ;;  %p11017_p2 = scmp.lt.s32.totalorder %s146_s25, %s146_s25 }
  0x20   : > { %p11010_p1 = scmp.ne.s32.totalorder %s146_s25, %s11009_s4  ;;  %p11018_p6 = scmp.lt.s32.totalorder %s11009_s4, %s11009_s4 }
  0x22   : > { %p11012_p13 = pnand %p11010_p1, %p10974_p12  ;;  %p11019_p5 = por %p11018_p6, %p11017_p2 }
  0x24   : > { %p11013_p0 = pneg %p11012_p13 }
  0x26   : > { %p11020_p10 = pnand %p11019_p5, %p11013_p0 }
  0x28   : > { %11023 = shalt.err (!%p11020_p10)
}
  0x29   : > { %10920 = dma.hbm_to_vmem [thread:$0]  (!%p11198_p11), %s12462_s2, 4096, %s146_s25, [#allocation6]  }
  0x2a   : > { %s11221_s7 = sadd.s32 1, %s11120_s15   ;;  %s27_s8 = sadd.s32 1, %s11116_s14 }
  0x2b   : > { %s24_s9 = ssub.s32 %s11120_s15, %s11221_s7  ;;  %p34_p1 = scmp.ne.s32.totalorder %s11116_s14, %s11112_s13 }
  0x2c   : > { %p25_p2 = scmp.eq.s32.totalorder %s24_s9, 0  ;;  %p35_p6 = scmp.eq.s32.totalorder %s11120_s15, 0 }
  0x2d   : > { %p12472_p12 = scmp.eq.s32.totalorder %s11170_s16, 1  ;;  %p10931_p7 = scmp.lt.s32.totalorder %s11120_s15, 2 }
  0x2e   : > { %s11237_s11 = scalar_select %p25_p2, %s11116_s14, %s27_s8  }
  0x2f   : > { %p11231_p3 = por %p12472_p12, %p34_p1  ;;  %p36_p9 = por %p35_p6, %p34_p1 }
  0x30   : > { %s156_s17 = sand.u32 1, %s11116_s14   ;;  %s10250_s22 = sshll.u32 %s11120_s15, 7 }
  0x31   : > { %s12473_s10 = scalar_select %p11231_p3, 1, 0 }
  0x32   : > { %s10249_s21 = sshll.u32 %s156_s17, 3  ;;  %s11244_s25 = scalar_lea.hbm %s12460_s0, %s10250_s22 }
  0x33   : > { %s160_s26 = scalar_lea.vmem [#allocation2], %s10249_s21  ;;  %p11246_p11 = pnand %p10931_p7, %p36_p9 }
  0x34   : > { %s167_s27 = sshll.u32 %s160_s26, 4  ;;  %s157_s29 = scalar_lea.sflag [#allocation3], %s156_s17  ;;  %s168_s27 = int_to_ptr.vmem [resolvable:$true] %s167_s27 }
  0x35   : > { %s11024_s30 = scalar_lea.hbm %s11244_s25, 128  ;;  %p11026_p0 = pneg %p11246_p11 }
  0x36   : > { %p11025_p13 = scmp.ne.s32.totalorder %s11244_s25, %s11024_s30  ;;  %s11029_s6 = scalar_lea.hbm %s12460_s0, 256 }
  0x37   : > { %p11030_p1 = scmp.lt.s32.totalorder %s11244_s25, %s12460_s0  ;;  %p11031_p2 = scmp.lt.s32.totalorder %s11029_s6, %s11024_s30 }
  0x38   : > { %p11027_p5 = pnand %p11026_p0, %p11025_p13 }
  0x39   : > { %p11032_p6 = por %p11031_p2, %p11030_p1 }
  0x3a   : > { %p11028_p10 = pneg %p11027_p5 }
  0x3c   : > { %p11033_p12 = pnand %p11032_p6, %p11028_p10 }
  0x3e   : > { %11036 = shalt.err (!%p11033_p12)
}
  0x3f   : > { %s11037_s21 = scalar_lea.vmem %s168_s27, 128  ;;  %s11126_s17 = smov [#allocation2]  }
  0x40   : > { %p11038_p7 = scmp.ne.s32.totalorder %s168_s27, %s11037_s21  ;;  %s11042_s22 = sshll.u32 %s11126_s17, 4  ;;  %s11043_s22 = int_to_ptr.vmem [resolvable:$false] %s11042_s22 }
  0x41   : > { %s11044_s23 = scalar_lea.vmem %s11043_s22, 256  ;;  %p11045_p13 = scmp.lt.s32.totalorder %s168_s27, %s11043_s22 }
  0x42   : > { %p11040_p9 = pnand %p11038_p7, %p11026_p0  ;;  %p11046_p5 = scmp.lt.s32.totalorder %s11044_s23, %s11037_s21 }
  0x44   : > { %p11041_p3 = pneg %p11040_p9  ;;  %p11047_p4 = por %p11046_p5, %p11045_p13 }
  0x46   : > { %p11048_p8 = pnand %p11047_p4, %p11041_p3 }
  0x48   : > { %11051 = shalt.err (!%p11048_p8)
}
  0x49   : > { %10924 = dma.hbm_to_vmem [thread:$0]  (!%p11246_p11), %s11244_s25, 128, %s168_s27, %s157_s29  }
  0x4a   : > { %p12475_p10 = scmp.ne.s32.totalorder %s12470_s20, 0 }
  0x4b   : > { %s11267_s24 = sand.u32 (!%p12475_p10), 1, %s11112_s13   ;;  %p12476_p0 = scmp.ne.s32.totalorder (!%p12475_p10), %s12468_s18, 0 }
  0x4c   : > { %176 = sbr.rel (%p12475_p10) target bundleno = 812 (0x32c), region = 32  ;;  %s10252_s26 = sshll.u32 (!%p12475_p10), %s11267_s24, 3 }
  0x4d   : > { %s179_s30 = scalar_lea.sflag (!%p12475_p10), [#allocation3], %s11267_s24  ;;  %s182_s4 = scalar_lea.vmem (!%p12475_p10), [#allocation2], %s10252_s26 }
  0x51   : > { %11095 = dma.done.wait (%p12476_p0), %s179_s30, 128  }
  0x52   : > { %11097 = vsyncadd (%p12476_p0), %s179_s30, 4294967168  ;;  %p12477_p4 = scmp.eq.s32.totalorder %s11170_s16, 0 }
  0x54   : > { %11099 = dma.done.wait (%p12477_p4), [#allocation6], 69632   ;;  %p12478_p8 = pmov %p12477_p4 }
  0x55   : > { %v11127_v0 = vmov 0   ;;  %v472_v1 = vld [vmem:[#allocation5 + $0x800] sm:$0xff]  ;;  %v473_v3 = vld [vmem:[#allocation5 + $0x808] sm:$0xff]  ;;  %v474_v15 = vld [vmem:[#allocation5 + $0x810] sm:$0xff]  ;;  %vm4632_vm0 = vcmask 261120   ;;  %s10255_s18 = sshll.u32 %s11267_s24, 11 }
  0x56   : > { %11101 = vsyncadd (%p12478_p8), [#allocation6], 4294897664  ;;  %4668 = vmatprep.mubr.bf16.mxu0 %v11127_v0  ;;  %4709 = vmatprep.mubr.bf16.mxu1 %v11127_v0  ;;  %v600_v2 = vld [vmem:[#allocation5 + $0xc00] sm:$0xff]  ;;  %v601_v5 = vld [vmem:[#allocation5 + $0xc08] sm:$0xff]  ;;  %s11467_s20 = scalar_lea.vmem [#allocation8], %s10255_s18  ;;  %s10901_s25 = sshll.u32 %s11170_s16, 15 }
  0x57   : > { %v10513_v4 = vcombine.high %v472_v1, %v600_v2  ;;  %v10512_v6 = vcombine.low %v472_v1, %v600_v2  ;;  %v216_v7 = vld [vmem:[#allocation5] sm:$0xff]  ;;  %v10515_v9 = vcombine.high %v473_v3, %v601_v5  ;;  %v10514_v10 = vcombine.low %v473_v3, %v601_v5  ;;  %v217_v12 = vld [vmem:[#allocation5 + $0x8] sm:$0xff]  ;;  %v602_v16 = vld [vmem:[#allocation5 + $0xc10] sm:$0xff]  ;;  %s10155_s27 = sshll.u32 %s11467_s20, 4  ;;  %s12415_s5 = scalar_lea.hbm %s12463_s3, %s10901_s25  ;;  %s12417_s27 = int_to_ptr.vmem [resolvable:$true] %s10155_s27 }
  0x58   : > { %v344_v8 = vld [vmem:[#allocation5 + $0x400] sm:$0xff]  ;;  %v345_v13 = vld [vmem:[#allocation5 + $0x408] sm:$0xff]  ;;  %v475_v17 = vld [vmem:[#allocation5 + $0x818] sm:$0xff]  ;;  %v10517_v22 = vcombine.high %v474_v15, %v602_v16  ;;  %v10516_v29 = vcombine.low %v474_v15, %v602_v16  ;;  %s10141_s16 = scalar_lea.sflag [#allocation4], %s11267_s24  ;;  %s11052_s6 = scalar_lea.vmem %s12417_s27, 32768 }
  0x59   : > { %v10257_v11 = vcombine.high %v216_v7, %v344_v8  ;;  %4648 = vmatprep.subr.bf16.mxu0 %v10513_v4  ;;  %v10259_v14 = vcombine.high %v217_v12, %v345_v13  ;;  %4689 = vmatprep.subr.bf16.mxu1 %v10515_v9  ;;  %v10256_v18 = vcombine.low %v216_v7, %v344_v8  ;;  %v214_v19 = vld [vmem:[%s182_s4] sm:$0xff]  ;;  %v476_v33 = vld [vmem:[#allocation5 + $0x820] sm:$0xff]  ;;  %v477_v35 = vld [vmem:[#allocation5 + $0x828] sm:$0xff]  ;;  %p11053_p3 = scmp.ne.s32.totalorder %s12417_s27, %s11052_s6  ;;  %p12479_p11 = scmp.ne.s32.totalorder %s12473_s10, 0 }
  0x5a   : > { %4649 = vmatpush1.bf16.msra.mxu0 %v10512_v6  ;;  %v603_v20 = vld [vmem:[#allocation5 + $0xc18] sm:$0xff]  ;;  %4690 = vmatpush1.bf16.msra.mxu1 %v10514_v10  ;;  %v10258_v21 = vcombine.low %v217_v12, %v345_v13  ;;  %v218_v24 = vld [vmem:[#allocation5 + $0x10] sm:$0xff]  ;;  %v11281_v26 = vpack.c.bf16 %v214_v19, %v214_v19  ;;  %v604_v34 = vld [vmem:[#allocation5 + $0xc20] sm:$0xff]  ;;  %s11128_s8 = smov [#allocation8]  }
  0x5b   : > { %4650 = vmatprep.subr.bf16.mxu0 %v10257_v11  ;;  %4691 = vmatprep.subr.bf16.mxu1 %v10259_v14  ;;  %v10519_v23 = vcombine.high %v475_v17, %v603_v20  ;;  %v346_v25 = vld [vmem:[#allocation5 + $0x410] sm:$0xff]  ;;  %v219_v27 = vld [vmem:[#allocation5 + $0x18] sm:$0xff]  ;;  %v10518_v30 = vcombine.low %v475_v17, %v603_v20  ;;  %v605_v36 = vld [vmem:[#allocation5 + $0xc28] sm:$0xff]  ;;  %v10521_v39 = vcombine.high %v476_v33, %v604_v34  ;;  %p11054_p1 = pnand %p11053_p3, %p12479_p11  ;;  %s11056_s9 = sshll.u32 %s11128_s8, 4  ;;  %s11057_s9 = int_to_ptr.vmem [resolvable:$false] %s11056_s9 }
  0x5c   : > { %v347_v28 = vld [vmem:[#allocation5 + $0x418] sm:$0xff]  ;;  %v10261_v31 = vcombine.high %v218_v24, %v346_v25  ;;  %v10260_v37 = vcombine.low %v218_v24, %v346_v25  ;;  %v10523_v40 = vcombine.high %v477_v35, %v605_v36  ;;  %v220_v41 = vld [vmem:[#allocation5 + $0x20] sm:$0xff]  ;;  %v221_v43 = vld [vmem:[#allocation5 + $0x28] sm:$0xff]  ;;  %v10520_v45 = vcombine.low %v476_v33, %v604_v34  ;;  %s11058_s21 = scalar_lea.vmem %s11057_s9, 65536  ;;  %p11059_p6 = scmp.lt.s32.totalorder %s12417_s27, %s11057_s9 }
  0x5d   : > { %v10263_v32 = vcombine.high %v219_v27, %v347_v28  ;;  %v10262_v38 = vcombine.low %v219_v27, %v347_v28  ;;  %v348_v42 = vld [vmem:[#allocation5 + $0x420] sm:$0xff]  ;;  %v349_v44 = vld [vmem:[#allocation5 + $0x428] sm:$0xff]  ;;  %v10522_v46 = vcombine.low %v477_v35, %v605_v36  ;;  %v478_v49 = vld [vmem:[#allocation5 + $0x830] sm:$0xff]  ;;  %p11055_p2 = pneg %p11054_p1  ;;  %p11060_p12 = scmp.lt.s32.totalorder %s11058_s21, %s11052_s6 }
  0x5e   : > { %4651 = vmatpush1.bf16.msra.mxu0 %v10256_v18  ;;  %4692 = vmatpush1.bf16.msra.mxu1 %v10258_v21  ;;  %v10265_v47 = vcombine.high %v220_v41, %v348_v42  ;;  %v10267_v48 = vcombine.high %v221_v43, %v349_v44  ;;  %v606_v50 = vld [vmem:[#allocation5 + $0xc30] sm:$0xff]  ;;  %v479_v51 = vld [vmem:[#allocation5 + $0x838] sm:$0xff]  ;;  %v10264_v53 = vcombine.low %v220_v41, %v348_v42  ;;  %v480_v2 = vld [vmem:[#allocation5 + $0x840] sm:$0xff] }
  0x5f   : > { %4730 = vmatprep.subr.bf16.mxu0 %v10517_v22  ;;  %4771 = vmatprep.subr.bf16.mxu1 %v10519_v23  ;;  %v607_v52 = vld [vmem:[#allocation5 + $0xc38] sm:$0xff]  ;;  %v10266_v54 = vcombine.low %v221_v43, %v349_v44  ;;  %v10525_v55 = vcombine.high %v478_v49, %v606_v50  ;;  %v222_v57 = vld [vmem:[#allocation5 + $0x30] sm:$0xff]  ;;  %v10524_v61 = vcombine.low %v478_v49, %v606_v50  ;;  %v608_v3 = vld [vmem:[#allocation5 + $0xc40] sm:$0xff]  ;;  %p11061_p7 = por %p11060_p12, %p11059_p6 }
  0x60   : > { %v10527_v56 = vcombine.high %v479_v51, %v607_v52  ;;  %v350_v58 = vld [vmem:[#allocation5 + $0x430] sm:$0xff]  ;;  %v223_v59 = vld [vmem:[#allocation5 + $0x38] sm:$0xff]  ;;  %v10526_v62 = vcombine.low %v479_v51, %v607_v52  ;;  %v481_v4 = vld [vmem:[#allocation5 + $0x848] sm:$0xff]  ;;  %v10529_v8 = vcombine.high %v480_v2, %v608_v3  ;;  %v10528_v14 = vcombine.low %v480_v2, %v608_v3 }
  0x61   : > { %10768 = vmatmul.mubr.msk.bf16.vlgmr.msra.gmra.mxu0 %vm4632_vm0, %v11281_v26  ;;  %10769 = vmatmul.mubr.msk.bf16.vlgmr.msra.gmra.mxu1 %vm4632_vm0, %v11281_v26  ;;  %v351_v60 = vld [vmem:[#allocation5 + $0x438] sm:$0xff]  ;;  %v10269_v63 = vcombine.high %v222_v57, %v350_v58  ;;  %v609_v5 = vld [vmem:[#allocation5 + $0xc48] sm:$0xff]  ;;  %v10268_v6 = vcombine.low %v222_v57, %v350_v58  ;;  %v224_v10 = vld [vmem:[#allocation5 + $0x40] sm:$0xff]  ;;  %p11062_p9 = pnand %p11061_p7, %p11055_p2 }
  0x62   : > { %4731 = vmatpush1.bf16.msra.mxu0 %v10516_v29  ;;  %4772 = vmatpush1.bf16.msra.mxu1 %v10518_v30  ;;  %v10271_v1 = vcombine.high %v223_v59, %v351_v60  ;;  %v10270_v7 = vcombine.low %v223_v59, %v351_v60  ;;  %v10531_v9 = vcombine.high %v481_v4, %v609_v5  ;;  %v352_v11 = vld [vmem:[#allocation5 + $0x440] sm:$0xff]  ;;  %v225_v12 = vld [vmem:[#allocation5 + $0x48] sm:$0xff]  ;;  %v482_v18 = vld [vmem:[#allocation5 + $0x850] sm:$0xff] }
  0x63   : > { %4732 = vmatprep.subr.bf16.mxu0 %v10261_v31  ;;  %4773 = vmatprep.subr.bf16.mxu1 %v10263_v32  ;;  %v353_v13 = vld [vmem:[#allocation5 + $0x448] sm:$0xff]  ;;  %v10530_v15 = vcombine.low %v481_v4, %v609_v5  ;;  %v10273_v16 = vcombine.high %v224_v10, %v352_v11  ;;  %v610_v19 = vld [vmem:[#allocation5 + $0xc50] sm:$0xff]  ;;  %v483_v20 = vld [vmem:[#allocation5 + $0x858] sm:$0xff]  ;;  %v10272_v22 = vcombine.low %v224_v10, %v352_v11 }
  0x64   : > { %4750 = vmatprep.mubr.bf16.mxu0 %v11127_v0  ;;  %4791 = vmatprep.mubr.bf16.mxu1 %v11127_v0  ;;  %v10275_v17 = vcombine.high %v225_v12, %v353_v13  ;;  %v611_v21 = vld [vmem:[#allocation5 + $0xc58] sm:$0xff]  ;;  %v10274_v23 = vcombine.low %v225_v12, %v353_v13  ;;  %v10533_v24 = vcombine.high %v482_v18, %v610_v19  ;;  %v226_v27 = vld [vmem:[#allocation5 + $0x50] sm:$0xff]  ;;  %v484_v35 = vld [vmem:[#allocation5 + $0x860] sm:$0xff] }
  0x65   : > { %v10535_v25 = vcombine.high %v483_v20, %v611_v21  ;;  %v354_v28 = vld [vmem:[#allocation5 + $0x450] sm:$0xff]  ;;  %v227_v29 = vld [vmem:[#allocation5 + $0x58] sm:$0xff]  ;;  %v10532_v31 = vcombine.low %v482_v18, %v610_v19  ;;  %v10534_v32 = vcombine.low %v483_v20, %v611_v21  ;;  %v612_v36 = vld [vmem:[#allocation5 + $0xc60] sm:$0xff] }
  0x66   : > { %4733 = vmatpush1.bf16.msra.mxu0 %v10260_v37  ;;  %4774 = vmatpush1.bf16.msra.mxu1 %v10262_v38  ;;  %v355_v30 = vld [vmem:[#allocation5 + $0x458] sm:$0xff]  ;;  %v10277_v33 = vcombine.high %v226_v27, %v354_v28  ;;  %v485_v37 = vld [vmem:[#allocation5 + $0x868] sm:$0xff]  ;;  %v10537_v41 = vcombine.high %v484_v35, %v612_v36  ;;  %v228_v43 = vld [vmem:[#allocation5 + $0x60] sm:$0xff] }
  0x67   : > { %4812 = vmatprep.subr.bf16.mxu0 %v10521_v39  ;;  %4853 = vmatprep.subr.bf16.mxu1 %v10523_v40  ;;  %v10279_v34 = vcombine.high %v227_v29, %v355_v30  ;;  %v613_v38 = vld [vmem:[#allocation5 + $0xc68] sm:$0xff]  ;;  %v10276_v39 = vcombine.low %v226_v27, %v354_v28  ;;  %v10278_v40 = vcombine.low %v227_v29, %v355_v30  ;;  %v356_v44 = vld [vmem:[#allocation5 + $0x460] sm:$0xff]  ;;  %v486_v51 = vld [vmem:[#allocation5 + $0x870] sm:$0xff] }
  0x68   : > { %v10539_v42 = vcombine.high %v485_v37, %v613_v38  ;;  %v10281_v49 = vcombine.high %v228_v43, %v356_v44  ;;  %v614_v52 = vld [vmem:[#allocation5 + $0xc70] sm:$0xff]  ;;  %v488_v4 = vld [vmem:[#allocation5 + $0x880] sm:$0xff] }
  0x69   : > { %10770 = vmatmul.mubr.msk.bf16.vlgmr.msra.gmra.mxu0 %vm4632_vm0, %v11281_v26  ;;  %10771 = vmatmul.mubr.msk.bf16.vlgmr.msra.gmra.mxu1 %vm4632_vm0, %v11281_v26  ;;  %v10541_v57 = vcombine.high %v486_v51, %v614_v52  ;;  %v230_v59 = vld [vmem:[#allocation5 + $0x70] sm:$0xff]  ;;  %v616_v5 = vld [vmem:[#allocation5 + $0xc80] sm:$0xff] }
  0x6a   : > { %4813 = vmatpush1.bf16.msra.mxu0 %v10520_v45  ;;  %4854 = vmatpush1.bf16.msra.mxu1 %v10522_v46  ;;  %v229_v45 = vld [vmem:[#allocation5 + $0x68] sm:$0xff]  ;;  %v358_v60 = vld [vmem:[#allocation5 + $0x470] sm:$0xff]  ;;  %v10545_v10 = vcombine.high %v488_v4, %v616_v5  ;;  %v232_v12 = vld [vmem:[#allocation5 + $0x80] sm:$0xff] }
  0x6b   : > { %4814 = vmatprep.subr.bf16.mxu0 %v10265_v47  ;;  %4855 = vmatprep.subr.bf16.mxu1 %v10267_v48  ;;  %v357_v46 = vld [vmem:[#allocation5 + $0x468] sm:$0xff]  ;;  %v10536_v47 = vcombine.low %v484_v35, %v612_v36  ;;  %v10538_v48 = vcombine.low %v485_v37, %v613_v38  ;;  %v10285_v2 = vcombine.high %v230_v59, %v358_v60  ;;  %v360_v13 = vld [vmem:[#allocation5 + $0x480] sm:$0xff]  ;;  %v490_v20 = vld [vmem:[#allocation5 + $0x890] sm:$0xff] }
  0x6c   : > { %4832 = vmatprep.mubr.bf16.mxu0 %v11127_v0  ;;  %4873 = vmatprep.mubr.bf16.mxu1 %v11127_v0  ;;  %v10283_v50 = vcombine.high %v229_v45, %v357_v46  ;;  %v10289_v18 = vcombine.high %v232_v12, %v360_v13  ;;  %v618_v21 = vld [vmem:[#allocation5 + $0xc90] sm:$0xff]  ;;  %v492_v37 = vld [vmem:[#allocation5 + $0x8a0] sm:$0xff] }
  0x6d   : > { %v10549_v27 = vcombine.high %v490_v20, %v618_v21  ;;  %v234_v29 = vld [vmem:[#allocation5 + $0x90] sm:$0xff]  ;;  %v620_v38 = vld [vmem:[#allocation5 + $0xca0] sm:$0xff] }
  0x6e   : > { %4815 = vmatpush1.bf16.msra.mxu0 %v10264_v53  ;;  %4856 = vmatpush1.bf16.msra.mxu1 %v10266_v54  ;;  %v487_v53 = vld [vmem:[#allocation5 + $0x878] sm:$0xff]  ;;  %v362_v30 = vld [vmem:[#allocation5 + $0x490] sm:$0xff] }
  0x6f   : > { %4894 = vmatprep.subr.bf16.mxu0 %v10525_v55  ;;  %4935 = vmatprep.subr.bf16.mxu1 %v10527_v56  ;;  %v615_v54 = vld [vmem:[#allocation5 + $0xc78] sm:$0xff]  ;;  %v10280_v55 = vcombine.low %v228_v43, %v356_v44  ;;  %v10282_v56 = vcombine.low %v229_v45, %v357_v46  ;;  %v10293_v35 = vcombine.high %v234_v29, %v362_v30  ;;  %v236_v45 = vld [vmem:[#allocation5 + $0xa0] sm:$0xff] }
  0x70   : > { %v10543_v58 = vcombine.high %v487_v53, %v615_v54  ;;  %v10553_v43 = vcombine.high %v492_v37, %v620_v38  ;;  %v364_v46 = vld [vmem:[#allocation5 + $0x4a0] sm:$0xff] }
  0x71   : > { %10772 = vmatmul.mubr.msk.bf16.vlgmr.msra.gmra.mxu0 %vm4632_vm0, %v11281_v26  ;;  %10773 = vmatmul.mubr.msk.bf16.vlgmr.msra.gmra.mxu1 %vm4632_vm0, %v11281_v26 }
  0x72   : > { %4895 = vmatpush1.bf16.msra.mxu0 %v10524_v61  ;;  %4936 = vmatpush1.bf16.msra.mxu1 %v10526_v62  ;;  %v231_v61 = vld [vmem:[#allocation5 + $0x78] sm:$0xff] }
  0x73   : > { %4896 = vmatprep.subr.bf16.mxu0 %v10269_v63  ;;  %4937 = vmatprep.subr.bf16.mxu1 %v10271_v1  ;;  %v359_v62 = vld [vmem:[#allocation5 + $0x478] sm:$0xff]  ;;  %v10540_v63 = vcombine.low %v486_v51, %v614_v52  ;;  %v10542_v1 = vcombine.low %v487_v53, %v615_v54  ;;  %v10297_v51 = vcombine.high %v236_v45, %v364_v46  ;;  %v494_v53 = vld [vmem:[#allocation5 + $0x8b0] sm:$0xff] }
  0x74   : > { %4914 = vmatprep.mubr.bf16.mxu0 %v11127_v0  ;;  %4955 = vmatprep.mubr.bf16.mxu1 %v11127_v0  ;;  %v10287_v3 = vcombine.high %v231_v61, %v359_v62  ;;  %v622_v54 = vld [vmem:[#allocation5 + $0xcb0] sm:$0xff] }
  0x76   : > { %4897 = vmatpush1.bf16.msra.mxu0 %v10268_v6  ;;  %4938 = vmatpush1.bf16.msra.mxu1 %v10270_v7  ;;  %v489_v6 = vld [vmem:[#allocation5 + $0x888] sm:$0xff] }
  0x77   : > { %4976 = vmatprep.subr.bf16.mxu0 %v10529_v8  ;;  %5017 = vmatprep.subr.bf16.mxu1 %v10531_v9  ;;  %v617_v7 = vld [vmem:[#allocation5 + $0xc88] sm:$0xff]  ;;  %v10284_v8 = vcombine.low %v230_v59, %v358_v60  ;;  %v10286_v9 = vcombine.low %v231_v61, %v359_v62  ;;  %v10557_v59 = vcombine.high %v494_v53, %v622_v54  ;;  %v238_v61 = vld [vmem:[#allocation5 + $0xb0] sm:$0xff] }
  0x78   : > { %v10547_v11 = vcombine.high %v489_v6, %v617_v7  ;;  %v366_v62 = vld [vmem:[#allocation5 + $0x4b0] sm:$0xff] }
  0x79   : > { %10774 = vmatmul.mubr.msk.bf16.vlgmr.msra.gmra.mxu0 %vm4632_vm0, %v11281_v26  ;;  %10775 = vmatmul.mubr.msk.bf16.vlgmr.msra.gmra.mxu1 %vm4632_vm0, %v11281_v26 }
  0x7a   : > { %4977 = vmatpush1.bf16.msra.mxu0 %v10528_v14  ;;  %5018 = vmatpush1.bf16.msra.mxu1 %v10530_v15  ;;  %v233_v14 = vld [vmem:[#allocation5 + $0x88] sm:$0xff] }
  0x7b   : > { %4978 = vmatprep.subr.bf16.mxu0 %v10273_v16  ;;  %5019 = vmatprep.subr.bf16.mxu1 %v10275_v17  ;;  %v361_v15 = vld [vmem:[#allocation5 + $0x488] sm:$0xff]  ;;  %v10544_v16 = vcombine.low %v488_v4, %v616_v5  ;;  %v10546_v17 = vcombine.low %v489_v6, %v617_v7  ;;  %v10301_v4 = vcombine.high %v238_v61, %v366_v62  ;;  %v496_v6 = vld [vmem:[#allocation5 + $0x8c0] sm:$0xff] }
  0x7c   : > { %4996 = vmatprep.mubr.bf16.mxu0 %v11127_v0  ;;  %5037 = vmatprep.mubr.bf16.mxu1 %v11127_v0  ;;  %v10291_v19 = vcombine.high %v233_v14, %v361_v15  ;;  %v624_v7 = vld [vmem:[#allocation5 + $0xcc0] sm:$0xff] }
  0x7e   : > { %4979 = vmatpush1.bf16.msra.mxu0 %v10272_v22  ;;  %5020 = vmatpush1.bf16.msra.mxu1 %v10274_v23  ;;  %v491_v22 = vld [vmem:[#allocation5 + $0x898] sm:$0xff] }
  0x7f   : > { %5058 = vmatprep.subr.bf16.mxu0 %v10533_v24  ;;  %5099 = vmatprep.subr.bf16.mxu1 %v10535_v25  ;;  %v619_v23 = vld [vmem:[#allocation5 + $0xc98] sm:$0xff]  ;;  %v10288_v24 = vcombine.low %v232_v12, %v360_v13  ;;  %v10290_v25 = vcombine.low %v233_v14, %v361_v15  ;;  %v10561_v12 = vcombine.high %v496_v6, %v624_v7  ;;  %v240_v14 = vld [vmem:[#allocation5 + $0xc0] sm:$0xff] }
  0x80   : > { %v10551_v28 = vcombine.high %v491_v22, %v619_v23  ;;  %v368_v15 = vld [vmem:[#allocation5 + $0x4c0] sm:$0xff] }
  0x81   : > { %10776 = vmatmul.mubr.msk.bf16.vlgmr.msra.gmra.mxu0 %vm4632_vm0, %v11281_v26  ;;  %10777 = vmatmul.mubr.msk.bf16.vlgmr.msra.gmra.mxu1 %vm4632_vm0, %v11281_v26 }
  0x82   : > { %5059 = vmatpush1.bf16.msra.mxu0 %v10532_v31  ;;  %5100 = vmatpush1.bf16.msra.mxu1 %v10534_v32  ;;  %v235_v31 = vld [vmem:[#allocation5 + $0x98] sm:$0xff] }
  0x83   : > { %5060 = vmatprep.subr.bf16.mxu0 %v10277_v33  ;;  %5101 = vmatprep.subr.bf16.mxu1 %v10279_v34  ;;  %v363_v32 = vld [vmem:[#allocation5 + $0x498] sm:$0xff]  ;;  %v10548_v33 = vcombine.low %v490_v20, %v618_v21  ;;  %v10550_v34 = vcombine.low %v491_v22, %v619_v23  ;;  %v10305_v20 = vcombine.high %v240_v14, %v368_v15  ;;  %v498_v22 = vld [vmem:[#allocation5 + $0x8d0] sm:$0xff] }
  0x84   : > { %5078 = vmatprep.mubr.bf16.mxu0 %v11127_v0  ;;  %5119 = vmatprep.mubr.bf16.mxu1 %v11127_v0  ;;  %v10295_v36 = vcombine.high %v235_v31, %v363_v32  ;;  %v626_v23 = vld [vmem:[#allocation5 + $0xcd0] sm:$0xff] }
  0x86   : > { %5061 = vmatpush1.bf16.msra.mxu0 %v10276_v39  ;;  %5102 = vmatpush1.bf16.msra.mxu1 %v10278_v40  ;;  %v493_v39 = vld [vmem:[#allocation5 + $0x8a8] sm:$0xff] }
  0x87   : > { %5140 = vmatprep.subr.bf16.mxu0 %v10537_v41  ;;  %5181 = vmatprep.subr.bf16.mxu1 %v10539_v42  ;;  %v621_v40 = vld [vmem:[#allocation5 + $0xca8] sm:$0xff]  ;;  %v10292_v41 = vcombine.low %v234_v29, %v362_v30  ;;  %v10294_v42 = vcombine.low %v235_v31, %v363_v32  ;;  %v10565_v29 = vcombine.high %v498_v22, %v626_v23  ;;  %v242_v31 = vld [vmem:[#allocation5 + $0xd0] sm:$0xff] }
  0x88   : > { %v10555_v44 = vcombine.high %v493_v39, %v621_v40  ;;  %v370_v32 = vld [vmem:[#allocation5 + $0x4d0] sm:$0xff] }
  0x89   : > { %10778 = vmatmul.mubr.msk.bf16.vlgmr.msra.gmra.mxu0 %vm4632_vm0, %v11281_v26  ;;  %10779 = vmatmul.mubr.msk.bf16.vlgmr.msra.gmra.mxu1 %vm4632_vm0, %v11281_v26 }
  0x8a   : > { %5141 = vmatpush1.bf16.msra.mxu0 %v10536_v47  ;;  %5182 = vmatpush1.bf16.msra.mxu1 %v10538_v48  ;;  %v237_v47 = vld [vmem:[#allocation5 + $0xa8] sm:$0xff] }
  0x8b   : > { %5142 = vmatprep.subr.bf16.mxu0 %v10281_v49  ;;  %5183 = vmatprep.subr.bf16.mxu1 %v10283_v50  ;;  %v365_v48 = vld [vmem:[#allocation5 + $0x4a8] sm:$0xff]  ;;  %v10552_v49 = vcombine.low %v492_v37, %v620_v38  ;;  %v10554_v50 = vcombine.low %v493_v39, %v621_v40  ;;  %v10309_v37 = vcombine.high %v242_v31, %v370_v32  ;;  %v500_v39 = vld [vmem:[#allocation5 + $0x8e0] sm:$0xff] }
  0x8c   : > { %5160 = vmatprep.mubr.bf16.mxu0 %v11127_v0  ;;  %5201 = vmatprep.mubr.bf16.mxu1 %v11127_v0  ;;  %v10299_v52 = vcombine.high %v237_v47, %v365_v48  ;;  %v628_v40 = vld [vmem:[#allocation5 + $0xce0] sm:$0xff] }
  0x8e   : > { %5143 = vmatpush1.bf16.msra.mxu0 %v10280_v55  ;;  %5184 = vmatpush1.bf16.msra.mxu1 %v10282_v56  ;;  %v495_v55 = vld [vmem:[#allocation5 + $0x8b8] sm:$0xff] }
  0x8f   : > { %5222 = vmatprep.subr.bf16.mxu0 %v10541_v57  ;;  %5263 = vmatprep.subr.bf16.mxu1 %v10543_v58  ;;  %v623_v56 = vld [vmem:[#allocation5 + $0xcb8] sm:$0xff]  ;;  %v10296_v57 = vcombine.low %v236_v45, %v364_v46  ;;  %v10298_v58 = vcombine.low %v237_v47, %v365_v48  ;;  %v10569_v45 = vcombine.high %v500_v39, %v628_v40  ;;  %v244_v47 = vld [vmem:[#allocation5 + $0xe0] sm:$0xff] }
  0x90   : > { %v10559_v60 = vcombine.high %v495_v55, %v623_v56  ;;  %v372_v48 = vld [vmem:[#allocation5 + $0x4e0] sm:$0xff] }
  0x91   : > { %10780 = vmatmul.mubr.msk.bf16.vlgmr.msra.gmra.mxu0 %vm4632_vm0, %v11281_v26  ;;  %10781 = vmatmul.mubr.msk.bf16.vlgmr.msra.gmra.mxu1 %vm4632_vm0, %v11281_v26 }
  0x92   : > { %5223 = vmatpush1.bf16.msra.mxu0 %v10540_v63  ;;  %5264 = vmatpush1.bf16.msra.mxu1 %v10542_v1  ;;  %v239_v63 = vld [vmem:[#allocation5 + $0xb8] sm:$0xff] }
  0x93   : > { %5224 = vmatprep.subr.bf16.mxu0 %v10285_v2  ;;  %5265 = vmatprep.subr.bf16.mxu1 %v10287_v3  ;;  %v367_v1 = vld [vmem:[#allocation5 + $0x4b8] sm:$0xff]  ;;  %v10556_v2 = vcombine.low %v494_v53, %v622_v54  ;;  %v10558_v3 = vcombine.low %v495_v55, %v623_v56  ;;  %v10313_v53 = vcombine.high %v244_v47, %v372_v48  ;;  %v502_v55 = vld [vmem:[#allocation5 + $0x8f0] sm:$0xff] }
  0x94   : > { %5242 = vmatprep.mubr.bf16.mxu0 %v11127_v0  ;;  %5283 = vmatprep.mubr.bf16.mxu1 %v11127_v0  ;;  %v10303_v5 = vcombine.high %v239_v63, %v367_v1  ;;  %v630_v56 = vld [vmem:[#allocation5 + $0xcf0] sm:$0xff] }
  0x96   : > { %5225 = vmatpush1.bf16.msra.mxu0 %v10284_v8  ;;  %5266 = vmatpush1.bf16.msra.mxu1 %v10286_v9  ;;  %v497_v8 = vld [vmem:[#allocation5 + $0x8c8] sm:$0xff] }
  0x97   : > { %5304 = vmatprep.subr.bf16.mxu0 %v10545_v10  ;;  %5345 = vmatprep.subr.bf16.mxu1 %v10547_v11  ;;  %v625_v9 = vld [vmem:[#allocation5 + $0xcc8] sm:$0xff]  ;;  %v10300_v10 = vcombine.low %v238_v61, %v366_v62  ;;  %v10302_v11 = vcombine.low %v239_v63, %v367_v1  ;;  %v10573_v61 = vcombine.high %v502_v55, %v630_v56  ;;  %v246_v63 = vld [vmem:[#allocation5 + $0xf0] sm:$0xff] }
  0x98   : > { %v10563_v13 = vcombine.high %v497_v8, %v625_v9  ;;  %v374_v1 = vld [vmem:[#allocation5 + $0x4f0] sm:$0xff] }
  0x99   : > { %10782 = vmatmul.mubr.msk.bf16.vlgmr.msra.gmra.mxu0 %vm4632_vm0, %v11281_v26  ;;  %10783 = vmatmul.mubr.msk.bf16.vlgmr.msra.gmra.mxu1 %vm4632_vm0, %v11281_v26 }
  0x9a   : > { %5305 = vmatpush1.bf16.msra.mxu0 %v10544_v16  ;;  %5346 = vmatpush1.bf16.msra.mxu1 %v10546_v17  ;;  %v241_v16 = vld [vmem:[#allocation5 + $0xc8] sm:$0xff] }
  0x9b   : > { %5306 = vmatprep.subr.bf16.mxu0 %v10289_v18  ;;  %5347 = vmatprep.subr.bf16.mxu1 %v10291_v19  ;;  %v369_v17 = vld [vmem:[#allocation5 + $0x4c8] sm:$0xff]  ;;  %v10560_v18 = vcombine.low %v496_v6, %v624_v7  ;;  %v10562_v19 = vcombine.low %v497_v8, %v625_v9  ;;  %v10317_v6 = vcombine.high %v246_v63, %v374_v1  ;;  %v504_v8 = vld [vmem:[#allocation5 + $0x900] sm:$0xff] }
  0x9c   : > { %5324 = vmatprep.mubr.bf16.mxu0 %v11127_v0  ;;  %5365 = vmatprep.mubr.bf16.mxu1 %v11127_v0  ;;  %v10307_v21 = vcombine.high %v241_v16, %v369_v17  ;;  %v632_v9 = vld [vmem:[#allocation5 + $0xd00] sm:$0xff] }
  0x9e   : > { %5307 = vmatpush1.bf16.msra.mxu0 %v10288_v24  ;;  %5348 = vmatpush1.bf16.msra.mxu1 %v10290_v25  ;;  %v499_v24 = vld [vmem:[#allocation5 + $0x8d8] sm:$0xff] }
  0x9f   : > { %5386 = vmatprep.subr.bf16.mxu0 %v10549_v27  ;;  %5427 = vmatprep.subr.bf16.mxu1 %v10551_v28  ;;  %v627_v25 = vld [vmem:[#allocation5 + $0xcd8] sm:$0xff]  ;;  %v10304_v27 = vcombine.low %v240_v14, %v368_v15  ;;  %v10306_v28 = vcombine.low %v241_v16, %v369_v17  ;;  %v10577_v14 = vcombine.high %v504_v8, %v632_v9  ;;  %v248_v16 = vld [vmem:[#allocation5 + $0x100] sm:$0xff] }
  0xa0   : > { %v10567_v30 = vcombine.high %v499_v24, %v627_v25  ;;  %v376_v17 = vld [vmem:[#allocation5 + $0x500] sm:$0xff] }
  0xa1   : > { %10784 = vmatmul.mubr.msk.bf16.vlgmr.msra.gmra.mxu0 %vm4632_vm0, %v11281_v26  ;;  %10785 = vmatmul.mubr.msk.bf16.vlgmr.msra.gmra.mxu1 %vm4632_vm0, %v11281_v26 }
  0xa2   : > { %5387 = vmatpush1.bf16.msra.mxu0 %v10548_v33  ;;  %5428 = vmatpush1.bf16.msra.mxu1 %v10550_v34  ;;  %v243_v33 = vld [vmem:[#allocation5 + $0xd8] sm:$0xff] }
  0xa3   : > { %5388 = vmatprep.subr.bf16.mxu0 %v10293_v35  ;;  %5429 = vmatprep.subr.bf16.mxu1 %v10295_v36  ;;  %v371_v34 = vld [vmem:[#allocation5 + $0x4d8] sm:$0xff]  ;;  %v10564_v35 = vcombine.low %v498_v22, %v626_v23  ;;  %v10566_v36 = vcombine.low %v499_v24, %v627_v25  ;;  %v10321_v22 = vcombine.high %v248_v16, %v376_v17  ;;  %v506_v24 = vld [vmem:[#allocation5 + $0x910] sm:$0xff] }
  0xa4   : > { %5406 = vmatprep.mubr.bf16.mxu0 %v11127_v0  ;;  %5447 = vmatprep.mubr.bf16.mxu1 %v11127_v0  ;;  %v10311_v38 = vcombine.high %v243_v33, %v371_v34  ;;  %v634_v25 = vld [vmem:[#allocation5 + $0xd10] sm:$0xff] }
  0xa6   : > { %5389 = vmatpush1.bf16.msra.mxu0 %v10292_v41  ;;  %5430 = vmatpush1.bf16.msra.mxu1 %v10294_v42  ;;  %v501_v41 = vld [vmem:[#allocation5 + $0x8e8] sm:$0xff] }
  0xa7   : > { %5468 = vmatprep.subr.bf16.mxu0 %v10553_v43  ;;  %5509 = vmatprep.subr.bf16.mxu1 %v10555_v44  ;;  %v629_v42 = vld [vmem:[#allocation5 + $0xce8] sm:$0xff]  ;;  %v10308_v43 = vcombine.low %v242_v31, %v370_v32  ;;  %v10310_v44 = vcombine.low %v243_v33, %v371_v34  ;;  %v10581_v31 = vcombine.high %v506_v24, %v634_v25  ;;  %v250_v33 = vld [vmem:[#allocation5 + $0x110] sm:$0xff] }
  0xa8   : > { %v10571_v46 = vcombine.high %v501_v41, %v629_v42  ;;  %v378_v34 = vld [vmem:[#allocation5 + $0x510] sm:$0xff] }
  0xa9   : > { %10786 = vmatmul.mubr.msk.bf16.vlgmr.msra.gmra.mxu0 %vm4632_vm0, %v11281_v26  ;;  %10787 = vmatmul.mubr.msk.bf16.vlgmr.msra.gmra.mxu1 %vm4632_vm0, %v11281_v26 }
  0xaa   : > { %5469 = vmatpush1.bf16.msra.mxu0 %v10552_v49  ;;  %5510 = vmatpush1.bf16.msra.mxu1 %v10554_v50  ;;  %v245_v49 = vld [vmem:[#allocation5 + $0xe8] sm:$0xff] }
  0xab   : > { %5470 = vmatprep.subr.bf16.mxu0 %v10297_v51  ;;  %5511 = vmatprep.subr.bf16.mxu1 %v10299_v52  ;;  %v373_v50 = vld [vmem:[#allocation5 + $0x4e8] sm:$0xff]  ;;  %v10568_v51 = vcombine.low %v500_v39, %v628_v40  ;;  %v10570_v52 = vcombine.low %v501_v41, %v629_v42  ;;  %v10325_v39 = vcombine.high %v250_v33, %v378_v34  ;;  %v508_v41 = vld [vmem:[#allocation5 + $0x920] sm:$0xff] }
  0xac   : > { %5488 = vmatprep.mubr.bf16.mxu0 %v11127_v0  ;;  %5529 = vmatprep.mubr.bf16.mxu1 %v11127_v0  ;;  %v10315_v54 = vcombine.high %v245_v49, %v373_v50  ;;  %v636_v42 = vld [vmem:[#allocation5 + $0xd20] sm:$0xff] }
  0xae   : > { %5471 = vmatpush1.bf16.msra.mxu0 %v10296_v57  ;;  %5512 = vmatpush1.bf16.msra.mxu1 %v10298_v58  ;;  %v503_v57 = vld [vmem:[#allocation5 + $0x8f8] sm:$0xff] }
  0xaf   : > { %5550 = vmatprep.subr.bf16.mxu0 %v10557_v59  ;;  %5591 = vmatprep.subr.bf16.mxu1 %v10559_v60  ;;  %v631_v58 = vld [vmem:[#allocation5 + $0xcf8] sm:$0xff]  ;;  %v10312_v59 = vcombine.low %v244_v47, %v372_v48  ;;  %v10314_v60 = vcombine.low %v245_v49, %v373_v50  ;;  %v10585_v47 = vcombine.high %v508_v41, %v636_v42  ;;  %v252_v49 = vld [vmem:[#allocation5 + $0x120] sm:$0xff] }
  0xb0   : > { %v10575_v62 = vcombine.high %v503_v57, %v631_v58  ;;  %v380_v50 = vld [vmem:[#allocation5 + $0x520] sm:$0xff] }
  0xb1   : > { %10788 = vmatmul.mubr.msk.bf16.vlgmr.msra.gmra.mxu0 %vm4632_vm0, %v11281_v26  ;;  %10789 = vmatmul.mubr.msk.bf16.vlgmr.msra.gmra.mxu1 %vm4632_vm0, %v11281_v26 }
  0xb2   : > { %5551 = vmatpush1.bf16.msra.mxu0 %v10556_v2  ;;  %5592 = vmatpush1.bf16.msra.mxu1 %v10558_v3  ;;  %v247_v2 = vld [vmem:[#allocation5 + $0xf8] sm:$0xff] }
  0xb3   : > { %5552 = vmatprep.subr.bf16.mxu0 %v10301_v4  ;;  %5593 = vmatprep.subr.bf16.mxu1 %v10303_v5  ;;  %v375_v3 = vld [vmem:[#allocation5 + $0x4f8] sm:$0xff]  ;;  %v10572_v4 = vcombine.low %v502_v55, %v630_v56  ;;  %v10574_v5 = vcombine.low %v503_v57, %v631_v58  ;;  %v10329_v55 = vcombine.high %v252_v49, %v380_v50  ;;  %v510_v57 = vld [vmem:[#allocation5 + $0x930] sm:$0xff] }
  0xb4   : > { %5570 = vmatprep.mubr.bf16.mxu0 %v11127_v0  ;;  %5611 = vmatprep.mubr.bf16.mxu1 %v11127_v0  ;;  %v10319_v7 = vcombine.high %v247_v2, %v375_v3  ;;  %v638_v58 = vld [vmem:[#allocation5 + $0xd30] sm:$0xff] }
  0xb6   : > { %5553 = vmatpush1.bf16.msra.mxu0 %v10300_v10  ;;  %5594 = vmatpush1.bf16.msra.mxu1 %v10302_v11  ;;  %v505_v10 = vld [vmem:[#allocation5 + $0x908] sm:$0xff] }
  0xb7   : > { %5632 = vmatprep.subr.bf16.mxu0 %v10561_v12  ;;  %5673 = vmatprep.subr.bf16.mxu1 %v10563_v13  ;;  %v633_v11 = vld [vmem:[#allocation5 + $0xd08] sm:$0xff]  ;;  %v10316_v12 = vcombine.low %v246_v63, %v374_v1  ;;  %v10318_v13 = vcombine.low %v247_v2, %v375_v3  ;;  %v10589_v63 = vcombine.high %v510_v57, %v638_v58  ;;  %v254_v2 = vld [vmem:[#allocation5 + $0x130] sm:$0xff] }
  0xb8   : > { %v10579_v15 = vcombine.high %v505_v10, %v633_v11  ;;  %v382_v3 = vld [vmem:[#allocation5 + $0x530] sm:$0xff] }
  0xb9   : > { %10790 = vmatmul.mubr.msk.bf16.vlgmr.msra.gmra.mxu0 %vm4632_vm0, %v11281_v26  ;;  %10791 = vmatmul.mubr.msk.bf16.vlgmr.msra.gmra.mxu1 %vm4632_vm0, %v11281_v26 }
  0xba   : > { %5633 = vmatpush1.bf16.msra.mxu0 %v10560_v18  ;;  %5674 = vmatpush1.bf16.msra.mxu1 %v10562_v19  ;;  %v249_v18 = vld [vmem:[#allocation5 + $0x108] sm:$0xff] }
  0xbb   : > { %5634 = vmatprep.subr.bf16.mxu0 %v10305_v20  ;;  %5675 = vmatprep.subr.bf16.mxu1 %v10307_v21  ;;  %v377_v19 = vld [vmem:[#allocation5 + $0x508] sm:$0xff]  ;;  %v10576_v20 = vcombine.low %v504_v8, %v632_v9  ;;  %v10578_v21 = vcombine.low %v505_v10, %v633_v11  ;;  %v10333_v8 = vcombine.high %v254_v2, %v382_v3  ;;  %v512_v10 = vld [vmem:[#allocation5 + $0x940] sm:$0xff] }
  0xbc   : > { %5652 = vmatprep.mubr.bf16.mxu0 %v11127_v0  ;;  %5693 = vmatprep.mubr.bf16.mxu1 %v11127_v0  ;;  %v10323_v23 = vcombine.high %v249_v18, %v377_v19  ;;  %v640_v11 = vld [vmem:[#allocation5 + $0xd40] sm:$0xff] }
  0xbe   : > { %5635 = vmatpush1.bf16.msra.mxu0 %v10304_v27  ;;  %5676 = vmatpush1.bf16.msra.mxu1 %v10306_v28  ;;  %v507_v27 = vld [vmem:[#allocation5 + $0x918] sm:$0xff] }
  0xbf   : > { %5714 = vmatprep.subr.bf16.mxu0 %v10565_v29  ;;  %5755 = vmatprep.subr.bf16.mxu1 %v10567_v30  ;;  %v635_v28 = vld [vmem:[#allocation5 + $0xd18] sm:$0xff]  ;;  %v10320_v29 = vcombine.low %v248_v16, %v376_v17  ;;  %v10322_v30 = vcombine.low %v249_v18, %v377_v19  ;;  %v10593_v16 = vcombine.high %v512_v10, %v640_v11  ;;  %v256_v18 = vld [vmem:[#allocation5 + $0x140] sm:$0xff] }
  0xc0   : > { %v10583_v32 = vcombine.high %v507_v27, %v635_v28  ;;  %v384_v19 = vld [vmem:[#allocation5 + $0x540] sm:$0xff] }
  0xc1   : > { %10792 = vmatmul.mubr.msk.bf16.vlgmr.msra.gmra.mxu0 %vm4632_vm0, %v11281_v26  ;;  %10793 = vmatmul.mubr.msk.bf16.vlgmr.msra.gmra.mxu1 %vm4632_vm0, %v11281_v26 }
  0xc2   : > { %5715 = vmatpush1.bf16.msra.mxu0 %v10564_v35  ;;  %5756 = vmatpush1.bf16.msra.mxu1 %v10566_v36  ;;  %v251_v35 = vld [vmem:[#allocation5 + $0x118] sm:$0xff] }
  0xc3   : > { %5716 = vmatprep.subr.bf16.mxu0 %v10309_v37  ;;  %5757 = vmatprep.subr.bf16.mxu1 %v10311_v38  ;;  %v379_v36 = vld [vmem:[#allocation5 + $0x518] sm:$0xff]  ;;  %v10580_v37 = vcombine.low %v506_v24, %v634_v25  ;;  %v10582_v38 = vcombine.low %v507_v27, %v635_v28  ;;  %v10337_v24 = vcombine.high %v256_v18, %v384_v19  ;;  %v514_v27 = vld [vmem:[#allocation5 + $0x950] sm:$0xff] }
  0xc4   : > { %5734 = vmatprep.mubr.bf16.mxu0 %v11127_v0  ;;  %5775 = vmatprep.mubr.bf16.mxu1 %v11127_v0  ;;  %v10327_v40 = vcombine.high %v251_v35, %v379_v36  ;;  %v642_v28 = vld [vmem:[#allocation5 + $0xd50] sm:$0xff] }
  0xc6   : > { %5717 = vmatpush1.bf16.msra.mxu0 %v10308_v43  ;;  %5758 = vmatpush1.bf16.msra.mxu1 %v10310_v44  ;;  %v509_v43 = vld [vmem:[#allocation5 + $0x928] sm:$0xff] }
  0xc7   : > { %5796 = vmatprep.subr.bf16.mxu0 %v10569_v45  ;;  %5837 = vmatprep.subr.bf16.mxu1 %v10571_v46  ;;  %v637_v44 = vld [vmem:[#allocation5 + $0xd28] sm:$0xff]  ;;  %v10324_v45 = vcombine.low %v250_v33, %v378_v34  ;;  %v10326_v46 = vcombine.low %v251_v35, %v379_v36  ;;  %v10597_v33 = vcombine.high %v514_v27, %v642_v28  ;;  %v258_v35 = vld [vmem:[#allocation5 + $0x150] sm:$0xff] }
  0xc8   : > { %v10587_v48 = vcombine.high %v509_v43, %v637_v44  ;;  %v386_v36 = vld [vmem:[#allocation5 + $0x550] sm:$0xff] }
  0xc9   : > { %10794 = vmatmul.mubr.msk.bf16.vlgmr.msra.gmra.mxu0 %vm4632_vm0, %v11281_v26  ;;  %10795 = vmatmul.mubr.msk.bf16.vlgmr.msra.gmra.mxu1 %vm4632_vm0, %v11281_v26 }
  0xca   : > { %5797 = vmatpush1.bf16.msra.mxu0 %v10568_v51  ;;  %5838 = vmatpush1.bf16.msra.mxu1 %v10570_v52  ;;  %v253_v51 = vld [vmem:[#allocation5 + $0x128] sm:$0xff] }
  0xcb   : > { %5798 = vmatprep.subr.bf16.mxu0 %v10313_v53  ;;  %5839 = vmatprep.subr.bf16.mxu1 %v10315_v54  ;;  %v381_v52 = vld [vmem:[#allocation5 + $0x528] sm:$0xff]  ;;  %v10584_v53 = vcombine.low %v508_v41, %v636_v42  ;;  %v10586_v54 = vcombine.low %v509_v43, %v637_v44  ;;  %v10341_v41 = vcombine.high %v258_v35, %v386_v36  ;;  %v516_v43 = vld [vmem:[#allocation5 + $0x960] sm:$0xff] }
  0xcc   : > { %5816 = vmatprep.mubr.bf16.mxu0 %v11127_v0  ;;  %5857 = vmatprep.mubr.bf16.mxu1 %v11127_v0  ;;  %v10331_v56 = vcombine.high %v253_v51, %v381_v52  ;;  %v644_v44 = vld [vmem:[#allocation5 + $0xd60] sm:$0xff] }
  0xce   : > { %5799 = vmatpush1.bf16.msra.mxu0 %v10312_v59  ;;  %5840 = vmatpush1.bf16.msra.mxu1 %v10314_v60  ;;  %v511_v59 = vld [vmem:[#allocation5 + $0x938] sm:$0xff] }
  0xcf   : > { %5878 = vmatprep.subr.bf16.mxu0 %v10573_v61  ;;  %5919 = vmatprep.subr.bf16.mxu1 %v10575_v62  ;;  %v639_v60 = vld [vmem:[#allocation5 + $0xd38] sm:$0xff]  ;;  %v10328_v61 = vcombine.low %v252_v49, %v380_v50  ;;  %v10330_v62 = vcombine.low %v253_v51, %v381_v52  ;;  %v10601_v49 = vcombine.high %v516_v43, %v644_v44  ;;  %v260_v51 = vld [vmem:[#allocation5 + $0x160] sm:$0xff] }
  0xd0   : > { %v10591_v1 = vcombine.high %v511_v59, %v639_v60  ;;  %v388_v52 = vld [vmem:[#allocation5 + $0x560] sm:$0xff] }
  0xd1   : > { %10796 = vmatmul.mubr.msk.bf16.vlgmr.msra.gmra.mxu0 %vm4632_vm0, %v11281_v26  ;;  %10797 = vmatmul.mubr.msk.bf16.vlgmr.msra.gmra.mxu1 %vm4632_vm0, %v11281_v26 }
  0xd2   : > { %5879 = vmatpush1.bf16.msra.mxu0 %v10572_v4  ;;  %5920 = vmatpush1.bf16.msra.mxu1 %v10574_v5  ;;  %v255_v4 = vld [vmem:[#allocation5 + $0x138] sm:$0xff] }
  0xd3   : > { %5880 = vmatprep.subr.bf16.mxu0 %v10317_v6  ;;  %5921 = vmatprep.subr.bf16.mxu1 %v10319_v7  ;;  %v383_v5 = vld [vmem:[#allocation5 + $0x538] sm:$0xff]  ;;  %v10588_v6 = vcombine.low %v510_v57, %v638_v58  ;;  %v10590_v7 = vcombine.low %v511_v59, %v639_v60  ;;  %v10345_v57 = vcombine.high %v260_v51, %v388_v52  ;;  %v518_v59 = vld [vmem:[#allocation5 + $0x970] sm:$0xff] }
  0xd4   : > { %5898 = vmatprep.mubr.bf16.mxu0 %v11127_v0  ;;  %5939 = vmatprep.mubr.bf16.mxu1 %v11127_v0  ;;  %v10335_v9 = vcombine.high %v255_v4, %v383_v5  ;;  %v646_v60 = vld [vmem:[#allocation5 + $0xd70] sm:$0xff] }
  0xd6   : > { %5881 = vmatpush1.bf16.msra.mxu0 %v10316_v12  ;;  %5922 = vmatpush1.bf16.msra.mxu1 %v10318_v13  ;;  %v513_v12 = vld [vmem:[#allocation5 + $0x948] sm:$0xff] }
  0xd7   : > { %5960 = vmatprep.subr.bf16.mxu0 %v10577_v14  ;;  %6001 = vmatprep.subr.bf16.mxu1 %v10579_v15  ;;  %v641_v13 = vld [vmem:[#allocation5 + $0xd48] sm:$0xff]  ;;  %v10332_v14 = vcombine.low %v254_v2, %v382_v3  ;;  %v10334_v15 = vcombine.low %v255_v4, %v383_v5  ;;  %v10605_v2 = vcombine.high %v518_v59, %v646_v60  ;;  %v262_v4 = vld [vmem:[#allocation5 + $0x170] sm:$0xff] }
  0xd8   : > { %v10595_v17 = vcombine.high %v513_v12, %v641_v13  ;;  %v390_v5 = vld [vmem:[#allocation5 + $0x570] sm:$0xff] }
  0xd9   : > { %10798 = vmatmul.mubr.msk.bf16.vlgmr.msra.gmra.mxu0 %vm4632_vm0, %v11281_v26  ;;  %10799 = vmatmul.mubr.msk.bf16.vlgmr.msra.gmra.mxu1 %vm4632_vm0, %v11281_v26 }
  0xda   : > { %5961 = vmatpush1.bf16.msra.mxu0 %v10576_v20  ;;  %6002 = vmatpush1.bf16.msra.mxu1 %v10578_v21  ;;  %v257_v20 = vld [vmem:[#allocation5 + $0x148] sm:$0xff] }
  0xdb   : > { %5962 = vmatprep.subr.bf16.mxu0 %v10321_v22  ;;  %6003 = vmatprep.subr.bf16.mxu1 %v10323_v23  ;;  %v385_v21 = vld [vmem:[#allocation5 + $0x548] sm:$0xff]  ;;  %v10592_v22 = vcombine.low %v512_v10, %v640_v11  ;;  %v10594_v23 = vcombine.low %v513_v12, %v641_v13  ;;  %v10349_v10 = vcombine.high %v262_v4, %v390_v5  ;;  %v520_v12 = vld [vmem:[#allocation5 + $0x980] sm:$0xff] }
  0xdc   : > { %5980 = vmatprep.mubr.bf16.mxu0 %v11127_v0  ;;  %6021 = vmatprep.mubr.bf16.mxu1 %v11127_v0  ;;  %v10339_v25 = vcombine.high %v257_v20, %v385_v21  ;;  %v648_v13 = vld [vmem:[#allocation5 + $0xd80] sm:$0xff] }
  0xde   : > { %5963 = vmatpush1.bf16.msra.mxu0 %v10320_v29  ;;  %6004 = vmatpush1.bf16.msra.mxu1 %v10322_v30  ;;  %v515_v29 = vld [vmem:[#allocation5 + $0x958] sm:$0xff] }
  0xdf   : > { %6042 = vmatprep.subr.bf16.mxu0 %v10581_v31  ;;  %6083 = vmatprep.subr.bf16.mxu1 %v10583_v32  ;;  %v643_v30 = vld [vmem:[#allocation5 + $0xd58] sm:$0xff]  ;;  %v10336_v31 = vcombine.low %v256_v18, %v384_v19  ;;  %v10338_v32 = vcombine.low %v257_v20, %v385_v21  ;;  %v10609_v19 = vcombine.high %v520_v12, %v648_v13  ;;  %v264_v21 = vld [vmem:[#allocation5 + $0x180] sm:$0xff] }
  0xe0   : > { %v10599_v34 = vcombine.high %v515_v29, %v643_v30 }
  0xe1   : > { %10800 = vmatmul.mubr.msk.bf16.vlgmr.msra.gmra.mxu0 %vm4632_vm0, %v11281_v26  ;;  %10801 = vmatmul.mubr.msk.bf16.vlgmr.msra.gmra.mxu1 %vm4632_vm0, %v11281_v26 }
  0xe2   : > { %6043 = vmatpush1.bf16.msra.mxu0 %v10580_v37  ;;  %6084 = vmatpush1.bf16.msra.mxu1 %v10582_v38  ;;  %v259_v37 = vld [vmem:[#allocation5 + $0x158] sm:$0xff] }
  0xe3   : > { %6044 = vmatprep.subr.bf16.mxu0 %v10325_v39  ;;  %6085 = vmatprep.subr.bf16.mxu1 %v10327_v40  ;;  %v387_v38 = vld [vmem:[#allocation5 + $0x558] sm:$0xff]  ;;  %v10596_v39 = vcombine.low %v514_v27, %v642_v28  ;;  %v10598_v40 = vcombine.low %v515_v29, %v643_v30 }
  0xe4   : > { %6062 = vmatprep.mubr.bf16.mxu0 %v11127_v0  ;;  %6103 = vmatprep.mubr.bf16.mxu1 %v11127_v0  ;;  %v10343_v42 = vcombine.high %v259_v37, %v387_v38 }
  0xe6   : > { %6045 = vmatpush1.bf16.msra.mxu0 %v10324_v45  ;;  %6086 = vmatpush1.bf16.msra.mxu1 %v10326_v46  ;;  %v517_v45 = vld [vmem:[#allocation5 + $0x968] sm:$0xff] }
  0xe7   : > { %6124 = vmatprep.subr.bf16.mxu0 %v10585_v47  ;;  %6165 = vmatprep.subr.bf16.mxu1 %v10587_v48  ;;  %v645_v46 = vld [vmem:[#allocation5 + $0xd68] sm:$0xff]  ;;  %v10340_v47 = vcombine.low %v258_v35, %v386_v36  ;;  %v10342_v48 = vcombine.low %v259_v37, %v387_v38  ;;  %v11430_v38 = vld [vmem:[#allocation7] sm:$0xff] }
  0xe8   : > { %v10603_v50 = vcombine.high %v517_v45, %v645_v46 }
  0xe9   : > { %10802 = vmatmul.mubr.msk.bf16.vlgmr.msra.gmra.mxu0 %vm4632_vm0, %v11281_v26  ;;  %10803 = vmatmul.mubr.msk.bf16.vlgmr.msra.gmra.mxu1 %vm4632_vm0, %v11281_v26 }
  0xea   : > { %6125 = vmatpush1.bf16.msra.mxu0 %v10584_v53  ;;  %6166 = vmatpush1.bf16.msra.mxu1 %v10586_v54  ;;  %v261_v53 = vld [vmem:[#allocation5 + $0x168] sm:$0xff] }
  0xeb   : > { %6126 = vmatprep.subr.bf16.mxu0 %v10329_v55  ;;  %6167 = vmatprep.subr.bf16.mxu1 %v10331_v56  ;;  %v389_v54 = vld [vmem:[#allocation5 + $0x568] sm:$0xff]  ;;  %v10600_v55 = vcombine.low %v516_v43, %v644_v44  ;;  %v10602_v56 = vcombine.low %v517_v45, %v645_v46  ;;  %v266_v43 = vld [vmem:[#allocation5 + $0x190] sm:$0xff]  ;;  %v267_v46 = vld [vmem:[#allocation5 + $0x198] sm:$0xff] }
  0xec   : > { %6144 = vmatprep.mubr.bf16.mxu0 %v11127_v0  ;;  %6185 = vmatprep.mubr.bf16.mxu1 %v11127_v0  ;;  %v10347_v58 = vcombine.high %v261_v53, %v389_v54  ;;  %v394_v44 = vld [vmem:[#allocation5 + $0x590] sm:$0xff] }
  0xee   : > { %6127 = vmatpush1.bf16.msra.mxu0 %v10328_v61  ;;  %6168 = vmatpush1.bf16.msra.mxu1 %v10330_v62  ;;  %v519_v61 = vld [vmem:[#allocation5 + $0x978] sm:$0xff] }
  0xef   : > { %6206 = vmatprep.subr.bf16.mxu0 %v10589_v63  ;;  %6247 = vmatprep.subr.bf16.mxu1 %v10591_v1  ;;  %v647_v62 = vld [vmem:[#allocation5 + $0xd78] sm:$0xff]  ;;  %v10344_v63 = vcombine.low %v260_v51, %v388_v52  ;;  %v10346_v1 = vcombine.low %v261_v53, %v389_v54  ;;  %v10357_v52 = vcombine.high %v266_v43, %v394_v44 }
  0xf0   : > { %v10607_v3 = vcombine.high %v519_v61, %v647_v62 }
  0xf1   : > { %10804 = vmatmul.mubr.msk.bf16.vlgmr.msra.gmra.mxu0 %vm4632_vm0, %v11281_v26  ;;  %10805 = vmatmul.mubr.msk.bf16.vlgmr.msra.gmra.mxu1 %vm4632_vm0, %v11281_v26 }
  0xf2   : > { %6207 = vmatpush1.bf16.msra.mxu0 %v10588_v6  ;;  %6248 = vmatpush1.bf16.msra.mxu1 %v10590_v7  ;;  %v263_v6 = vld [vmem:[#allocation5 + $0x178] sm:$0xff] }
  0xf3   : > { %6208 = vmatprep.subr.bf16.mxu0 %v10333_v8  ;;  %6249 = vmatprep.subr.bf16.mxu1 %v10335_v9  ;;  %v391_v7 = vld [vmem:[#allocation5 + $0x578] sm:$0xff]  ;;  %v10604_v8 = vcombine.low %v518_v59, %v646_v60  ;;  %v10606_v9 = vcombine.low %v519_v61, %v647_v62  ;;  %v525_v59 = vld [vmem:[#allocation5 + $0x9a8] sm:$0xff] }
  0xf4   : > { %6226 = vmatprep.mubr.bf16.mxu0 %v11127_v0  ;;  %6267 = vmatprep.mubr.bf16.mxu1 %v11127_v0  ;;  %v10351_v11 = vcombine.high %v263_v6, %v391_v7  ;;  %v10350_v18 = vcombine.low %v263_v6, %v391_v7  ;;  %v653_v60 = vld [vmem:[#allocation5 + $0xda8] sm:$0xff] }
  0xf6   : > { %6209 = vmatpush1.bf16.msra.mxu0 %v10332_v14  ;;  %6250 = vmatpush1.bf16.msra.mxu1 %v10334_v15  ;;  %v521_v14 = vld [vmem:[#allocation5 + $0x988] sm:$0xff] }
  0xf7   : > { %6288 = vmatprep.subr.bf16.mxu0 %v10593_v16  ;;  %6329 = vmatprep.subr.bf16.mxu1 %v10595_v17  ;;  %v649_v15 = vld [vmem:[#allocation5 + $0xd88] sm:$0xff]  ;;  %v10348_v16 = vcombine.low %v262_v4, %v390_v5  ;;  %v792_v17 = vlaneseq }
  0xf8   : > { %v10611_v20 = vcombine.high %v521_v14, %v649_v15  ;;  %v10610_v28 = vcombine.low %v521_v14, %v649_v15 }
  0xf9   : > { %10806 = vmatmul.mubr.msk.bf16.vlgmr.msra.gmra.mxu0 %vm4632_vm0, %v11281_v26  ;;  %10807 = vmatmul.mubr.msk.bf16.vlgmr.msra.gmra.mxu1 %vm4632_vm0, %v11281_v26  ;;  %v11421_v27 = vshrl.u32 %v792_v17, 7  ;;  %v397_v17 = vld [vmem:[#allocation5 + $0x5a8] sm:$0xff] }
  0xfa   : > { %6289 = vmatpush1.bf16.msra.mxu0 %v10592_v22  ;;  %6330 = vmatpush1.bf16.msra.mxu1 %v10594_v23  ;;  %v392_v22 = vld [vmem:[#allocation5 + $0x580] sm:$0xff]  ;;  %v265_v23 = vld [vmem:[#allocation5 + $0x188] sm:$0xff] }
  0xfb   : > { %6290 = vmatprep.subr.bf16.mxu0 %v10337_v24  ;;  %6331 = vmatprep.subr.bf16.mxu1 %v10339_v25  ;;  %v393_v24 = vld [vmem:[#allocation5 + $0x588] sm:$0xff]  ;;  %v10608_v25 = vcombine.low %v520_v12, %v648_v13  ;;  %v10353_v29 = vcombine.high %v264_v21, %v392_v22  ;;  %v10352_v35 = vcombine.low %v264_v21, %v392_v22  ;;  %v11428_v36 = vsub.s32 0, %v11421_v27  ;;  %v396_v12 = vld [vmem:[#allocation5 + $0x5a0] sm:$0xff] }
  0xfc   : > { %6308 = vmatprep.mubr.bf16.mxu0 %v11127_v0  ;;  %6349 = vmatprep.mubr.bf16.mxu1 %v11127_v0  ;;  %v10355_v30 = vcombine.high %v265_v23, %v393_v24  ;;  %v10354_v37 = vcombine.low %v265_v23, %v393_v24  ;;  %v11441_v45 = vsub.s32 3, %v11421_v27  ;;  %v11462_v5 = vsub.s32 6, %v11421_v27 }
  0xfd   : > { %v11477_v15 = vsub.s32 7, %v11421_v27  ;;  %v10618_v23 = vcombine.low %v525_v59, %v653_v60 }
  0xfe   : > { %6291 = vmatpush1.bf16.msra.mxu0 %v10336_v31  ;;  %6332 = vmatpush1.bf16.msra.mxu1 %v10338_v32  ;;  %v522_v31 = vld [vmem:[#allocation5 + $0x990] sm:$0xff]  ;;  %v819_v22 = vrot.slane %v11430_v38, %v11462_v5 }
  0xff   : > { %6370 = vmatprep.subr.bf16.mxu0 %v10597_v33  ;;  %6411 = vmatprep.subr.bf16.mxu1 %v10599_v34  ;;  %v650_v32 = vld [vmem:[#allocation5 + $0xd90] sm:$0xff]  ;;  %v523_v33 = vld [vmem:[#allocation5 + $0x998] sm:$0xff] }
 0x100   : > { %v651_v34 = vld [vmem:[#allocation5 + $0xd98] sm:$0xff] }
 0x101   : > { %10808 = vmatmul.mubr.msk.bf16.vlgmr.msra.gmra.mxu0 %vm4632_vm0, %v11281_v26  ;;  %10809 = vmatmul.mubr.msk.bf16.vlgmr.msra.gmra.mxu1 %vm4632_vm0, %v11281_v26  ;;  %v10614_v51 = vcombine.low %v523_v33, %v651_v34 }
 0x102   : > { %6371 = vmatpush1.bf16.msra.mxu0 %v10596_v39  ;;  %6412 = vmatpush1.bf16.msra.mxu1 %v10598_v40  ;;  %v11433_v39 = vsub.s32 2, %v11421_v27  ;;  %v10613_v40 = vcombine.high %v522_v31, %v650_v32 }
 0x103   : > { %6372 = vmatprep.subr.bf16.mxu0 %v10341_v41  ;;  %6413 = vmatprep.subr.bf16.mxu1 %v10343_v42  ;;  %v10615_v41 = vcombine.high %v523_v33, %v651_v34  ;;  %v11437_v42 = vsub.s32 1, %v11421_v27  ;;  %v527_v33 = vld [vmem:[#allocation5 + $0x9b8] sm:$0xff] }
 0x104   : > { %6390 = vmatprep.mubr.bf16.mxu0 %v11127_v0  ;;  %6431 = vmatprep.mubr.bf16.mxu1 %v11127_v0  ;;  %v655_v34 = vld [vmem:[#allocation5 + $0xdb8] sm:$0xff] }
 0x105   : > { %v799_v53 = vrot.slane %v11430_v38, %v11437_v42 }
 0x106   : > { %6373 = vmatpush1.bf16.msra.mxu0 %v10340_v47  ;;  %6414 = vmatpush1.bf16.msra.mxu1 %v10342_v48  ;;  %v395_v47 = vld [vmem:[#allocation5 + $0x598] sm:$0xff]  ;;  %v795_v48 = vrot.slane %v11430_v38, %v11428_v36 }
 0x107   : > { %6452 = vmatprep.subr.bf16.mxu0 %v10601_v49  ;;  %6493 = vmatprep.subr.bf16.mxu1 %v10603_v50  ;;  %v10612_v49 = vcombine.low %v522_v31, %v650_v32  ;;  %v803_v50 = vrot.slane %v11430_v38, %v11433_v39  ;;  %v10359_v54 = vcombine.high %v267_v46, %v395_v47 }
 0x108   : > { %v10358_v4 = vcombine.low %v267_v46, %v395_v47  ;;  %v823_v32 = vrot.slane %v11430_v38, %v11477_v15  ;;  %v11494_v46 = vld [vmem:[#allocation7 + $0x8] sm:$0xff] }
 0x109   : > { %10810 = vmatmul.mubr.msk.bf16.vlgmr.msra.gmra.mxu0 %vm4632_vm0, %v11281_v26  ;;  %10811 = vmatmul.mubr.msk.bf16.vlgmr.msra.gmra.mxu1 %vm4632_vm0, %v11281_v26 }
 0x10a   : > { %6453 = vmatpush1.bf16.msra.mxu0 %v10600_v55  ;;  %6494 = vmatpush1.bf16.msra.mxu1 %v10602_v56  ;;  %v11450_v55 = vld [vmem:[#allocation5 + $0x9a0] sm:$0xff] }
 0x10b   : > { %6454 = vmatprep.subr.bf16.mxu0 %v10345_v57  ;;  %6495 = vmatprep.subr.bf16.mxu1 %v10347_v58  ;;  %v652_v56 = vld [vmem:[#allocation5 + $0xda0] sm:$0xff]  ;;  %v807_v58 = vrot.slane %v11430_v38, %v11441_v45 }
 0x10c   : > { %6472 = vmatprep.mubr.bf16.mxu0 %v11127_v0  ;;  %6513 = vmatprep.mubr.bf16.mxu1 %v11127_v0  ;;  %v10617_v6 = vcombine.high %v11450_v55, %v652_v56 }
 0x10e   : > { %6455 = vmatpush1.bf16.msra.mxu0 %v10344_v63  ;;  %6496 = vmatpush1.bf16.msra.mxu1 %v10346_v1  ;;  %v10356_v63 = vcombine.low %v266_v43, %v394_v44  ;;  %v11459_v1 = vsub.s32 4, %v11421_v27 }
 0x10f   : > { %6534 = vmatprep.subr.bf16.mxu0 %v10605_v2  ;;  %6575 = vmatprep.subr.bf16.mxu1 %v10607_v3 }
 0x111   : > { %10812 = vmatmul.mubr.msk.bf16.vlgmr.msra.gmra.mxu0 %vm4632_vm0, %v11281_v26  ;;  %10813 = vmatmul.mubr.msk.bf16.vlgmr.msra.gmra.mxu1 %vm4632_vm0, %v11281_v26 }
 0x112   : > { %6535 = vmatpush1.bf16.msra.mxu0 %v10604_v8  ;;  %6576 = vmatpush1.bf16.msra.mxu1 %v10606_v9  ;;  %v10619_v9 = vcombine.high %v525_v59, %v653_v60  ;;  %v835_v60 = vrot.slane %v11494_v46, %v11433_v39 }
 0x113   : > { %6536 = vmatprep.subr.bf16.mxu0 %v10349_v10  ;;  %6577 = vmatprep.subr.bf16.mxu1 %v10351_v11  ;;  %v11472_v10 = vsub.s32 5, %v11421_v27  ;;  %v268_v11 = vld [vmem:[#allocation5 + $0x1a0] sm:$0xff] }
 0x114   : > { %6554 = vmatprep.mubr.bf16.mxu0 %v11127_v0  ;;  %6595 = vmatprep.mubr.bf16.mxu1 %v11127_v0  ;;  %v10361_v24 = vcombine.high %v268_v11, %v396_v12 }
 0x115   : > { %v815_v27 = vrot.slane %v11430_v38, %v11472_v10 }
 0x116   : > { %6537 = vmatpush1.bf16.msra.mxu0 %v10348_v16  ;;  %6578 = vmatpush1.bf16.msra.mxu1 %v10350_v18  ;;  %v269_v16 = vld [vmem:[#allocation5 + $0x1a8] sm:$0xff] }
 0x117   : > { %6616 = vmatprep.subr.bf16.mxu0 %v10609_v19  ;;  %6657 = vmatprep.subr.bf16.mxu1 %v10611_v20  ;;  %v811_v19 = vrot.slane %v11430_v38, %v11459_v1  ;;  %v10616_v20 = vcombine.low %v11450_v55, %v652_v56  ;;  %v10362_v44 = vcombine.low %v269_v16, %v397_v17  ;;  %v399_v55 = vld [vmem:[#allocation5 + $0x5b8] sm:$0xff] }
 0x119   : > { %10814 = vmatmul.mubr.msk.bf16.vlgmr.msra.gmra.mxu0 %vm4632_vm0, %v11281_v26  ;;  %10815 = vmatmul.mubr.msk.bf16.vlgmr.msra.gmra.mxu1 %vm4632_vm0, %v11281_v26 }
 0x11a   : > { %6617 = vmatpush1.bf16.msra.mxu0 %v10608_v25  ;;  %6658 = vmatpush1.bf16.msra.mxu1 %v10610_v28  ;;  %v10363_v28 = vcombine.high %v269_v16, %v397_v17 }
 0x11b   : > { %6618 = vmatprep.subr.bf16.mxu0 %v10353_v29  ;;  %6659 = vmatprep.subr.bf16.mxu1 %v10355_v30  ;;  %v526_v29 = vld [vmem:[#allocation5 + $0x9b0] sm:$0xff] }
 0x11c   : > { %6636 = vmatprep.mubr.bf16.mxu0 %v11127_v0  ;;  %6677 = vmatprep.mubr.bf16.mxu1 %v11127_v0  ;;  %v654_v30 = vld [vmem:[#allocation5 + $0xdb0] sm:$0xff] }
 0x11d   : > { %v10621_v47 = vcombine.high %v526_v29, %v654_v30 }
 0x11e   : > { %6619 = vmatpush1.bf16.msra.mxu0 %v10352_v35  ;;  %6660 = vmatpush1.bf16.msra.mxu1 %v10354_v37 }
 0x11f   : > { %6698 = vmatprep.subr.bf16.mxu0 %v10613_v40  ;;  %6739 = vmatprep.subr.bf16.mxu1 %v10615_v41  ;;  %v10360_v40 = vcombine.low %v268_v11, %v396_v12  ;;  %v657_v11 = vld [vmem:[#allocation5 + $0xdc8] sm:$0xff] }
 0x121   : > { %v4670_v57 = vpop.f32.mrf.mxu0  ;;  %10816 = vmatmul.mubr.msk.bf16.vlgmr.msra.gmra.mxu0 %vm4632_vm0, %v11281_v26  ;;  %v4711_v62 = vpop.f32.mrf.mxu1  ;;  %10817 = vmatmul.mubr.msk.bf16.vlgmr.msra.gmra.mxu1 %vm4632_vm0, %v11281_v26 }
 0x122   : > { %v4671_v61 = vadd.f32 %v4670_v57, %v795_v48  ;;  %6699 = vmatpush1.bf16.msra.mxu0 %v10612_v49  ;;  %v4712_v2 = vadd.f32 %v4711_v62, %v803_v50  ;;  %6740 = vmatpush1.bf16.msra.mxu1 %v10614_v51  ;;  %v10623_v49 = vcombine.high %v527_v33, %v655_v34  ;;  %v270_v50 = vld [vmem:[#allocation5 + $0x1b0] sm:$0xff] }
 0x123   : > { %v4672_v3 = vpop.f32.mrf.mxu0  ;;  %6700 = vmatprep.subr.bf16.mxu0 %v10357_v52  ;;  %v4713_v8 = vpop.f32.mrf.mxu1  ;;  %6741 = vmatprep.subr.bf16.mxu1 %v10359_v54  ;;  %v398_v51 = vld [vmem:[#allocation5 + $0x5b0] sm:$0xff]  ;;  %v271_v54 = vld [vmem:[#allocation5 + $0x1b8] sm:$0xff]  ;;  %v827_v57 = vrot.slane %v11494_v46, %v11428_v36 }
 0x124   : > { %9884 = vst [vmem:[%s11467_s20] sm:$0xff] %v4671_v61  ;;  %v4673_v7 = vadd.f32 %v4672_v3, %v799_v53  ;;  %6718 = vmatprep.mubr.bf16.mxu0 %v11127_v0  ;;  %9886 = vst [vmem:[%s11467_s20 + $0x10] sm:$0xff] %v4712_v2  ;;  %v4714_v13 = vadd.f32 %v4713_v8, %v807_v58  ;;  %6759 = vmatprep.mubr.bf16.mxu1 %v11127_v0 }
 0x125   : > { %v4674_v14 = vpop.f32.mrf.mxu0  ;;  %v4715_v18 = vpop.f32.mrf.mxu1  ;;  %v10620_v58 = vcombine.low %v526_v29, %v654_v30  ;;  %v10622_v61 = vcombine.low %v527_v33, %v655_v34  ;;  %v10365_v62 = vcombine.high %v270_v50, %v398_v51  ;;  %v831_v2 = vrot.slane %v11494_v46, %v11437_v42  ;;  %v401_v29 = vld [vmem:[#allocation5 + $0x5c8] sm:$0xff] }
 0x126   : > { %9885 = vst [vmem:[%s11467_s20 + $0x8] sm:$0xff] %v4673_v7  ;;  %6701 = vmatpush1.bf16.msra.mxu0 %v10356_v63  ;;  %9887 = vst [vmem:[%s11467_s20 + $0x18] sm:$0xff] %v4714_v13  ;;  %6742 = vmatpush1.bf16.msra.mxu1 %v10358_v4  ;;  %v10367_v3 = vcombine.high %v271_v54, %v399_v55  ;;  %v528_v4 = vld [vmem:[#allocation5 + $0x9c0] sm:$0xff]  ;;  %v839_v8 = vrot.slane %v11494_v46, %v11441_v45 }
 0x127   : > { %v4675_v21 = vpop.f32.mrf.mxu0  ;;  %6780 = vmatprep.subr.bf16.mxu0 %v10617_v6  ;;  %v4716_v25 = vpop.f32.mrf.mxu1  ;;  %6821 = vmatprep.subr.bf16.mxu1 %v10619_v9  ;;  %v656_v6 = vld [vmem:[#allocation5 + $0xdc0] sm:$0xff]  ;;  %v529_v9 = vld [vmem:[#allocation5 + $0x9c8] sm:$0xff]  ;;  %v10364_v14 = vcombine.low %v270_v50, %v398_v51  ;;  %v10366_v18 = vcombine.low %v271_v54, %v399_v55  ;;  %v851_v34 = vrot.slane %v11494_v46, %v11462_v5  ;;  %v659_v50 = vld [vmem:[#allocation5 + $0xdd8] sm:$0xff] }
 0x129   : > { %v4752_v31 = vpop.f32.mrf.mxu0  ;;  %10818 = vmatmul.mubr.msk.bf16.vlgmr.msra.gmra.mxu0 %vm4632_vm0, %v11281_v26  ;;  %v4793_v37 = vpop.f32.mrf.mxu1  ;;  %10819 = vmatmul.mubr.msk.bf16.vlgmr.msra.gmra.mxu1 %vm4632_vm0, %v11281_v26 }
 0x12a   : > { %v4753_v35 = vadd.f32 %v4752_v31, %v811_v19  ;;  %6781 = vmatpush1.bf16.msra.mxu0 %v10616_v20  ;;  %v4794_v41 = vadd.f32 %v4793_v37, %v819_v22  ;;  %6822 = vmatpush1.bf16.msra.mxu1 %v10618_v23  ;;  %v10625_v19 = vcombine.high %v528_v4, %v656_v6  ;;  %v272_v23 = vld [vmem:[#allocation5 + $0x1c0] sm:$0xff] }
 0x12b   : > { %v4754_v43 = vpop.f32.mrf.mxu0  ;;  %6782 = vmatprep.subr.bf16.mxu0 %v10361_v24  ;;  %v4795_v48 = vpop.f32.mrf.mxu1  ;;  %6823 = vmatprep.subr.bf16.mxu1 %v10363_v28  ;;  %v10627_v22 = vcombine.high %v529_v9, %v657_v11  ;;  %v400_v24 = vld [vmem:[#allocation5 + $0x5c0] sm:$0xff]  ;;  %v273_v28 = vld [vmem:[#allocation5 + $0x1c8] sm:$0xff]  ;;  %v843_v31 = vrot.slane %v11494_v46, %v11459_v1 }
 0x12c   : > { %9888 = vst [vmem:[%s11467_s20 + $0x20] sm:$0xff] %v4753_v35  ;;  %v4755_v38 = vadd.f32 %v4754_v43, %v815_v27  ;;  %6800 = vmatprep.mubr.bf16.mxu0 %v11127_v0  ;;  %9890 = vst [vmem:[%s11467_s20 + $0x30] sm:$0xff] %v4794_v41  ;;  %v4796_v52 = vadd.f32 %v4795_v48, %v823_v32  ;;  %6841 = vmatprep.mubr.bf16.mxu1 %v11127_v0 }
 0x12d   : > { %v4756_v53 = vpop.f32.mrf.mxu0  ;;  %v4797_v56 = vpop.f32.mrf.mxu1  ;;  %v10624_v32 = vcombine.low %v528_v4, %v656_v6  ;;  %v10626_v35 = vcombine.low %v529_v9, %v657_v11  ;;  %v10369_v37 = vcombine.high %v272_v23, %v400_v24  ;;  %v847_v41 = vrot.slane %v11494_v46, %v11472_v10  ;;  %v403_v4 = vld [vmem:[#allocation5 + $0x5d8] sm:$0xff] }
 0x12e   : > { %9889 = vst [vmem:[%s11467_s20 + $0x28] sm:$0xff] %v4755_v38  ;;  %6783 = vmatpush1.bf16.msra.mxu0 %v10360_v40  ;;  %9891 = vst [vmem:[%s11467_s20 + $0x38] sm:$0xff] %v4796_v52  ;;  %6824 = vmatpush1.bf16.msra.mxu1 %v10362_v44  ;;  %v10371_v43 = vcombine.high %v273_v28, %v401_v29  ;;  %v530_v44 = vld [vmem:[#allocation5 + $0x9d0] sm:$0xff]  ;;  %v855_v48 = vrot.slane %v11494_v46, %v11477_v15 }
 0x12f   : > { %v4757_v59 = vpop.f32.mrf.mxu0  ;;  %6862 = vmatprep.subr.bf16.mxu0 %v10621_v47  ;;  %v4798_v63 = vpop.f32.mrf.mxu1  ;;  %6903 = vmatprep.subr.bf16.mxu1 %v10623_v49  ;;  %v658_v47 = vld [vmem:[#allocation5 + $0xdd0] sm:$0xff]  ;;  %v531_v49 = vld [vmem:[#allocation5 + $0x9d8] sm:$0xff]  ;;  %v10368_v53 = vcombine.low %v272_v23, %v400_v24  ;;  %v10370_v56 = vcombine.low %v273_v28, %v401_v29  ;;  %v661_v23 = vld [vmem:[#allocation5 + $0xde8] sm:$0xff] }
 0x131   : > { %v4834_v7 = vpop.f32.mrf.mxu0  ;;  %10820 = vmatmul.mubr.msk.bf16.vlgmr.msra.gmra.mxu0 %vm4632_vm0, %v11281_v26  ;;  %v4875_v13 = vpop.f32.mrf.mxu1  ;;  %10821 = vmatmul.mubr.msk.bf16.vlgmr.msra.gmra.mxu1 %vm4632_vm0, %v11281_v26 }
 0x132   : > { %v4835_v12 = vadd.f32 %v4834_v7, %v827_v57  ;;  %6863 = vmatpush1.bf16.msra.mxu0 %v10620_v58  ;;  %v4876_v16 = vadd.f32 %v4875_v13, %v835_v60  ;;  %6904 = vmatpush1.bf16.msra.mxu1 %v10622_v61  ;;  %v11532_v57 = vld [vmem:[#allocation7 + $0x10] sm:$0xff]  ;;  %v10629_v58 = vcombine.high %v530_v44, %v658_v47 }
 0x133   : > { %v4836_v17 = vpop.f32.mrf.mxu0  ;;  %6864 = vmatprep.subr.bf16.mxu0 %v10365_v62  ;;  %v4877_v21 = vpop.f32.mrf.mxu1  ;;  %6905 = vmatprep.subr.bf16.mxu1 %v10367_v3  ;;  %v10631_v60 = vcombine.high %v531_v49, %v659_v50  ;;  %v274_v61 = vld [vmem:[#allocation5 + $0x1d0] sm:$0xff]  ;;  %v275_v3 = vld [vmem:[#allocation5 + $0x1d8] sm:$0xff]  ;;  %v859_v7 = vrot.slane %v11532_v57, %v11428_v36  ;;  %v867_v11 = vrot.slane %v11532_v57, %v11433_v39 }
 0x134   : > { %9892 = vst [vmem:[%s11467_s20 + $0x40] sm:$0xff] %v4835_v12  ;;  %v4837_v20 = vadd.f32 %v4836_v17, %v831_v2  ;;  %6882 = vmatprep.mubr.bf16.mxu0 %v11127_v0  ;;  %9894 = vst [vmem:[%s11467_s20 + $0x50] sm:$0xff] %v4876_v16  ;;  %v4878_v25 = vadd.f32 %v4877_v21, %v839_v8  ;;  %6923 = vmatprep.mubr.bf16.mxu1 %v11127_v0  ;;  %v402_v62 = vld [vmem:[#allocation5 + $0x5d0] sm:$0xff] }
 0x135   : > { %v4838_v27 = vpop.f32.mrf.mxu0  ;;  %v4879_v30 = vpop.f32.mrf.mxu1  ;;  %v10628_v8 = vcombine.low %v530_v44, %v658_v47  ;;  %v10630_v12 = vcombine.low %v531_v49, %v659_v50  ;;  %v10373_v13 = vcombine.high %v274_v61, %v402_v62  ;;  %v863_v16 = vrot.slane %v11532_v57, %v11437_v42  ;;  %v405_v44 = vld [vmem:[#allocation5 + $0x5e8] sm:$0xff] }
 0x136   : > { %9893 = vst [vmem:[%s11467_s20 + $0x48] sm:$0xff] %v4837_v20  ;;  %6865 = vmatpush1.bf16.msra.mxu0 %v10364_v14  ;;  %9895 = vst [vmem:[%s11467_s20 + $0x58] sm:$0xff] %v4878_v25  ;;  %6906 = vmatpush1.bf16.msra.mxu1 %v10366_v18  ;;  %v10375_v17 = vcombine.high %v275_v3, %v403_v4  ;;  %v532_v18 = vld [vmem:[#allocation5 + $0x9e0] sm:$0xff]  ;;  %v871_v21 = vrot.slane %v11532_v57, %v11441_v45 }
 0x137   : > { %v4839_v33 = vpop.f32.mrf.mxu0  ;;  %6944 = vmatprep.subr.bf16.mxu0 %v10625_v19  ;;  %v4880_v40 = vpop.f32.mrf.mxu1  ;;  %6985 = vmatprep.subr.bf16.mxu1 %v10627_v22  ;;  %v660_v19 = vld [vmem:[#allocation5 + $0xde0] sm:$0xff]  ;;  %v533_v22 = vld [vmem:[#allocation5 + $0x9e8] sm:$0xff]  ;;  %v10372_v27 = vcombine.low %v274_v61, %v402_v62  ;;  %v10374_v30 = vcombine.low %v275_v3, %v403_v4  ;;  %v883_v50 = vrot.slane %v11532_v57, %v11462_v5  ;;  %v663_v61 = vld [vmem:[#allocation5 + $0xdf8] sm:$0xff] }
 0x139   : > { %v4916_v38 = vpop.f32.mrf.mxu0  ;;  %10822 = vmatmul.mubr.msk.bf16.vlgmr.msra.gmra.mxu0 %vm4632_vm0, %v11281_v26  ;;  %v4957_v52 = vpop.f32.mrf.mxu1  ;;  %10823 = vmatmul.mubr.msk.bf16.vlgmr.msra.gmra.mxu1 %vm4632_vm0, %v11281_v26 }
 0x13a   : > { %v4917_v51 = vadd.f32 %v4916_v38, %v843_v31  ;;  %6945 = vmatpush1.bf16.msra.mxu0 %v10624_v32  ;;  %v4958_v54 = vadd.f32 %v4957_v52, %v851_v34  ;;  %6986 = vmatpush1.bf16.msra.mxu1 %v10626_v35  ;;  %v10633_v31 = vcombine.high %v532_v18, %v660_v19  ;;  %v276_v35 = vld [vmem:[#allocation5 + $0x1e0] sm:$0xff] }
 0x13b   : > { %v4918_v55 = vpop.f32.mrf.mxu0  ;;  %6946 = vmatprep.subr.bf16.mxu0 %v10369_v37  ;;  %v4959_v59 = vpop.f32.mrf.mxu1  ;;  %6987 = vmatprep.subr.bf16.mxu1 %v10371_v43  ;;  %v10635_v34 = vcombine.high %v533_v22, %v661_v23  ;;  %v404_v37 = vld [vmem:[#allocation5 + $0x5e0] sm:$0xff]  ;;  %v277_v43 = vld [vmem:[#allocation5 + $0x1e8] sm:$0xff]  ;;  %v875_v38 = vrot.slane %v11532_v57, %v11459_v1 }
 0x13c   : > { %9896 = vst [vmem:[%s11467_s20 + $0x60] sm:$0xff] %v4917_v51  ;;  %v4919_v46 = vadd.f32 %v4918_v55, %v847_v41  ;;  %6964 = vmatprep.mubr.bf16.mxu0 %v11127_v0  ;;  %9898 = vst [vmem:[%s11467_s20 + $0x70] sm:$0xff] %v4958_v54  ;;  %v4960_v63 = vadd.f32 %v4959_v59, %v855_v48  ;;  %7005 = vmatprep.mubr.bf16.mxu1 %v11127_v0 }
 0x13d   : > { %v4920_v2 = vpop.f32.mrf.mxu0  ;;  %v4961_v6 = vpop.f32.mrf.mxu1  ;;  %v10632_v48 = vcombine.low %v532_v18, %v660_v19  ;;  %v10634_v51 = vcombine.low %v533_v22, %v661_v23  ;;  %v10377_v52 = vcombine.high %v276_v35, %v404_v37  ;;  %v879_v54 = vrot.slane %v11532_v57, %v11472_v10  ;;  %v407_v18 = vld [vmem:[#allocation5 + $0x5f8] sm:$0xff] }
 0x13e   : > { %9897 = vst [vmem:[%s11467_s20 + $0x68] sm:$0xff] %v4919_v46  ;;  %6947 = vmatpush1.bf16.msra.mxu0 %v10368_v53  ;;  %9899 = vst [vmem:[%s11467_s20 + $0x78] sm:$0xff] %v4960_v63  ;;  %6988 = vmatpush1.bf16.msra.mxu1 %v10370_v56  ;;  %v10379_v55 = vcombine.high %v277_v43, %v405_v44  ;;  %v534_v56 = vld [vmem:[#allocation5 + $0x9f0] sm:$0xff]  ;;  %v887_v59 = vrot.slane %v11532_v57, %v11477_v15 }
 0x13f   : > { %v4921_v9 = vpop.f32.mrf.mxu0  ;;  %7026 = vmatprep.subr.bf16.mxu0 %v10629_v58  ;;  %v4962_v14 = vpop.f32.mrf.mxu1  ;;  %7067 = vmatprep.subr.bf16.mxu1 %v10631_v60  ;;  %v662_v58 = vld [vmem:[#allocation5 + $0xdf0] sm:$0xff]  ;;  %v535_v60 = vld [vmem:[#allocation5 + $0x9f8] sm:$0xff]  ;;  %v10376_v2 = vcombine.low %v276_v35, %v404_v37  ;;  %v10378_v6 = vcombine.low %v277_v43, %v405_v44  ;;  %v665_v35 = vld [vmem:[#allocation5 + $0xe08] sm:$0xff] }
 0x141   : > { %v4998_v20 = vpop.f32.mrf.mxu0  ;;  %10824 = vmatmul.mubr.msk.bf16.vlgmr.msra.gmra.mxu0 %vm4632_vm0, %v11281_v26  ;;  %v5039_v25 = vpop.f32.mrf.mxu1  ;;  %10825 = vmatmul.mubr.msk.bf16.vlgmr.msra.gmra.mxu1 %vm4632_vm0, %v11281_v26 }
 0x142   : > { %v4999_v24 = vadd.f32 %v4998_v20, %v859_v7  ;;  %7027 = vmatpush1.bf16.msra.mxu0 %v10628_v8  ;;  %v5040_v28 = vadd.f32 %v5039_v25, %v867_v11  ;;  %7068 = vmatpush1.bf16.msra.mxu1 %v10630_v12  ;;  %v11570_v7 = vld [vmem:[#allocation7 + $0x18] sm:$0xff]  ;;  %v10637_v8 = vcombine.high %v534_v56, %v662_v58  ;;  %v278_v12 = vld [vmem:[#allocation5 + $0x1f0] sm:$0xff] }
 0x143   : > { %v5000_v29 = vpop.f32.mrf.mxu0  ;;  %7028 = vmatprep.subr.bf16.mxu0 %v10373_v13  ;;  %v5041_v33 = vpop.f32.mrf.mxu1  ;;  %7069 = vmatprep.subr.bf16.mxu1 %v10375_v17  ;;  %v10639_v11 = vcombine.high %v535_v60, %v663_v61  ;;  %v406_v13 = vld [vmem:[#allocation5 + $0x5f0] sm:$0xff]  ;;  %v279_v17 = vld [vmem:[#allocation5 + $0x1f8] sm:$0xff]  ;;  %v891_v20 = vrot.slane %v11570_v7, %v11428_v36  ;;  %v899_v23 = vrot.slane %v11570_v7, %v11433_v39 }
 0x144   : > { %9900 = vst [vmem:[%s11467_s20 + $0x80] sm:$0xff] %v4999_v24  ;;  %v5001_v32 = vadd.f32 %v5000_v29, %v863_v16  ;;  %7046 = vmatprep.mubr.bf16.mxu0 %v11127_v0  ;;  %9902 = vst [vmem:[%s11467_s20 + $0x90] sm:$0xff] %v5040_v28  ;;  %v5042_v40 = vadd.f32 %v5041_v33, %v871_v21  ;;  %7087 = vmatprep.mubr.bf16.mxu1 %v11127_v0 }
 0x145   : > { %v5002_v41 = vpop.f32.mrf.mxu0  ;;  %v5043_v47 = vpop.f32.mrf.mxu1  ;;  %v10636_v21 = vcombine.low %v534_v56, %v662_v58  ;;  %v10638_v24 = vcombine.low %v535_v60, %v663_v61  ;;  %v10381_v25 = vcombine.high %v278_v12, %v406_v13  ;;  %v895_v28 = vrot.slane %v11570_v7, %v11437_v42  ;;  %v409_v56 = vld [vmem:[#allocation5 + $0x608] sm:$0xff] }
 0x146   : > { %9901 = vst [vmem:[%s11467_s20 + $0x88] sm:$0xff] %v5001_v32  ;;  %7029 = vmatpush1.bf16.msra.mxu0 %v10372_v27  ;;  %9903 = vst [vmem:[%s11467_s20 + $0x98] sm:$0xff] %v5042_v40  ;;  %7070 = vmatpush1.bf16.msra.mxu1 %v10374_v30  ;;  %v10383_v29 = vcombine.high %v279_v17, %v407_v18  ;;  %v536_v30 = vld [vmem:[#allocation5 + $0xa00] sm:$0xff]  ;;  %v903_v33 = vrot.slane %v11570_v7, %v11441_v45 }
 0x147   : > { %v5003_v49 = vpop.f32.mrf.mxu0  ;;  %7108 = vmatprep.subr.bf16.mxu0 %v10633_v31  ;;  %v5044_v53 = vpop.f32.mrf.mxu1  ;;  %7149 = vmatprep.subr.bf16.mxu1 %v10635_v34  ;;  %v664_v31 = vld [vmem:[#allocation5 + $0xe00] sm:$0xff]  ;;  %v537_v34 = vld [vmem:[#allocation5 + $0xa08] sm:$0xff]  ;;  %v10380_v41 = vcombine.low %v278_v12, %v406_v13  ;;  %v10382_v47 = vcombine.low %v279_v17, %v407_v18  ;;  %v915_v61 = vrot.slane %v11570_v7, %v11462_v5  ;;  %v667_v12 = vld [vmem:[#allocation5 + $0xe18] sm:$0xff] }
 0x149   : > { %v5080_v46 = vpop.f32.mrf.mxu0  ;;  %10826 = vmatmul.mubr.msk.bf16.vlgmr.msra.gmra.mxu0 %vm4632_vm0, %v11281_v26  ;;  %v5121_v63 = vpop.f32.mrf.mxu1  ;;  %10827 = vmatmul.mubr.msk.bf16.vlgmr.msra.gmra.mxu1 %vm4632_vm0, %v11281_v26 }
 0x14a   : > { %v5081_v62 = vadd.f32 %v5080_v46, %v875_v38  ;;  %7109 = vmatpush1.bf16.msra.mxu0 %v10632_v48  ;;  %v5122_v3 = vadd.f32 %v5121_v63, %v883_v50  ;;  %7150 = vmatpush1.bf16.msra.mxu1 %v10634_v51  ;;  %v10641_v38 = vcombine.high %v536_v30, %v664_v31  ;;  %v280_v51 = vld [vmem:[#allocation5 + $0x200] sm:$0xff] }
 0x14b   : > { %v5082_v4 = vpop.f32.mrf.mxu0  ;;  %7110 = vmatprep.subr.bf16.mxu0 %v10377_v52  ;;  %v5123_v9 = vpop.f32.mrf.mxu1  ;;  %7151 = vmatprep.subr.bf16.mxu1 %v10379_v55  ;;  %v10643_v50 = vcombine.high %v537_v34, %v665_v35  ;;  %v408_v52 = vld [vmem:[#allocation5 + $0x600] sm:$0xff]  ;;  %v281_v55 = vld [vmem:[#allocation5 + $0x208] sm:$0xff]  ;;  %v907_v46 = vrot.slane %v11570_v7, %v11459_v1 }
 0x14c   : > { %9904 = vst [vmem:[%s11467_s20 + $0xa0] sm:$0xff] %v5081_v62  ;;  %v5083_v57 = vadd.f32 %v5082_v4, %v879_v54  ;;  %7128 = vmatprep.mubr.bf16.mxu0 %v11127_v0  ;;  %9906 = vst [vmem:[%s11467_s20 + $0xb0] sm:$0xff] %v5122_v3  ;;  %v5124_v14 = vadd.f32 %v5123_v9, %v887_v59  ;;  %7169 = vmatprep.mubr.bf16.mxu1 %v11127_v0 }
 0x14d   : > { %v5084_v16 = vpop.f32.mrf.mxu0  ;;  %v5125_v19 = vpop.f32.mrf.mxu1  ;;  %v10640_v59 = vcombine.low %v536_v30, %v664_v31  ;;  %v10642_v62 = vcombine.low %v537_v34, %v665_v35  ;;  %v10385_v63 = vcombine.high %v280_v51, %v408_v52  ;;  %v911_v3 = vrot.slane %v11570_v7, %v11472_v10  ;;  %v411_v30 = vld [vmem:[#allocation5 + $0x618] sm:$0xff] }
 0x14e   : > { %9905 = vst [vmem:[%s11467_s20 + $0xa8] sm:$0xff] %v5083_v57  ;;  %7111 = vmatpush1.bf16.msra.mxu0 %v10376_v2  ;;  %9907 = vst [vmem:[%s11467_s20 + $0xb8] sm:$0xff] %v5124_v14  ;;  %7152 = vmatpush1.bf16.msra.mxu1 %v10378_v6  ;;  %v10387_v4 = vcombine.high %v281_v55, %v409_v56  ;;  %v538_v6 = vld [vmem:[#allocation5 + $0xa10] sm:$0xff]  ;;  %v919_v9 = vrot.slane %v11570_v7, %v11477_v15 }
 0x14f   : > { %v5085_v22 = vpop.f32.mrf.mxu0  ;;  %7190 = vmatprep.subr.bf16.mxu0 %v10637_v8  ;;  %v5126_v27 = vpop.f32.mrf.mxu1  ;;  %7231 = vmatprep.subr.bf16.mxu1 %v10639_v11  ;;  %v666_v8 = vld [vmem:[#allocation5 + $0xe10] sm:$0xff]  ;;  %v539_v11 = vld [vmem:[#allocation5 + $0xa18] sm:$0xff]  ;;  %v10384_v16 = vcombine.low %v280_v51, %v408_v52  ;;  %v10386_v19 = vcombine.low %v281_v55, %v409_v56  ;;  %v669_v51 = vld [vmem:[#allocation5 + $0xe28] sm:$0xff] }
 0x151   : > { %v5162_v32 = vpop.f32.mrf.mxu0  ;;  %10828 = vmatmul.mubr.msk.bf16.vlgmr.msra.gmra.mxu0 %vm4632_vm0, %v11281_v26  ;;  %v5203_v40 = vpop.f32.mrf.mxu1  ;;  %10829 = vmatmul.mubr.msk.bf16.vlgmr.msra.gmra.mxu1 %vm4632_vm0, %v11281_v26 }
 0x152   : > { %v5163_v37 = vadd.f32 %v5162_v32, %v891_v20  ;;  %7191 = vmatpush1.bf16.msra.mxu0 %v10636_v21  ;;  %v5204_v43 = vadd.f32 %v5203_v40, %v899_v23  ;;  %7232 = vmatpush1.bf16.msra.mxu1 %v10638_v24  ;;  %v11608_v20 = vld [vmem:[#allocation7 + $0x20] sm:$0xff]  ;;  %v10645_v21 = vcombine.high %v538_v6, %v666_v8  ;;  %v282_v24 = vld [vmem:[#allocation5 + $0x210] sm:$0xff] }
 0x153   : > { %v5164_v44 = vpop.f32.mrf.mxu0  ;;  %7192 = vmatprep.subr.bf16.mxu0 %v10381_v25  ;;  %v5205_v49 = vpop.f32.mrf.mxu1  ;;  %7233 = vmatprep.subr.bf16.mxu1 %v10383_v29  ;;  %v10647_v23 = vcombine.high %v539_v11, %v667_v12  ;;  %v410_v25 = vld [vmem:[#allocation5 + $0x610] sm:$0xff]  ;;  %v283_v29 = vld [vmem:[#allocation5 + $0x218] sm:$0xff]  ;;  %v923_v32 = vrot.slane %v11608_v20, %v11428_v36  ;;  %v931_v35 = vrot.slane %v11608_v20, %v11433_v39 }
 0x154   : > { %9908 = vst [vmem:[%s11467_s20 + $0xc0] sm:$0xff] %v5163_v37  ;;  %v5165_v48 = vadd.f32 %v5164_v44, %v895_v28  ;;  %7210 = vmatprep.mubr.bf16.mxu0 %v11127_v0  ;;  %9910 = vst [vmem:[%s11467_s20 + $0xd0] sm:$0xff] %v5204_v43  ;;  %v5206_v53 = vadd.f32 %v5205_v49, %v903_v33  ;;  %7251 = vmatprep.mubr.bf16.mxu1 %v11127_v0 }
 0x155   : > { %v5166_v54 = vpop.f32.mrf.mxu0  ;;  %v5207_v58 = vpop.f32.mrf.mxu1  ;;  %v10644_v33 = vcombine.low %v538_v6, %v666_v8  ;;  %v10646_v37 = vcombine.low %v539_v11, %v667_v12  ;;  %v10389_v40 = vcombine.high %v282_v24, %v410_v25  ;;  %v927_v43 = vrot.slane %v11608_v20, %v11437_v42  ;;  %v413_v6 = vld [vmem:[#allocation5 + $0x628] sm:$0xff] }
 0x156   : > { %9909 = vst [vmem:[%s11467_s20 + $0xc8] sm:$0xff] %v5165_v48  ;;  %7193 = vmatpush1.bf16.msra.mxu0 %v10380_v41  ;;  %9911 = vst [vmem:[%s11467_s20 + $0xd8] sm:$0xff] %v5206_v53  ;;  %7234 = vmatpush1.bf16.msra.mxu1 %v10382_v47  ;;  %v10391_v44 = vcombine.high %v283_v29, %v411_v30  ;;  %v540_v47 = vld [vmem:[#allocation5 + $0xa20] sm:$0xff]  ;;  %v935_v49 = vrot.slane %v11608_v20, %v11441_v45 }
 0x157   : > { %v5167_v60 = vpop.f32.mrf.mxu0  ;;  %7272 = vmatprep.subr.bf16.mxu0 %v10641_v38  ;;  %v5208_v2 = vpop.f32.mrf.mxu1  ;;  %7313 = vmatprep.subr.bf16.mxu1 %v10643_v50  ;;  %v668_v38 = vld [vmem:[#allocation5 + $0xe20] sm:$0xff]  ;;  %v541_v50 = vld [vmem:[#allocation5 + $0xa28] sm:$0xff]  ;;  %v10388_v54 = vcombine.low %v282_v24, %v410_v25  ;;  %v10390_v58 = vcombine.low %v283_v29, %v411_v30  ;;  %v947_v12 = vrot.slane %v11608_v20, %v11462_v5  ;;  %v671_v24 = vld [vmem:[#allocation5 + $0xe38] sm:$0xff] }
 0x159   : > { %v5244_v57 = vpop.f32.mrf.mxu0  ;;  %10830 = vmatmul.mubr.msk.bf16.vlgmr.msra.gmra.mxu0 %vm4632_vm0, %v11281_v26  ;;  %v5285_v14 = vpop.f32.mrf.mxu1  ;;  %10831 = vmatmul.mubr.msk.bf16.vlgmr.msra.gmra.mxu1 %vm4632_vm0, %v11281_v26 }
 0x15a   : > { %v5245_v13 = vadd.f32 %v5244_v57, %v907_v46  ;;  %7273 = vmatpush1.bf16.msra.mxu0 %v10640_v59  ;;  %v5286_v17 = vadd.f32 %v5285_v14, %v915_v61  ;;  %7314 = vmatpush1.bf16.msra.mxu1 %v10642_v62  ;;  %v10649_v46 = vcombine.high %v540_v47, %v668_v38  ;;  %v284_v62 = vld [vmem:[#allocation5 + $0x220] sm:$0xff] }
 0x15b   : > { %v5246_v18 = vpop.f32.mrf.mxu0  ;;  %7274 = vmatprep.subr.bf16.mxu0 %v10385_v63  ;;  %v5287_v22 = vpop.f32.mrf.mxu1  ;;  %7315 = vmatprep.subr.bf16.mxu1 %v10387_v4  ;;  %v10651_v61 = vcombine.high %v541_v50, %v669_v51  ;;  %v412_v63 = vld [vmem:[#allocation5 + $0x620] sm:$0xff]  ;;  %v285_v4 = vld [vmem:[#allocation5 + $0x228] sm:$0xff]  ;;  %v939_v57 = vrot.slane %v11608_v20, %v11459_v1 }
 0x15c   : > { %9912 = vst [vmem:[%s11467_s20 + $0xe0] sm:$0xff] %v5245_v13  ;;  %v5247_v7 = vadd.f32 %v5246_v18, %v911_v3  ;;  %7292 = vmatprep.mubr.bf16.mxu0 %v11127_v0  ;;  %9914 = vst [vmem:[%s11467_s20 + $0xf0] sm:$0xff] %v5286_v17  ;;  %v5288_v27 = vadd.f32 %v5287_v22, %v919_v9  ;;  %7333 = vmatprep.mubr.bf16.mxu1 %v11127_v0 }
 0x15d   : > { %v5248_v28 = vpop.f32.mrf.mxu0  ;;  %v5289_v31 = vpop.f32.mrf.mxu1  ;;  %v10648_v9 = vcombine.low %v540_v47, %v668_v38  ;;  %v10650_v13 = vcombine.low %v541_v50, %v669_v51  ;;  %v10393_v14 = vcombine.high %v284_v62, %v412_v63  ;;  %v943_v17 = vrot.slane %v11608_v20, %v11472_v10  ;;  %v415_v47 = vld [vmem:[#allocation5 + $0x638] sm:$0xff] }
 0x15e   : > { %9913 = vst [vmem:[%s11467_s20 + $0xe8] sm:$0xff] %v5247_v7  ;;  %7275 = vmatpush1.bf16.msra.mxu0 %v10384_v16  ;;  %9915 = vst [vmem:[%s11467_s20 + $0xf8] sm:$0xff] %v5288_v27  ;;  %7316 = vmatpush1.bf16.msra.mxu1 %v10386_v19  ;;  %v10395_v18 = vcombine.high %v285_v4, %v413_v6  ;;  %v542_v19 = vld [vmem:[#allocation5 + $0xa30] sm:$0xff]  ;;  %v951_v22 = vrot.slane %v11608_v20, %v11477_v15 }
 0x15f   : > { %v5249_v34 = vpop.f32.mrf.mxu0  ;;  %7354 = vmatprep.subr.bf16.mxu0 %v10645_v21  ;;  %v5290_v41 = vpop.f32.mrf.mxu1  ;;  %7395 = vmatprep.subr.bf16.mxu1 %v10647_v23  ;;  %v670_v21 = vld [vmem:[#allocation5 + $0xe30] sm:$0xff]  ;;  %v543_v23 = vld [vmem:[#allocation5 + $0xa38] sm:$0xff]  ;;  %v10392_v28 = vcombine.low %v284_v62, %v412_v63  ;;  %v10394_v31 = vcombine.low %v285_v4, %v413_v6  ;;  %v673_v62 = vld [vmem:[#allocation5 + $0xe48] sm:$0xff] }
 0x161   : > { %v5326_v48 = vpop.f32.mrf.mxu0  ;;  %10832 = vmatmul.mubr.msk.bf16.vlgmr.msra.gmra.mxu0 %vm4632_vm0, %v11281_v26  ;;  %v5367_v53 = vpop.f32.mrf.mxu1  ;;  %10833 = vmatmul.mubr.msk.bf16.vlgmr.msra.gmra.mxu1 %vm4632_vm0, %v11281_v26 }
 0x162   : > { %v5327_v52 = vadd.f32 %v5326_v48, %v923_v32  ;;  %7355 = vmatpush1.bf16.msra.mxu0 %v10644_v33  ;;  %v5368_v55 = vadd.f32 %v5367_v53, %v931_v35  ;;  %7396 = vmatpush1.bf16.msra.mxu1 %v10646_v37  ;;  %v11646_v32 = vld [vmem:[#allocation7 + $0x28] sm:$0xff]  ;;  %v10653_v33 = vcombine.high %v542_v19, %v670_v21  ;;  %v286_v37 = vld [vmem:[#allocation5 + $0x230] sm:$0xff] }
 0x163   : > { %v5328_v56 = vpop.f32.mrf.mxu0  ;;  %7356 = vmatprep.subr.bf16.mxu0 %v10389_v40  ;;  %v5369_v60 = vpop.f32.mrf.mxu1  ;;  %7397 = vmatprep.subr.bf16.mxu1 %v10391_v44  ;;  %v10655_v35 = vcombine.high %v543_v23, %v671_v24  ;;  %v414_v40 = vld [vmem:[#allocation5 + $0x630] sm:$0xff]  ;;  %v287_v44 = vld [vmem:[#allocation5 + $0x238] sm:$0xff]  ;;  %v955_v48 = vrot.slane %v11646_v32, %v11428_v36  ;;  %v963_v51 = vrot.slane %v11646_v32, %v11433_v39 }
 0x164   : > { %9916 = vst [vmem:[%s11467_s20 + $0x100] sm:$0xff] %v5327_v52  ;;  %v5329_v59 = vadd.f32 %v5328_v56, %v927_v43  ;;  %7374 = vmatprep.mubr.bf16.mxu0 %v11127_v0  ;;  %9918 = vst [vmem:[%s11467_s20 + $0x110] sm:$0xff] %v5368_v55  ;;  %v5370_v2 = vadd.f32 %v5369_v60, %v935_v49  ;;  %7415 = vmatprep.mubr.bf16.mxu1 %v11127_v0 }
 0x165   : > { %v5330_v3 = vpop.f32.mrf.mxu0  ;;  %v5371_v8 = vpop.f32.mrf.mxu1  ;;  %v10652_v49 = vcombine.low %v542_v19, %v670_v21  ;;  %v10654_v52 = vcombine.low %v543_v23, %v671_v24  ;;  %v10397_v53 = vcombine.high %v286_v37, %v414_v40  ;;  %v959_v55 = vrot.slane %v11646_v32, %v11437_v42  ;;  %v417_v19 = vld [vmem:[#allocation5 + $0x648] sm:$0xff] }
 0x166   : > { %9917 = vst [vmem:[%s11467_s20 + $0x108] sm:$0xff] %v5329_v59  ;;  %7357 = vmatpush1.bf16.msra.mxu0 %v10388_v54  ;;  %9919 = vst [vmem:[%s11467_s20 + $0x118] sm:$0xff] %v5370_v2  ;;  %7398 = vmatpush1.bf16.msra.mxu1 %v10390_v58  ;;  %v10399_v56 = vcombine.high %v287_v44, %v415_v47  ;;  %v544_v58 = vld [vmem:[#allocation5 + $0xa40] sm:$0xff]  ;;  %v967_v60 = vrot.slane %v11646_v32, %v11441_v45 }
 0x167   : > { %v5331_v11 = vpop.f32.mrf.mxu0  ;;  %7436 = vmatprep.subr.bf16.mxu0 %v10649_v46  ;;  %v5372_v16 = vpop.f32.mrf.mxu1  ;;  %7477 = vmatprep.subr.bf16.mxu1 %v10651_v61  ;;  %v672_v46 = vld [vmem:[#allocation5 + $0xe40] sm:$0xff]  ;;  %v545_v61 = vld [vmem:[#allocation5 + $0xa48] sm:$0xff]  ;;  %v10396_v3 = vcombine.low %v286_v37, %v414_v40  ;;  %v10398_v8 = vcombine.low %v287_v44, %v415_v47  ;;  %v979_v24 = vrot.slane %v11646_v32, %v11462_v5  ;;  %v675_v37 = vld [vmem:[#allocation5 + $0xe58] sm:$0xff] }
 0x169   : > { %v5408_v7 = vpop.f32.mrf.mxu0  ;;  %10834 = vmatmul.mubr.msk.bf16.vlgmr.msra.gmra.mxu0 %vm4632_vm0, %v11281_v26  ;;  %v5449_v27 = vpop.f32.mrf.mxu1  ;;  %10835 = vmatmul.mubr.msk.bf16.vlgmr.msra.gmra.mxu1 %vm4632_vm0, %v11281_v26 }
 0x16a   : > { %v5409_v25 = vadd.f32 %v5408_v7, %v939_v57  ;;  %7437 = vmatpush1.bf16.msra.mxu0 %v10648_v9  ;;  %v5450_v29 = vadd.f32 %v5449_v27, %v947_v12  ;;  %7478 = vmatpush1.bf16.msra.mxu1 %v10650_v13  ;;  %v10657_v57 = vcombine.high %v544_v58, %v672_v46  ;;  %v288_v13 = vld [vmem:[#allocation5 + $0x240] sm:$0xff] }
 0x16b   : > { %v5410_v30 = vpop.f32.mrf.mxu0  ;;  %7438 = vmatprep.subr.bf16.mxu0 %v10393_v14  ;;  %v5451_v34 = vpop.f32.mrf.mxu1  ;;  %7479 = vmatprep.subr.bf16.mxu1 %v10395_v18  ;;  %v10659_v12 = vcombine.high %v545_v61, %v673_v62  ;;  %v416_v14 = vld [vmem:[#allocation5 + $0x640] sm:$0xff]  ;;  %v289_v18 = vld [vmem:[#allocation5 + $0x248] sm:$0xff]  ;;  %v971_v7 = vrot.slane %v11646_v32, %v11459_v1 }
 0x16c   : > { %9920 = vst [vmem:[%s11467_s20 + $0x120] sm:$0xff] %v5409_v25  ;;  %v5411_v20 = vadd.f32 %v5410_v30, %v943_v17  ;;  %7456 = vmatprep.mubr.bf16.mxu0 %v11127_v0  ;;  %9922 = vst [vmem:[%s11467_s20 + $0x130] sm:$0xff] %v5450_v29  ;;  %v5452_v41 = vadd.f32 %v5451_v34, %v951_v22  ;;  %7497 = vmatprep.mubr.bf16.mxu1 %v11127_v0 }
 0x16d   : > { %v5412_v43 = vpop.f32.mrf.mxu0  ;;  %v5453_v38 = vpop.f32.mrf.mxu1  ;;  %v10656_v22 = vcombine.low %v544_v58, %v672_v46  ;;  %v10658_v25 = vcombine.low %v545_v61, %v673_v62  ;;  %v10401_v27 = vcombine.high %v288_v13, %v416_v14  ;;  %v975_v29 = vrot.slane %v11646_v32, %v11472_v10  ;;  %v419_v58 = vld [vmem:[#allocation5 + $0x658] sm:$0xff] }
 0x16e   : > { %9921 = vst [vmem:[%s11467_s20 + $0x128] sm:$0xff] %v5411_v20  ;;  %7439 = vmatpush1.bf16.msra.mxu0 %v10392_v28  ;;  %9923 = vst [vmem:[%s11467_s20 + $0x138] sm:$0xff] %v5452_v41  ;;  %7480 = vmatpush1.bf16.msra.mxu1 %v10394_v31  ;;  %v10403_v30 = vcombine.high %v289_v18, %v417_v19  ;;  %v546_v31 = vld [vmem:[#allocation5 + $0xa50] sm:$0xff]  ;;  %v983_v34 = vrot.slane %v11646_v32, %v11477_v15 }
 0x16f   : > { %v5413_v50 = vpop.f32.mrf.mxu0  ;;  %7518 = vmatprep.subr.bf16.mxu0 %v10653_v33  ;;  %v5454_v54 = vpop.f32.mrf.mxu1  ;;  %7559 = vmatprep.subr.bf16.mxu1 %v10655_v35  ;;  %v674_v33 = vld [vmem:[#allocation5 + $0xe50] sm:$0xff]  ;;  %v547_v35 = vld [vmem:[#allocation5 + $0xa58] sm:$0xff]  ;;  %v10400_v43 = vcombine.low %v288_v13, %v416_v14  ;;  %v10402_v38 = vcombine.low %v289_v18, %v417_v19  ;;  %v677_v13 = vld [vmem:[#allocation5 + $0xe68] sm:$0xff] }
 0x171   : > { %v5490_v59 = vpop.f32.mrf.mxu0  ;;  %10836 = vmatmul.mubr.msk.bf16.vlgmr.msra.gmra.mxu0 %vm4632_vm0, %v11281_v26  ;;  %v5531_v2 = vpop.f32.mrf.mxu1  ;;  %10837 = vmatmul.mubr.msk.bf16.vlgmr.msra.gmra.mxu1 %vm4632_vm0, %v11281_v26 }
 0x172   : > { %v5491_v63 = vadd.f32 %v5490_v59, %v955_v48  ;;  %7519 = vmatpush1.bf16.msra.mxu0 %v10652_v49  ;;  %v5532_v4 = vadd.f32 %v5531_v2, %v963_v51  ;;  %7560 = vmatpush1.bf16.msra.mxu1 %v10654_v52  ;;  %v11684_v48 = vld [vmem:[#allocation7 + $0x30] sm:$0xff]  ;;  %v10661_v49 = vcombine.high %v546_v31, %v674_v33 }
 0x173   : > { %v5492_v6 = vpop.f32.mrf.mxu0  ;;  %7520 = vmatprep.subr.bf16.mxu0 %v10397_v53  ;;  %v5533_v11 = vpop.f32.mrf.mxu1  ;;  %7561 = vmatprep.subr.bf16.mxu1 %v10399_v56  ;;  %v10663_v51 = vcombine.high %v547_v35, %v675_v37  ;;  %v290_v52 = vld [vmem:[#allocation5 + $0x250] sm:$0xff]  ;;  %v291_v56 = vld [vmem:[#allocation5 + $0x258] sm:$0xff]  ;;  %v987_v59 = vrot.slane %v11684_v48, %v11428_v36  ;;  %v995_v62 = vrot.slane %v11684_v48, %v11433_v39 }
 0x174   : > { %9924 = vst [vmem:[%s11467_s20 + $0x140] sm:$0xff] %v5491_v63  ;;  %v5493_v9 = vadd.f32 %v5492_v6, %v959_v55  ;;  %7538 = vmatprep.mubr.bf16.mxu0 %v11127_v0  ;;  %9926 = vst [vmem:[%s11467_s20 + $0x150] sm:$0xff] %v5532_v4  ;;  %v5534_v16 = vadd.f32 %v5533_v11, %v967_v60  ;;  %7579 = vmatprep.mubr.bf16.mxu1 %v11127_v0  ;;  %v418_v53 = vld [vmem:[#allocation5 + $0x650] sm:$0xff] }
 0x175   : > { %v5494_v17 = vpop.f32.mrf.mxu0  ;;  %v5535_v21 = vpop.f32.mrf.mxu1  ;;  %v10660_v60 = vcombine.low %v546_v31, %v674_v33  ;;  %v10662_v63 = vcombine.low %v547_v35, %v675_v37  ;;  %v10405_v2 = vcombine.high %v290_v52, %v418_v53  ;;  %v991_v4 = vrot.slane %v11684_v48, %v11437_v42  ;;  %v421_v31 = vld [vmem:[#allocation5 + $0x668] sm:$0xff] }
 0x176   : > { %9925 = vst [vmem:[%s11467_s20 + $0x148] sm:$0xff] %v5493_v9  ;;  %7521 = vmatpush1.bf16.msra.mxu0 %v10396_v3  ;;  %9927 = vst [vmem:[%s11467_s20 + $0x158] sm:$0xff] %v5534_v16  ;;  %7562 = vmatpush1.bf16.msra.mxu1 %v10398_v8  ;;  %v10407_v6 = vcombine.high %v291_v56, %v419_v58  ;;  %v548_v8 = vld [vmem:[#allocation5 + $0xa60] sm:$0xff]  ;;  %v999_v11 = vrot.slane %v11684_v48, %v11441_v45 }
 0x177   : > { %v5495_v23 = vpop.f32.mrf.mxu0  ;;  %7600 = vmatprep.subr.bf16.mxu0 %v10657_v57  ;;  %v5536_v28 = vpop.f32.mrf.mxu1  ;;  %7641 = vmatprep.subr.bf16.mxu1 %v10659_v12  ;;  %v676_v57 = vld [vmem:[#allocation5 + $0xe60] sm:$0xff]  ;;  %v549_v12 = vld [vmem:[#allocation5 + $0xa68] sm:$0xff]  ;;  %v10404_v17 = vcombine.low %v290_v52, %v418_v53  ;;  %v10406_v21 = vcombine.low %v291_v56, %v419_v58  ;;  %v1011_v37 = vrot.slane %v11684_v48, %v11462_v5  ;;  %v679_v52 = vld [vmem:[#allocation5 + $0xe78] sm:$0xff] }
 0x179   : > { %v5572_v20 = vpop.f32.mrf.mxu0  ;;  %10838 = vmatmul.mubr.msk.bf16.vlgmr.msra.gmra.mxu0 %vm4632_vm0, %v11281_v26  ;;  %v5613_v41 = vpop.f32.mrf.mxu1  ;;  %10839 = vmatmul.mubr.msk.bf16.vlgmr.msra.gmra.mxu1 %vm4632_vm0, %v11281_v26 }
 0x17a   : > { %v5573_v40 = vadd.f32 %v5572_v20, %v971_v7  ;;  %7601 = vmatpush1.bf16.msra.mxu0 %v10656_v22  ;;  %v5614_v44 = vadd.f32 %v5613_v41, %v979_v24  ;;  %7642 = vmatpush1.bf16.msra.mxu1 %v10658_v25  ;;  %v10665_v7 = vcombine.high %v548_v8, %v676_v57  ;;  %v292_v25 = vld [vmem:[#allocation5 + $0x260] sm:$0xff] }
 0x17b   : > { %v5574_v47 = vpop.f32.mrf.mxu0  ;;  %7602 = vmatprep.subr.bf16.mxu0 %v10401_v27  ;;  %v5615_v50 = vpop.f32.mrf.mxu1  ;;  %7643 = vmatprep.subr.bf16.mxu1 %v10403_v30  ;;  %v10667_v24 = vcombine.high %v549_v12, %v677_v13  ;;  %v420_v27 = vld [vmem:[#allocation5 + $0x660] sm:$0xff]  ;;  %v293_v30 = vld [vmem:[#allocation5 + $0x268] sm:$0xff]  ;;  %v1003_v20 = vrot.slane %v11684_v48, %v11459_v1 }
 0x17c   : > { %9928 = vst [vmem:[%s11467_s20 + $0x160] sm:$0xff] %v5573_v40  ;;  %v5575_v32 = vadd.f32 %v5574_v47, %v975_v29  ;;  %7620 = vmatprep.mubr.bf16.mxu0 %v11127_v0  ;;  %9930 = vst [vmem:[%s11467_s20 + $0x170] sm:$0xff] %v5614_v44  ;;  %v5616_v54 = vadd.f32 %v5615_v50, %v983_v34  ;;  %7661 = vmatprep.mubr.bf16.mxu1 %v11127_v0 }
 0x17d   : > { %v5576_v55 = vpop.f32.mrf.mxu0  ;;  %v5617_v46 = vpop.f32.mrf.mxu1  ;;  %v10664_v34 = vcombine.low %v548_v8, %v676_v57  ;;  %v10666_v40 = vcombine.low %v549_v12, %v677_v13  ;;  %v10409_v41 = vcombine.high %v292_v25, %v420_v27  ;;  %v1007_v44 = vrot.slane %v11684_v48, %v11472_v10  ;;  %v423_v8 = vld [vmem:[#allocation5 + $0x678] sm:$0xff] }
 0x17e   : > { %9929 = vst [vmem:[%s11467_s20 + $0x168] sm:$0xff] %v5575_v32  ;;  %7603 = vmatpush1.bf16.msra.mxu0 %v10400_v43  ;;  %9931 = vst [vmem:[%s11467_s20 + $0x178] sm:$0xff] %v5616_v54  ;;  %7644 = vmatpush1.bf16.msra.mxu1 %v10402_v38  ;;  %v10411_v47 = vcombine.high %v293_v30, %v421_v31  ;;  %v550_v38 = vld [vmem:[#allocation5 + $0xa70] sm:$0xff]  ;;  %v1015_v50 = vrot.slane %v11684_v48, %v11477_v15 }
 0x17f   : > { %v5577_v61 = vpop.f32.mrf.mxu0  ;;  %7682 = vmatprep.subr.bf16.mxu0 %v10661_v49  ;;  %v5618_v3 = vpop.f32.mrf.mxu1  ;;  %7723 = vmatprep.subr.bf16.mxu1 %v10663_v51  ;;  %v678_v49 = vld [vmem:[#allocation5 + $0xe70] sm:$0xff]  ;;  %v551_v51 = vld [vmem:[#allocation5 + $0xa78] sm:$0xff]  ;;  %v10408_v55 = vcombine.low %v292_v25, %v420_v27  ;;  %v10410_v46 = vcombine.low %v293_v30, %v421_v31  ;;  %v681_v25 = vld [vmem:[#allocation5 + $0xe88] sm:$0xff] }
 0x181   : > { %v5654_v9 = vpop.f32.mrf.mxu0  ;;  %10840 = vmatmul.mubr.msk.bf16.vlgmr.msra.gmra.mxu0 %vm4632_vm0, %v11281_v26  ;;  %v5695_v16 = vpop.f32.mrf.mxu1  ;;  %10841 = vmatmul.mubr.msk.bf16.vlgmr.msra.gmra.mxu1 %vm4632_vm0, %v11281_v26 }
 0x182   : > { %v5655_v14 = vadd.f32 %v5654_v9, %v987_v59  ;;  %7683 = vmatpush1.bf16.msra.mxu0 %v10660_v60  ;;  %v5696_v18 = vadd.f32 %v5695_v16, %v995_v62  ;;  %7724 = vmatpush1.bf16.msra.mxu1 %v10662_v63  ;;  %v11722_v59 = vld [vmem:[#allocation7 + $0x38] sm:$0xff]  ;;  %v10669_v60 = vcombine.high %v550_v38, %v678_v49  ;;  %v294_v63 = vld [vmem:[#allocation5 + $0x270] sm:$0xff] }
 0x183   : > { %v5656_v19 = vpop.f32.mrf.mxu0  ;;  %7684 = vmatprep.subr.bf16.mxu0 %v10405_v2  ;;  %v5697_v23 = vpop.f32.mrf.mxu1  ;;  %7725 = vmatprep.subr.bf16.mxu1 %v10407_v6  ;;  %v10671_v62 = vcombine.high %v551_v51, %v679_v52  ;;  %v422_v2 = vld [vmem:[#allocation5 + $0x670] sm:$0xff]  ;;  %v295_v6 = vld [vmem:[#allocation5 + $0x278] sm:$0xff]  ;;  %v1019_v9 = vrot.slane %v11722_v59, %v11428_v36  ;;  %v1027_v13 = vrot.slane %v11722_v59, %v11433_v39 }
 0x184   : > { %9932 = vst [vmem:[%s11467_s20 + $0x180] sm:$0xff] %v5655_v14  ;;  %v5657_v22 = vadd.f32 %v5656_v19, %v991_v4  ;;  %7702 = vmatprep.mubr.bf16.mxu0 %v11127_v0  ;;  %9934 = vst [vmem:[%s11467_s20 + $0x190] sm:$0xff] %v5696_v18  ;;  %v5698_v28 = vadd.f32 %v5697_v23, %v999_v11  ;;  %7743 = vmatprep.mubr.bf16.mxu1 %v11127_v0 }
 0x185   : > { %v5658_v29 = vpop.f32.mrf.mxu0  ;;  %v5699_v33 = vpop.f32.mrf.mxu1  ;;  %v10668_v11 = vcombine.low %v550_v38, %v678_v49  ;;  %v10670_v14 = vcombine.low %v551_v51, %v679_v52  ;;  %v10413_v16 = vcombine.high %v294_v63, %v422_v2  ;;  %v1023_v18 = vrot.slane %v11722_v59, %v11437_v42  ;;  %v425_v38 = vld [vmem:[#allocation5 + $0x688] sm:$0xff] }
 0x186   : > { %9933 = vst [vmem:[%s11467_s20 + $0x188] sm:$0xff] %v5657_v22  ;;  %7685 = vmatpush1.bf16.msra.mxu0 %v10404_v17  ;;  %9935 = vst [vmem:[%s11467_s20 + $0x198] sm:$0xff] %v5698_v28  ;;  %7726 = vmatpush1.bf16.msra.mxu1 %v10406_v21  ;;  %v10415_v19 = vcombine.high %v295_v6, %v423_v8  ;;  %v552_v21 = vld [vmem:[#allocation5 + $0xa80] sm:$0xff]  ;;  %v1031_v23 = vrot.slane %v11722_v59, %v11441_v45 }
 0x187   : > { %v5659_v35 = vpop.f32.mrf.mxu0  ;;  %7764 = vmatprep.subr.bf16.mxu0 %v10665_v7  ;;  %v5700_v43 = vpop.f32.mrf.mxu1  ;;  %7805 = vmatprep.subr.bf16.mxu1 %v10667_v24  ;;  %v680_v7 = vld [vmem:[#allocation5 + $0xe80] sm:$0xff]  ;;  %v553_v24 = vld [vmem:[#allocation5 + $0xa88] sm:$0xff]  ;;  %v10412_v29 = vcombine.low %v294_v63, %v422_v2  ;;  %v10414_v33 = vcombine.low %v295_v6, %v423_v8  ;;  %v1043_v52 = vrot.slane %v11722_v59, %v11462_v5  ;;  %v683_v63 = vld [vmem:[#allocation5 + $0xe98] sm:$0xff] }
 0x189   : > { %v5736_v32 = vpop.f32.mrf.mxu0  ;;  %10842 = vmatmul.mubr.msk.bf16.vlgmr.msra.gmra.mxu0 %vm4632_vm0, %v11281_v26  ;;  %v5777_v54 = vpop.f32.mrf.mxu1  ;;  %10843 = vmatmul.mubr.msk.bf16.vlgmr.msra.gmra.mxu1 %vm4632_vm0, %v11281_v26 }
 0x18a   : > { %v5737_v53 = vadd.f32 %v5736_v32, %v1003_v20  ;;  %7765 = vmatpush1.bf16.msra.mxu0 %v10664_v34  ;;  %v5778_v56 = vadd.f32 %v5777_v54, %v1011_v37  ;;  %7806 = vmatpush1.bf16.msra.mxu1 %v10666_v40  ;;  %v10673_v20 = vcombine.high %v552_v21, %v680_v7  ;;  %v296_v40 = vld [vmem:[#allocation5 + $0x280] sm:$0xff] }
 0x18b   : > { %v5738_v58 = vpop.f32.mrf.mxu0  ;;  %7766 = vmatprep.subr.bf16.mxu0 %v10409_v41  ;;  %v5779_v61 = vpop.f32.mrf.mxu1  ;;  %7807 = vmatprep.subr.bf16.mxu1 %v10411_v47  ;;  %v10675_v37 = vcombine.high %v553_v24, %v681_v25  ;;  %v424_v41 = vld [vmem:[#allocation5 + $0x680] sm:$0xff]  ;;  %v297_v47 = vld [vmem:[#allocation5 + $0x288] sm:$0xff]  ;;  %v1035_v32 = vrot.slane %v11722_v59, %v11459_v1 }
 0x18c   : > { %9936 = vst [vmem:[%s11467_s20 + $0x1a0] sm:$0xff] %v5737_v53  ;;  %v5739_v48 = vadd.f32 %v5738_v58, %v1007_v44  ;;  %7784 = vmatprep.mubr.bf16.mxu0 %v11127_v0  ;;  %9938 = vst [vmem:[%s11467_s20 + $0x1b0] sm:$0xff] %v5778_v56  ;;  %v5780_v3 = vadd.f32 %v5779_v61, %v1015_v50  ;;  %7825 = vmatprep.mubr.bf16.mxu1 %v11127_v0 }
 0x18d   : > { %v5740_v4 = vpop.f32.mrf.mxu0  ;;  %v5781_v57 = vpop.f32.mrf.mxu1  ;;  %v10672_v50 = vcombine.low %v552_v21, %v680_v7  ;;  %v10674_v53 = vcombine.low %v553_v24, %v681_v25  ;;  %v10417_v54 = vcombine.high %v296_v40, %v424_v41  ;;  %v1039_v56 = vrot.slane %v11722_v59, %v11472_v10  ;;  %v427_v21 = vld [vmem:[#allocation5 + $0x698] sm:$0xff] }
 0x18e   : > { %9937 = vst [vmem:[%s11467_s20 + $0x1a8] sm:$0xff] %v5739_v48  ;;  %7767 = vmatpush1.bf16.msra.mxu0 %v10408_v55  ;;  %9939 = vst [vmem:[%s11467_s20 + $0x1b8] sm:$0xff] %v5780_v3  ;;  %7808 = vmatpush1.bf16.msra.mxu1 %v10410_v46  ;;  %v10419_v58 = vcombine.high %v297_v47, %v425_v38  ;;  %v554_v46 = vld [vmem:[#allocation5 + $0xa90] sm:$0xff]  ;;  %v1047_v61 = vrot.slane %v11722_v59, %v11477_v15 }
 0x18f   : > { %v5741_v12 = vpop.f32.mrf.mxu0  ;;  %7846 = vmatprep.subr.bf16.mxu0 %v10669_v60  ;;  %v5782_v17 = vpop.f32.mrf.mxu1  ;;  %7887 = vmatprep.subr.bf16.mxu1 %v10671_v62  ;;  %v682_v60 = vld [vmem:[#allocation5 + $0xe90] sm:$0xff]  ;;  %v555_v62 = vld [vmem:[#allocation5 + $0xa98] sm:$0xff]  ;;  %v10416_v4 = vcombine.low %v296_v40, %v424_v41  ;;  %v10418_v57 = vcombine.low %v297_v47, %v425_v38  ;;  %v685_v40 = vld [vmem:[#allocation5 + $0xea8] sm:$0xff] }
 0x191   : > { %v5818_v22 = vpop.f32.mrf.mxu0  ;;  %10844 = vmatmul.mubr.msk.bf16.vlgmr.msra.gmra.mxu0 %vm4632_vm0, %v11281_v26  ;;  %v5859_v28 = vpop.f32.mrf.mxu1  ;;  %10845 = vmatmul.mubr.msk.bf16.vlgmr.msra.gmra.mxu1 %vm4632_vm0, %v11281_v26 }
 0x192   : > { %v5819_v27 = vadd.f32 %v5818_v22, %v1019_v9  ;;  %7847 = vmatpush1.bf16.msra.mxu0 %v10668_v11  ;;  %v5860_v30 = vadd.f32 %v5859_v28, %v1027_v13  ;;  %7888 = vmatpush1.bf16.msra.mxu1 %v10670_v14  ;;  %v11760_v9 = vld [vmem:[#allocation7 + $0x40] sm:$0xff]  ;;  %v10677_v11 = vcombine.high %v554_v46, %v682_v60  ;;  %v298_v14 = vld [vmem:[#allocation5 + $0x290] sm:$0xff] }
 0x193   : > { %v5820_v31 = vpop.f32.mrf.mxu0  ;;  %7848 = vmatprep.subr.bf16.mxu0 %v10413_v16  ;;  %v5861_v35 = vpop.f32.mrf.mxu1  ;;  %7889 = vmatprep.subr.bf16.mxu1 %v10415_v19  ;;  %v10679_v13 = vcombine.high %v555_v62, %v683_v63  ;;  %v426_v16 = vld [vmem:[#allocation5 + $0x690] sm:$0xff]  ;;  %v299_v19 = vld [vmem:[#allocation5 + $0x298] sm:$0xff]  ;;  %v1051_v22 = vrot.slane %v11760_v9, %v11428_v36  ;;  %v1059_v25 = vrot.slane %v11760_v9, %v11433_v39 }
 0x194   : > { %9940 = vst [vmem:[%s11467_s20 + $0x1c0] sm:$0xff] %v5819_v27  ;;  %v5821_v34 = vadd.f32 %v5820_v31, %v1023_v18  ;;  %7866 = vmatprep.mubr.bf16.mxu0 %v11127_v0  ;;  %9942 = vst [vmem:[%s11467_s20 + $0x1d0] sm:$0xff] %v5860_v30  ;;  %v5862_v43 = vadd.f32 %v5861_v35, %v1031_v23  ;;  %7907 = vmatprep.mubr.bf16.mxu1 %v11127_v0 }
 0x195   : > { %v5822_v44 = vpop.f32.mrf.mxu0  ;;  %v5863_v49 = vpop.f32.mrf.mxu1  ;;  %v10676_v23 = vcombine.low %v554_v46, %v682_v60  ;;  %v10678_v27 = vcombine.low %v555_v62, %v683_v63  ;;  %v10421_v28 = vcombine.high %v298_v14, %v426_v16  ;;  %v1055_v30 = vrot.slane %v11760_v9, %v11437_v42  ;;  %v429_v46 = vld [vmem:[#allocation5 + $0x6a8] sm:$0xff] }
 0x196   : > { %9941 = vst [vmem:[%s11467_s20 + $0x1c8] sm:$0xff] %v5821_v34  ;;  %7849 = vmatpush1.bf16.msra.mxu0 %v10412_v29  ;;  %9943 = vst [vmem:[%s11467_s20 + $0x1d8] sm:$0xff] %v5862_v43  ;;  %7890 = vmatpush1.bf16.msra.mxu1 %v10414_v33  ;;  %v10423_v31 = vcombine.high %v299_v19, %v427_v21  ;;  %v556_v33 = vld [vmem:[#allocation5 + $0xaa0] sm:$0xff]  ;;  %v1063_v35 = vrot.slane %v11760_v9, %v11441_v45 }
 0x197   : > { %v5823_v51 = vpop.f32.mrf.mxu0  ;;  %7928 = vmatprep.subr.bf16.mxu0 %v10673_v20  ;;  %v5864_v55 = vpop.f32.mrf.mxu1  ;;  %7969 = vmatprep.subr.bf16.mxu1 %v10675_v37  ;;  %v684_v20 = vld [vmem:[#allocation5 + $0xea0] sm:$0xff]  ;;  %v557_v37 = vld [vmem:[#allocation5 + $0xaa8] sm:$0xff]  ;;  %v10420_v44 = vcombine.low %v298_v14, %v426_v16  ;;  %v10422_v49 = vcombine.low %v299_v19, %v427_v21  ;;  %v1075_v63 = vrot.slane %v11760_v9, %v11462_v5  ;;  %v687_v14 = vld [vmem:[#allocation5 + $0xeb8] sm:$0xff] }
 0x199   : > { %v5900_v48 = vpop.f32.mrf.mxu0  ;;  %10846 = vmatmul.mubr.msk.bf16.vlgmr.msra.gmra.mxu0 %vm4632_vm0, %v11281_v26  ;;  %v5941_v3 = vpop.f32.mrf.mxu1  ;;  %10847 = vmatmul.mubr.msk.bf16.vlgmr.msra.gmra.mxu1 %vm4632_vm0, %v11281_v26 }
 0x19a   : > { %v5901_v2 = vadd.f32 %v5900_v48, %v1035_v32  ;;  %7929 = vmatpush1.bf16.msra.mxu0 %v10672_v50  ;;  %v5942_v6 = vadd.f32 %v5941_v3, %v1043_v52  ;;  %7970 = vmatpush1.bf16.msra.mxu1 %v10674_v53  ;;  %v10681_v32 = vcombine.high %v556_v33, %v684_v20  ;;  %v300_v53 = vld [vmem:[#allocation5 + $0x2a0] sm:$0xff] }
 0x19b   : > { %v5902_v8 = vpop.f32.mrf.mxu0  ;;  %7930 = vmatprep.subr.bf16.mxu0 %v10417_v54  ;;  %v5943_v12 = vpop.f32.mrf.mxu1  ;;  %7971 = vmatprep.subr.bf16.mxu1 %v10419_v58  ;;  %v10683_v52 = vcombine.high %v557_v37, %v685_v40  ;;  %v428_v54 = vld [vmem:[#allocation5 + $0x6a0] sm:$0xff]  ;;  %v301_v58 = vld [vmem:[#allocation5 + $0x2a8] sm:$0xff]  ;;  %v1067_v48 = vrot.slane %v11760_v9, %v11459_v1 }
 0x19c   : > { %9944 = vst [vmem:[%s11467_s20 + $0x1e0] sm:$0xff] %v5901_v2  ;;  %v5903_v59 = vadd.f32 %v5902_v8, %v1039_v56  ;;  %7948 = vmatprep.mubr.bf16.mxu0 %v11127_v0  ;;  %9946 = vst [vmem:[%s11467_s20 + $0x1f0] sm:$0xff] %v5942_v6  ;;  %v5944_v17 = vadd.f32 %v5943_v12, %v1047_v61  ;;  %7989 = vmatprep.mubr.bf16.mxu1 %v11127_v0 }
 0x19d   : > { %v5904_v18 = vpop.f32.mrf.mxu0  ;;  %v5945_v7 = vpop.f32.mrf.mxu1  ;;  %v10680_v61 = vcombine.low %v556_v33, %v684_v20  ;;  %v10682_v2 = vcombine.low %v557_v37, %v685_v40  ;;  %v10425_v3 = vcombine.high %v300_v53, %v428_v54  ;;  %v1071_v6 = vrot.slane %v11760_v9, %v11472_v10  ;;  %v431_v33 = vld [vmem:[#allocation5 + $0x6b8] sm:$0xff] }
 0x19e   : > { %9945 = vst [vmem:[%s11467_s20 + $0x1e8] sm:$0xff] %v5903_v59  ;;  %7931 = vmatpush1.bf16.msra.mxu0 %v10416_v4  ;;  %9947 = vst [vmem:[%s11467_s20 + $0x1f8] sm:$0xff] %v5944_v17  ;;  %7972 = vmatpush1.bf16.msra.mxu1 %v10418_v57  ;;  %v10427_v8 = vcombine.high %v301_v58, %v429_v46  ;;  %v558_v57 = vld [vmem:[#allocation5 + $0xab0] sm:$0xff]  ;;  %v1079_v12 = vrot.slane %v11760_v9, %v11477_v15 }
 0x19f   : > { %v5905_v24 = vpop.f32.mrf.mxu0  ;;  %8010 = vmatprep.subr.bf16.mxu0 %v10677_v11  ;;  %v5946_v29 = vpop.f32.mrf.mxu1  ;;  %8051 = vmatprep.subr.bf16.mxu1 %v10679_v13  ;;  %v686_v11 = vld [vmem:[#allocation5 + $0xeb0] sm:$0xff]  ;;  %v559_v13 = vld [vmem:[#allocation5 + $0xab8] sm:$0xff]  ;;  %v10424_v18 = vcombine.low %v300_v53, %v428_v54  ;;  %v10426_v7 = vcombine.low %v301_v58, %v429_v46  ;;  %v689_v53 = vld [vmem:[#allocation5 + $0xec8] sm:$0xff] }
 0x1a1   : > { %v5982_v34 = vpop.f32.mrf.mxu0  ;;  %10848 = vmatmul.mubr.msk.bf16.vlgmr.msra.gmra.mxu0 %vm4632_vm0, %v11281_v26  ;;  %v6023_v43 = vpop.f32.mrf.mxu1  ;;  %10849 = vmatmul.mubr.msk.bf16.vlgmr.msra.gmra.mxu1 %vm4632_vm0, %v11281_v26 }
 0x1a2   : > { %v5983_v41 = vadd.f32 %v5982_v34, %v1051_v22  ;;  %8011 = vmatpush1.bf16.msra.mxu0 %v10676_v23  ;;  %v6024_v47 = vadd.f32 %v6023_v43, %v1059_v25  ;;  %8052 = vmatpush1.bf16.msra.mxu1 %v10678_v27  ;;  %v11798_v22 = vld [vmem:[#allocation7 + $0x48] sm:$0xff]  ;;  %v10685_v23 = vcombine.high %v558_v57, %v686_v11  ;;  %v302_v27 = vld [vmem:[#allocation5 + $0x2b0] sm:$0xff] }
 0x1a3   : > { %v5984_v38 = vpop.f32.mrf.mxu0  ;;  %8012 = vmatprep.subr.bf16.mxu0 %v10421_v28  ;;  %v6025_v51 = vpop.f32.mrf.mxu1  ;;  %8053 = vmatprep.subr.bf16.mxu1 %v10423_v31  ;;  %v10687_v25 = vcombine.high %v559_v13, %v687_v14  ;;  %v430_v28 = vld [vmem:[#allocation5 + $0x6b0] sm:$0xff]  ;;  %v303_v31 = vld [vmem:[#allocation5 + $0x2b8] sm:$0xff]  ;;  %v1083_v34 = vrot.slane %v11798_v22, %v11428_v36  ;;  %v1091_v40 = vrot.slane %v11798_v22, %v11433_v39 }
 0x1a4   : > { %9948 = vst [vmem:[%s11467_s20 + $0x200] sm:$0xff] %v5983_v41  ;;  %v5985_v50 = vadd.f32 %v5984_v38, %v1055_v30  ;;  %8030 = vmatprep.mubr.bf16.mxu0 %v11127_v0  ;;  %9950 = vst [vmem:[%s11467_s20 + $0x210] sm:$0xff] %v6024_v47  ;;  %v6026_v55 = vadd.f32 %v6025_v51, %v1063_v35  ;;  %8071 = vmatprep.mubr.bf16.mxu1 %v11127_v0 }
 0x1a5   : > { %v5986_v56 = vpop.f32.mrf.mxu0  ;;  %v6027_v60 = vpop.f32.mrf.mxu1  ;;  %v10684_v35 = vcombine.low %v558_v57, %v686_v11  ;;  %v10686_v41 = vcombine.low %v559_v13, %v687_v14  ;;  %v10429_v43 = vcombine.high %v302_v27, %v430_v28  ;;  %v1087_v47 = vrot.slane %v11798_v22, %v11437_v42  ;;  %v433_v57 = vld [vmem:[#allocation5 + $0x6c8] sm:$0xff] }
 0x1a6   : > { %9949 = vst [vmem:[%s11467_s20 + $0x208] sm:$0xff] %v5985_v50  ;;  %8013 = vmatpush1.bf16.msra.mxu0 %v10420_v44  ;;  %9951 = vst [vmem:[%s11467_s20 + $0x218] sm:$0xff] %v6026_v55  ;;  %8054 = vmatpush1.bf16.msra.mxu1 %v10422_v49  ;;  %v10431_v38 = vcombine.high %v303_v31, %v431_v33  ;;  %v560_v49 = vld [vmem:[#allocation5 + $0xac0] sm:$0xff]  ;;  %v1095_v51 = vrot.slane %v11798_v22, %v11441_v45 }
 0x1a7   : > { %v5987_v62 = vpop.f32.mrf.mxu0  ;;  %8092 = vmatprep.subr.bf16.mxu0 %v10681_v32  ;;  %v6028_v4 = vpop.f32.mrf.mxu1  ;;  %8133 = vmatprep.subr.bf16.mxu1 %v10683_v52  ;;  %v688_v32 = vld [vmem:[#allocation5 + $0xec0] sm:$0xff]  ;;  %v561_v52 = vld [vmem:[#allocation5 + $0xac8] sm:$0xff]  ;;  %v10428_v56 = vcombine.low %v302_v27, %v430_v28  ;;  %v10430_v60 = vcombine.low %v303_v31, %v431_v33  ;;  %v1107_v14 = vrot.slane %v11798_v22, %v11462_v5  ;;  %v691_v27 = vld [vmem:[#allocation5 + $0xed8] sm:$0xff] }
 0x1a9   : > { %v6064_v59 = vpop.f32.mrf.mxu0  ;;  %10850 = vmatmul.mubr.msk.bf16.vlgmr.msra.gmra.mxu0 %vm4632_vm0, %v11281_v26  ;;  %v6105_v17 = vpop.f32.mrf.mxu1  ;;  %10851 = vmatmul.mubr.msk.bf16.vlgmr.msra.gmra.mxu1 %vm4632_vm0, %v11281_v26 }
 0x1aa   : > { %v6065_v16 = vadd.f32 %v6064_v59, %v1067_v48  ;;  %8093 = vmatpush1.bf16.msra.mxu0 %v10680_v61  ;;  %v6106_v19 = vadd.f32 %v6105_v17, %v1075_v63  ;;  %8134 = vmatpush1.bf16.msra.mxu1 %v10682_v2  ;;  %v10689_v48 = vcombine.high %v560_v49, %v688_v32  ;;  %v304_v2 = vld [vmem:[#allocation5 + $0x2c0] sm:$0xff] }
 0x1ab   : > { %v6066_v21 = vpop.f32.mrf.mxu0  ;;  %8094 = vmatprep.subr.bf16.mxu0 %v10425_v3  ;;  %v6107_v24 = vpop.f32.mrf.mxu1  ;;  %8135 = vmatprep.subr.bf16.mxu1 %v10427_v8  ;;  %v10691_v63 = vcombine.high %v561_v52, %v689_v53  ;;  %v432_v3 = vld [vmem:[#allocation5 + $0x6c0] sm:$0xff]  ;;  %v305_v8 = vld [vmem:[#allocation5 + $0x2c8] sm:$0xff]  ;;  %v1099_v59 = vrot.slane %v11798_v22, %v11459_v1 }
 0x1ac   : > { %9952 = vst [vmem:[%s11467_s20 + $0x220] sm:$0xff] %v6065_v16  ;;  %v6067_v9 = vadd.f32 %v6066_v21, %v1071_v6  ;;  %8112 = vmatprep.mubr.bf16.mxu0 %v11127_v0  ;;  %9954 = vst [vmem:[%s11467_s20 + $0x230] sm:$0xff] %v6106_v19  ;;  %v6108_v29 = vadd.f32 %v6107_v24, %v1079_v12  ;;  %8153 = vmatprep.mubr.bf16.mxu1 %v11127_v0 }
 0x1ad   : > { %v6068_v30 = vpop.f32.mrf.mxu0  ;;  %v6109_v20 = vpop.f32.mrf.mxu1  ;;  %v10688_v12 = vcombine.low %v560_v49, %v688_v32  ;;  %v10690_v16 = vcombine.low %v561_v52, %v689_v53  ;;  %v10433_v17 = vcombine.high %v304_v2, %v432_v3  ;;  %v1103_v19 = vrot.slane %v11798_v22, %v11472_v10  ;;  %v435_v49 = vld [vmem:[#allocation5 + $0x6d8] sm:$0xff] }
 0x1ae   : > { %9953 = vst [vmem:[%s11467_s20 + $0x228] sm:$0xff] %v6067_v9  ;;  %8095 = vmatpush1.bf16.msra.mxu0 %v10424_v18  ;;  %9955 = vst [vmem:[%s11467_s20 + $0x238] sm:$0xff] %v6108_v29  ;;  %8136 = vmatpush1.bf16.msra.mxu1 %v10426_v7  ;;  %v10435_v21 = vcombine.high %v305_v8, %v433_v57  ;;  %v562_v7 = vld [vmem:[#allocation5 + $0xad0] sm:$0xff]  ;;  %v1111_v24 = vrot.slane %v11798_v22, %v11477_v15 }
 0x1af   : > { %v6069_v37 = vpop.f32.mrf.mxu0  ;;  %8174 = vmatprep.subr.bf16.mxu0 %v10685_v23  ;;  %v6110_v44 = vpop.f32.mrf.mxu1  ;;  %8215 = vmatprep.subr.bf16.mxu1 %v10687_v25  ;;  %v690_v23 = vld [vmem:[#allocation5 + $0xed0] sm:$0xff]  ;;  %v563_v25 = vld [vmem:[#allocation5 + $0xad8] sm:$0xff]  ;;  %v10432_v30 = vcombine.low %v304_v2, %v432_v3  ;;  %v10434_v20 = vcombine.low %v305_v8, %v433_v57  ;;  %v693_v2 = vld [vmem:[#allocation5 + $0xee8] sm:$0xff] }
 0x1b1   : > { %v6146_v50 = vpop.f32.mrf.mxu0  ;;  %10852 = vmatmul.mubr.msk.bf16.vlgmr.msra.gmra.mxu0 %vm4632_vm0, %v11281_v26  ;;  %v6187_v55 = vpop.f32.mrf.mxu1  ;;  %10853 = vmatmul.mubr.msk.bf16.vlgmr.msra.gmra.mxu1 %vm4632_vm0, %v11281_v26 }
 0x1b2   : > { %v6147_v54 = vadd.f32 %v6146_v50, %v1083_v34  ;;  %8175 = vmatpush1.bf16.msra.mxu0 %v10684_v35  ;;  %v6188_v58 = vadd.f32 %v6187_v55, %v1091_v40  ;;  %8216 = vmatpush1.bf16.msra.mxu1 %v10686_v41  ;;  %v11836_v34 = vld [vmem:[#allocation7 + $0x50] sm:$0xff]  ;;  %v10693_v35 = vcombine.high %v562_v7, %v690_v23 }
 0x1b3   : > { %v6148_v46 = vpop.f32.mrf.mxu0  ;;  %8176 = vmatprep.subr.bf16.mxu0 %v10429_v43  ;;  %v6189_v62 = vpop.f32.mrf.mxu1  ;;  %8217 = vmatprep.subr.bf16.mxu1 %v10431_v38  ;;  %v10695_v40 = vcombine.high %v563_v25, %v691_v27  ;;  %v306_v41 = vld [vmem:[#allocation5 + $0x2d0] sm:$0xff]  ;;  %v307_v38 = vld [vmem:[#allocation5 + $0x2d8] sm:$0xff]  ;;  %v1115_v50 = vrot.slane %v11836_v34, %v11428_v36  ;;  %v1123_v53 = vrot.slane %v11836_v34, %v11433_v39 }
 0x1b4   : > { %9956 = vst [vmem:[%s11467_s20 + $0x240] sm:$0xff] %v6147_v54  ;;  %v6149_v61 = vadd.f32 %v6148_v46, %v1087_v47  ;;  %8194 = vmatprep.mubr.bf16.mxu0 %v11127_v0  ;;  %9958 = vst [vmem:[%s11467_s20 + $0x250] sm:$0xff] %v6188_v58  ;;  %v6190_v4 = vadd.f32 %v6189_v62, %v1095_v51  ;;  %8235 = vmatprep.mubr.bf16.mxu1 %v11127_v0  ;;  %v434_v43 = vld [vmem:[#allocation5 + $0x6d0] sm:$0xff] }
 0x1b5   : > { %v6150_v6 = vpop.f32.mrf.mxu0  ;;  %v6191_v11 = vpop.f32.mrf.mxu1  ;;  %v10692_v51 = vcombine.low %v562_v7, %v690_v23  ;;  %v10694_v54 = vcombine.low %v563_v25, %v691_v27  ;;  %v10437_v55 = vcombine.high %v306_v41, %v434_v43  ;;  %v1119_v58 = vrot.slane %v11836_v34, %v11437_v42  ;;  %v437_v7 = vld [vmem:[#allocation5 + $0x6e8] sm:$0xff] }
 0x1b6   : > { %9957 = vst [vmem:[%s11467_s20 + $0x248] sm:$0xff] %v6149_v61  ;;  %8177 = vmatpush1.bf16.msra.mxu0 %v10428_v56  ;;  %9959 = vst [vmem:[%s11467_s20 + $0x258] sm:$0xff] %v6190_v4  ;;  %8218 = vmatpush1.bf16.msra.mxu1 %v10430_v60  ;;  %v10439_v46 = vcombine.high %v307_v38, %v435_v49  ;;  %v564_v60 = vld [vmem:[#allocation5 + $0xae0] sm:$0xff]  ;;  %v1127_v62 = vrot.slane %v11836_v34, %v11441_v45 }
 0x1b7   : > { %v6151_v13 = vpop.f32.mrf.mxu0  ;;  %8256 = vmatprep.subr.bf16.mxu0 %v10689_v48  ;;  %v6192_v18 = vpop.f32.mrf.mxu1  ;;  %8297 = vmatprep.subr.bf16.mxu1 %v10691_v63  ;;  %v692_v48 = vld [vmem:[#allocation5 + $0xee0] sm:$0xff]  ;;  %v565_v63 = vld [vmem:[#allocation5 + $0xae8] sm:$0xff]  ;;  %v10436_v6 = vcombine.low %v306_v41, %v434_v43  ;;  %v10438_v11 = vcombine.low %v307_v38, %v435_v49  ;;  %v1139_v27 = vrot.slane %v11836_v34, %v11462_v5  ;;  %v695_v41 = vld [vmem:[#allocation5 + $0xef8] sm:$0xff] }
 0x1b9   : > { %v6228_v9 = vpop.f32.mrf.mxu0  ;;  %10854 = vmatmul.mubr.msk.bf16.vlgmr.msra.gmra.mxu0 %vm4632_vm0, %v11281_v26  ;;  %v6269_v29 = vpop.f32.mrf.mxu1  ;;  %10855 = vmatmul.mubr.msk.bf16.vlgmr.msra.gmra.mxu1 %vm4632_vm0, %v11281_v26 }
 0x1ba   : > { %v6229_v28 = vadd.f32 %v6228_v9, %v1099_v59  ;;  %8257 = vmatpush1.bf16.msra.mxu0 %v10688_v12  ;;  %v6270_v31 = vadd.f32 %v6269_v29, %v1107_v14  ;;  %8298 = vmatpush1.bf16.msra.mxu1 %v10690_v16  ;;  %v10697_v59 = vcombine.high %v564_v60, %v692_v48  ;;  %v308_v16 = vld [vmem:[#allocation5 + $0x2e0] sm:$0xff] }
 0x1bb   : > { %v6230_v33 = vpop.f32.mrf.mxu0  ;;  %8258 = vmatprep.subr.bf16.mxu0 %v10433_v17  ;;  %v6271_v37 = vpop.f32.mrf.mxu1  ;;  %8299 = vmatprep.subr.bf16.mxu1 %v10435_v21  ;;  %v10699_v14 = vcombine.high %v565_v63, %v693_v2  ;;  %v436_v17 = vld [vmem:[#allocation5 + $0x6e0] sm:$0xff]  ;;  %v309_v21 = vld [vmem:[#allocation5 + $0x2e8] sm:$0xff]  ;;  %v1131_v9 = vrot.slane %v11836_v34, %v11459_v1 }
 0x1bc   : > { %9960 = vst [vmem:[%s11467_s20 + $0x260] sm:$0xff] %v6229_v28  ;;  %v6231_v22 = vadd.f32 %v6230_v33, %v1103_v19  ;;  %8276 = vmatprep.mubr.bf16.mxu0 %v11127_v0  ;;  %9962 = vst [vmem:[%s11467_s20 + $0x270] sm:$0xff] %v6270_v31  ;;  %v6272_v44 = vadd.f32 %v6271_v37, %v1111_v24  ;;  %8317 = vmatprep.mubr.bf16.mxu1 %v11127_v0 }
 0x1bd   : > { %v6232_v47 = vpop.f32.mrf.mxu0  ;;  %v6273_v32 = vpop.f32.mrf.mxu1  ;;  %v10696_v24 = vcombine.low %v564_v60, %v692_v48  ;;  %v10698_v28 = vcombine.low %v565_v63, %v693_v2  ;;  %v10441_v29 = vcombine.high %v308_v16, %v436_v17  ;;  %v1135_v31 = vrot.slane %v11836_v34, %v11472_v10  ;;  %v439_v60 = vld [vmem:[#allocation5 + $0x6f8] sm:$0xff] }
 0x1be   : > { %9961 = vst [vmem:[%s11467_s20 + $0x268] sm:$0xff] %v6231_v22  ;;  %8259 = vmatpush1.bf16.msra.mxu0 %v10432_v30  ;;  %9963 = vst [vmem:[%s11467_s20 + $0x278] sm:$0xff] %v6272_v44  ;;  %8300 = vmatpush1.bf16.msra.mxu1 %v10434_v20  ;;  %v10443_v33 = vcombine.high %v309_v21, %v437_v7  ;;  %v566_v20 = vld [vmem:[#allocation5 + $0xaf0] sm:$0xff]  ;;  %v1143_v37 = vrot.slane %v11836_v34, %v11477_v15 }
 0x1bf   : > { %v6233_v52 = vpop.f32.mrf.mxu0  ;;  %8338 = vmatprep.subr.bf16.mxu0 %v10693_v35  ;;  %v6274_v56 = vpop.f32.mrf.mxu1  ;;  %8379 = vmatprep.subr.bf16.mxu1 %v10695_v40  ;;  %v694_v35 = vld [vmem:[#allocation5 + $0xef0] sm:$0xff]  ;;  %v567_v40 = vld [vmem:[#allocation5 + $0xaf8] sm:$0xff]  ;;  %v10440_v47 = vcombine.low %v308_v16, %v436_v17  ;;  %v10442_v32 = vcombine.low %v309_v21, %v437_v7  ;;  %v697_v16 = vld [vmem:[#allocation5 + $0xf08] sm:$0xff] }
 0x1c1   : > { %v6310_v61 = vpop.f32.mrf.mxu0  ;;  %10856 = vmatmul.mubr.msk.bf16.vlgmr.msra.gmra.mxu0 %vm4632_vm0, %v11281_v26  ;;  %v6351_v4 = vpop.f32.mrf.mxu1  ;;  %10857 = vmatmul.mubr.msk.bf16.vlgmr.msra.gmra.mxu1 %vm4632_vm0, %v11281_v26 }
 0x1c2   : > { %v6311_v3 = vadd.f32 %v6310_v61, %v1115_v50  ;;  %8339 = vmatpush1.bf16.msra.mxu0 %v10692_v51  ;;  %v6352_v8 = vadd.f32 %v6351_v4, %v1123_v53  ;;  %8380 = vmatpush1.bf16.msra.mxu1 %v10694_v54  ;;  %v11874_v50 = vld [vmem:[#allocation7 + $0x58] sm:$0xff]  ;;  %v10701_v51 = vcombine.high %v566_v20, %v694_v35  ;;  %v310_v54 = vld [vmem:[#allocation5 + $0x2f0] sm:$0xff] }
 0x1c3   : > { %v6312_v57 = vpop.f32.mrf.mxu0  ;;  %8340 = vmatprep.subr.bf16.mxu0 %v10437_v55  ;;  %v6353_v13 = vpop.f32.mrf.mxu1  ;;  %8381 = vmatprep.subr.bf16.mxu1 %v10439_v46  ;;  %v10703_v53 = vcombine.high %v567_v40, %v695_v41  ;;  %v438_v55 = vld [vmem:[#allocation5 + $0x6f0] sm:$0xff]  ;;  %v311_v46 = vld [vmem:[#allocation5 + $0x2f8] sm:$0xff]  ;;  %v1147_v61 = vrot.slane %v11874_v50, %v11428_v36  ;;  %v1155_v2 = vrot.slane %v11874_v50, %v11433_v39 }
 0x1c4   : > { %9964 = vst [vmem:[%s11467_s20 + $0x280] sm:$0xff] %v6311_v3  ;;  %v6313_v12 = vadd.f32 %v6312_v57, %v1119_v58  ;;  %8358 = vmatprep.mubr.bf16.mxu0 %v11127_v0  ;;  %9966 = vst [vmem:[%s11467_s20 + $0x290] sm:$0xff] %v6352_v8  ;;  %v6354_v18 = vadd.f32 %v6353_v13, %v1127_v62  ;;  %8399 = vmatprep.mubr.bf16.mxu1 %v11127_v0 }
 0x1c5   : > { %v6314_v19 = vpop.f32.mrf.mxu0  ;;  %v6355_v23 = vpop.f32.mrf.mxu1  ;;  %v10700_v62 = vcombine.low %v566_v20, %v694_v35  ;;  %v10702_v3 = vcombine.low %v567_v40, %v695_v41  ;;  %v10445_v4 = vcombine.high %v310_v54, %v438_v55  ;;  %v1151_v8 = vrot.slane %v11874_v50, %v11437_v42  ;;  %v441_v20 = vld [vmem:[#allocation5 + $0x708] sm:$0xff] }
 0x1c6   : > { %9965 = vst [vmem:[%s11467_s20 + $0x288] sm:$0xff] %v6313_v12  ;;  %8341 = vmatpush1.bf16.msra.mxu0 %v10436_v6  ;;  %9967 = vst [vmem:[%s11467_s20 + $0x298] sm:$0xff] %v6354_v18  ;;  %8382 = vmatpush1.bf16.msra.mxu1 %v10438_v11  ;;  %v10447_v57 = vcombine.high %v311_v46, %v439_v60  ;;  %v568_v11 = vld [vmem:[#allocation5 + $0xb00] sm:$0xff]  ;;  %v1159_v13 = vrot.slane %v11874_v50, %v11441_v45 }
 0x1c7   : > { %v6315_v25 = vpop.f32.mrf.mxu0  ;;  %8420 = vmatprep.subr.bf16.mxu0 %v10697_v59  ;;  %v6356_v30 = vpop.f32.mrf.mxu1  ;;  %8461 = vmatprep.subr.bf16.mxu1 %v10699_v14  ;;  %v696_v59 = vld [vmem:[#allocation5 + $0xf00] sm:$0xff]  ;;  %v569_v14 = vld [vmem:[#allocation5 + $0xb08] sm:$0xff]  ;;  %v10444_v19 = vcombine.low %v310_v54, %v438_v55  ;;  %v10446_v23 = vcombine.low %v311_v46, %v439_v60  ;;  %v1171_v41 = vrot.slane %v11874_v50, %v11462_v5  ;;  %v699_v54 = vld [vmem:[#allocation5 + $0xf18] sm:$0xff] }
 0x1c9   : > { %v6392_v22 = vpop.f32.mrf.mxu0  ;;  %10858 = vmatmul.mubr.msk.bf16.vlgmr.msra.gmra.mxu0 %vm4632_vm0, %v11281_v26  ;;  %v6433_v44 = vpop.f32.mrf.mxu1  ;;  %10859 = vmatmul.mubr.msk.bf16.vlgmr.msra.gmra.mxu1 %vm4632_vm0, %v11281_v26 }
 0x1ca   : > { %v6393_v43 = vadd.f32 %v6392_v22, %v1131_v9  ;;  %8421 = vmatpush1.bf16.msra.mxu0 %v10696_v24  ;;  %v6434_v38 = vadd.f32 %v6433_v44, %v1139_v27  ;;  %8462 = vmatpush1.bf16.msra.mxu1 %v10698_v28  ;;  %v10705_v9 = vcombine.high %v568_v11, %v696_v59  ;;  %v312_v28 = vld [vmem:[#allocation5 + $0x300] sm:$0xff] }
 0x1cb   : > { %v6394_v49 = vpop.f32.mrf.mxu0  ;;  %8422 = vmatprep.subr.bf16.mxu0 %v10441_v29  ;;  %v6435_v52 = vpop.f32.mrf.mxu1  ;;  %8463 = vmatprep.subr.bf16.mxu1 %v10443_v33  ;;  %v10707_v27 = vcombine.high %v569_v14, %v697_v16  ;;  %v440_v29 = vld [vmem:[#allocation5 + $0x700] sm:$0xff]  ;;  %v313_v33 = vld [vmem:[#allocation5 + $0x308] sm:$0xff]  ;;  %v1163_v22 = vrot.slane %v11874_v50, %v11459_v1 }
 0x1cc   : > { %9968 = vst [vmem:[%s11467_s20 + $0x2a0] sm:$0xff] %v6393_v43  ;;  %v6395_v34 = vadd.f32 %v6394_v49, %v1135_v31  ;;  %8440 = vmatprep.mubr.bf16.mxu0 %v11127_v0  ;;  %9970 = vst [vmem:[%s11467_s20 + $0x2b0] sm:$0xff] %v6434_v38  ;;  %v6436_v56 = vadd.f32 %v6435_v52, %v1143_v37  ;;  %8481 = vmatprep.mubr.bf16.mxu1 %v11127_v0 }
 0x1cd   : > { %v6396_v58 = vpop.f32.mrf.mxu0  ;;  %v6437_v48 = vpop.f32.mrf.mxu1  ;;  %v10704_v37 = vcombine.low %v568_v11, %v696_v59  ;;  %v10706_v43 = vcombine.low %v569_v14, %v697_v16  ;;  %v10449_v44 = vcombine.high %v312_v28, %v440_v29  ;;  %v1167_v38 = vrot.slane %v11874_v50, %v11472_v10  ;;  %v443_v11 = vld [vmem:[#allocation5 + $0x718] sm:$0xff] }
 0x1ce   : > { %9969 = vst [vmem:[%s11467_s20 + $0x2a8] sm:$0xff] %v6395_v34  ;;  %8423 = vmatpush1.bf16.msra.mxu0 %v10440_v47  ;;  %9971 = vst [vmem:[%s11467_s20 + $0x2b8] sm:$0xff] %v6436_v56  ;;  %8464 = vmatpush1.bf16.msra.mxu1 %v10442_v32  ;;  %v10451_v49 = vcombine.high %v313_v33, %v441_v20  ;;  %v570_v32 = vld [vmem:[#allocation5 + $0xb10] sm:$0xff]  ;;  %v1175_v52 = vrot.slane %v11874_v50, %v11477_v15 }
 0x1cf   : > { %v6397_v63 = vpop.f32.mrf.mxu0  ;;  %8502 = vmatprep.subr.bf16.mxu0 %v10701_v51  ;;  %v6438_v6 = vpop.f32.mrf.mxu1  ;;  %8543 = vmatprep.subr.bf16.mxu1 %v10703_v53  ;;  %v698_v51 = vld [vmem:[#allocation5 + $0xf10] sm:$0xff]  ;;  %v571_v53 = vld [vmem:[#allocation5 + $0xb18] sm:$0xff]  ;;  %v10448_v58 = vcombine.low %v312_v28, %v440_v29  ;;  %v10450_v48 = vcombine.low %v313_v33, %v441_v20  ;;  %v701_v28 = vld [vmem:[#allocation5 + $0xf28] sm:$0xff] }
 0x1d1   : > { %v6474_v12 = vpop.f32.mrf.mxu0  ;;  %10860 = vmatmul.mubr.msk.bf16.vlgmr.msra.gmra.mxu0 %vm4632_vm0, %v11281_v26  ;;  %v6515_v18 = vpop.f32.mrf.mxu1  ;;  %10861 = vmatmul.mubr.msk.bf16.vlgmr.msra.gmra.mxu1 %vm4632_vm0, %v11281_v26 }
 0x1d2   : > { %v6475_v17 = vadd.f32 %v6474_v12, %v1147_v61  ;;  %8503 = vmatpush1.bf16.msra.mxu0 %v10700_v62  ;;  %v6516_v21 = vadd.f32 %v6515_v18, %v1155_v2  ;;  %8544 = vmatpush1.bf16.msra.mxu1 %v10702_v3  ;;  %v11912_v61 = vld [vmem:[#allocation7 + $0x60] sm:$0xff]  ;;  %v10709_v62 = vcombine.high %v570_v32, %v698_v51  ;;  %v314_v3 = vld [vmem:[#allocation5 + $0x310] sm:$0xff] }
 0x1d3   : > { %v6476_v7 = vpop.f32.mrf.mxu0  ;;  %8504 = vmatprep.subr.bf16.mxu0 %v10445_v4  ;;  %v6517_v25 = vpop.f32.mrf.mxu1  ;;  %8545 = vmatprep.subr.bf16.mxu1 %v10447_v57  ;;  %v10711_v2 = vcombine.high %v571_v53, %v699_v54  ;;  %v442_v4 = vld [vmem:[#allocation5 + $0x710] sm:$0xff]  ;;  %v315_v57 = vld [vmem:[#allocation5 + $0x318] sm:$0xff]  ;;  %v1179_v12 = vrot.slane %v11912_v61, %v11428_v36  ;;  %v1187_v16 = vrot.slane %v11912_v61, %v11433_v39 }
 0x1d4   : > { %9972 = vst [vmem:[%s11467_s20 + $0x2c0] sm:$0xff] %v6475_v17  ;;  %v6477_v24 = vadd.f32 %v6476_v7, %v1151_v8  ;;  %8522 = vmatprep.mubr.bf16.mxu0 %v11127_v0  ;;  %9974 = vst [vmem:[%s11467_s20 + $0x2d0] sm:$0xff] %v6516_v21  ;;  %v6518_v30 = vadd.f32 %v6517_v25, %v1159_v13  ;;  %8563 = vmatprep.mubr.bf16.mxu1 %v11127_v0 }
 0x1d5   : > { %v6478_v31 = vpop.f32.mrf.mxu0  ;;  %v6519_v35 = vpop.f32.mrf.mxu1  ;;  %v10708_v13 = vcombine.low %v570_v32, %v698_v51  ;;  %v10710_v17 = vcombine.low %v571_v53, %v699_v54  ;;  %v10453_v18 = vcombine.high %v314_v3, %v442_v4  ;;  %v1183_v21 = vrot.slane %v11912_v61, %v11437_v42  ;;  %v445_v32 = vld [vmem:[#allocation5 + $0x728] sm:$0xff] }
 0x1d6   : > { %9973 = vst [vmem:[%s11467_s20 + $0x2c8] sm:$0xff] %v6477_v24  ;;  %8505 = vmatpush1.bf16.msra.mxu0 %v10444_v19  ;;  %9975 = vst [vmem:[%s11467_s20 + $0x2d8] sm:$0xff] %v6518_v30  ;;  %8546 = vmatpush1.bf16.msra.mxu1 %v10446_v23  ;;  %v10455_v7 = vcombine.high %v315_v57, %v443_v11  ;;  %v572_v23 = vld [vmem:[#allocation5 + $0xb20] sm:$0xff]  ;;  %v1191_v25 = vrot.slane %v11912_v61, %v11441_v45 }
 0x1d7   : > { %v6479_v40 = vpop.f32.mrf.mxu0  ;;  %8584 = vmatprep.subr.bf16.mxu0 %v10705_v9  ;;  %v6520_v47 = vpop.f32.mrf.mxu1  ;;  %8625 = vmatprep.subr.bf16.mxu1 %v10707_v27  ;;  %v700_v9 = vld [vmem:[#allocation5 + $0xf20] sm:$0xff]  ;;  %v573_v27 = vld [vmem:[#allocation5 + $0xb28] sm:$0xff]  ;;  %v10452_v31 = vcombine.low %v314_v3, %v442_v4  ;;  %v10454_v35 = vcombine.low %v315_v57, %v443_v11  ;;  %v1203_v54 = vrot.slane %v11912_v61, %v11462_v5  ;;  %v703_v3 = vld [vmem:[#allocation5 + $0xf38] sm:$0xff] }
 0x1d9   : > { %v6556_v34 = vpop.f32.mrf.mxu0  ;;  %10862 = vmatmul.mubr.msk.bf16.vlgmr.msra.gmra.mxu0 %vm4632_vm0, %v11281_v26  ;;  %v6597_v56 = vpop.f32.mrf.mxu1  ;;  %10863 = vmatmul.mubr.msk.bf16.vlgmr.msra.gmra.mxu1 %vm4632_vm0, %v11281_v26 }
 0x1da   : > { %v6557_v55 = vadd.f32 %v6556_v34, %v1163_v22  ;;  %8585 = vmatpush1.bf16.msra.mxu0 %v10704_v37  ;;  %v6598_v46 = vadd.f32 %v6597_v56, %v1171_v41  ;;  %8626 = vmatpush1.bf16.msra.mxu1 %v10706_v43  ;;  %v10713_v22 = vcombine.high %v572_v23, %v700_v9  ;;  %v316_v43 = vld [vmem:[#allocation5 + $0x320] sm:$0xff] }
 0x1db   : > { %v6558_v60 = vpop.f32.mrf.mxu0  ;;  %8586 = vmatprep.subr.bf16.mxu0 %v10449_v44  ;;  %v6599_v63 = vpop.f32.mrf.mxu1  ;;  %8627 = vmatprep.subr.bf16.mxu1 %v10451_v49  ;;  %v10715_v41 = vcombine.high %v573_v27, %v701_v28  ;;  %v444_v44 = vld [vmem:[#allocation5 + $0x720] sm:$0xff]  ;;  %v317_v49 = vld [vmem:[#allocation5 + $0x328] sm:$0xff]  ;;  %v1195_v34 = vrot.slane %v11912_v61, %v11459_v1 }
 0x1dc   : > { %9976 = vst [vmem:[%s11467_s20 + $0x2e0] sm:$0xff] %v6557_v55  ;;  %v6559_v50 = vadd.f32 %v6558_v60, %v1167_v38  ;;  %8604 = vmatprep.mubr.bf16.mxu0 %v11127_v0  ;;  %9978 = vst [vmem:[%s11467_s20 + $0x2f0] sm:$0xff] %v6598_v46  ;;  %v6600_v6 = vadd.f32 %v6599_v63, %v1175_v52  ;;  %8645 = vmatprep.mubr.bf16.mxu1 %v11127_v0 }
 0x1dd   : > { %v6560_v8 = vpop.f32.mrf.mxu0  ;;  %v6601_v59 = vpop.f32.mrf.mxu1  ;;  %v10712_v52 = vcombine.low %v572_v23, %v700_v9  ;;  %v10714_v55 = vcombine.low %v573_v27, %v701_v28  ;;  %v10457_v56 = vcombine.high %v316_v43, %v444_v44  ;;  %v1199_v46 = vrot.slane %v11912_v61, %v11472_v10  ;;  %v447_v23 = vld [vmem:[#allocation5 + $0x738] sm:$0xff] }
 0x1de   : > { %9977 = vst [vmem:[%s11467_s20 + $0x2e8] sm:$0xff] %v6559_v50  ;;  %8587 = vmatpush1.bf16.msra.mxu0 %v10448_v58  ;;  %9979 = vst [vmem:[%s11467_s20 + $0x2f8] sm:$0xff] %v6600_v6  ;;  %8628 = vmatpush1.bf16.msra.mxu1 %v10450_v48  ;;  %v10459_v60 = vcombine.high %v317_v49, %v445_v32  ;;  %v574_v48 = vld [vmem:[#allocation5 + $0xb30] sm:$0xff]  ;;  %v1207_v63 = vrot.slane %v11912_v61, %v11477_v15 }
 0x1df   : > { %v6561_v14 = vpop.f32.mrf.mxu0  ;;  %8666 = vmatprep.subr.bf16.mxu0 %v10709_v62  ;;  %v6602_v19 = vpop.f32.mrf.mxu1  ;;  %8707 = vmatprep.subr.bf16.mxu1 %v10711_v2  ;;  %v702_v62 = vld [vmem:[#allocation5 + $0xf30] sm:$0xff]  ;;  %v575_v2 = vld [vmem:[#allocation5 + $0xb38] sm:$0xff]  ;;  %v10456_v8 = vcombine.low %v316_v43, %v444_v44  ;;  %v10458_v59 = vcombine.low %v317_v49, %v445_v32  ;;  %v705_v43 = vld [vmem:[#allocation5 + $0xf48] sm:$0xff] }
 0x1e1   : > { %v6638_v24 = vpop.f32.mrf.mxu0  ;;  %10864 = vmatmul.mubr.msk.bf16.vlgmr.msra.gmra.mxu0 %vm4632_vm0, %v11281_v26  ;;  %v6679_v30 = vpop.f32.mrf.mxu1  ;;  %10865 = vmatmul.mubr.msk.bf16.vlgmr.msra.gmra.mxu1 %vm4632_vm0, %v11281_v26 }
 0x1e2   : > { %v6639_v29 = vadd.f32 %v6638_v24, %v1179_v12  ;;  %8667 = vmatpush1.bf16.msra.mxu0 %v10708_v13  ;;  %v6680_v33 = vadd.f32 %v6679_v30, %v1187_v16  ;;  %8708 = vmatpush1.bf16.msra.mxu1 %v10710_v17  ;;  %v11950_v12 = vld [vmem:[#allocation7 + $0x68] sm:$0xff]  ;;  %v10717_v13 = vcombine.high %v574_v48, %v702_v62  ;;  %v318_v17 = vld [vmem:[#allocation5 + $0x330] sm:$0xff] }
 0x1e3   : > { %v6640_v20 = vpop.f32.mrf.mxu0  ;;  %8668 = vmatprep.subr.bf16.mxu0 %v10453_v18  ;;  %v6681_v40 = vpop.f32.mrf.mxu1  ;;  %8709 = vmatprep.subr.bf16.mxu1 %v10455_v7  ;;  %v10719_v16 = vcombine.high %v575_v2, %v703_v3  ;;  %v446_v18 = vld [vmem:[#allocation5 + $0x730] sm:$0xff]  ;;  %v319_v7 = vld [vmem:[#allocation5 + $0x338] sm:$0xff]  ;;  %v1211_v24 = vrot.slane %v11950_v12, %v11428_v36  ;;  %v1219_v28 = vrot.slane %v11950_v12, %v11433_v39 }
 0x1e4   : > { %9980 = vst [vmem:[%s11467_s20 + $0x300] sm:$0xff] %v6639_v29  ;;  %v6641_v37 = vadd.f32 %v6640_v20, %v1183_v21  ;;  %8686 = vmatprep.mubr.bf16.mxu0 %v11127_v0  ;;  %9982 = vst [vmem:[%s11467_s20 + $0x310] sm:$0xff] %v6680_v33  ;;  %v6682_v47 = vadd.f32 %v6681_v40, %v1191_v25  ;;  %8727 = vmatprep.mubr.bf16.mxu1 %v11127_v0 }
 0x1e5   : > { %v6642_v38 = vpop.f32.mrf.mxu0  ;;  %v6683_v51 = vpop.f32.mrf.mxu1  ;;  %v10716_v25 = vcombine.low %v574_v48, %v702_v62  ;;  %v10718_v29 = vcombine.low %v575_v2, %v703_v3  ;;  %v10461_v30 = vcombine.high %v318_v17, %v446_v18  ;;  %v1215_v33 = vrot.slane %v11950_v12, %v11437_v42  ;;  %v449_v48 = vld [vmem:[#allocation5 + $0x748] sm:$0xff] }
 0x1e6   : > { %9981 = vst [vmem:[%s11467_s20 + $0x308] sm:$0xff] %v6641_v37  ;;  %8669 = vmatpush1.bf16.msra.mxu0 %v10452_v31  ;;  %9983 = vst [vmem:[%s11467_s20 + $0x318] sm:$0xff] %v6682_v47  ;;  %8710 = vmatpush1.bf16.msra.mxu1 %v10454_v35  ;;  %v10463_v20 = vcombine.high %v319_v7, %v447_v23  ;;  %v576_v35 = vld [vmem:[#allocation5 + $0xb40] sm:$0xff]  ;;  %v1223_v40 = vrot.slane %v11950_v12, %v11441_v45 }
 0x1e7   : > { %v6643_v53 = vpop.f32.mrf.mxu0  ;;  %8748 = vmatprep.subr.bf16.mxu0 %v10713_v22  ;;  %v6684_v58 = vpop.f32.mrf.mxu1  ;;  %8789 = vmatprep.subr.bf16.mxu1 %v10715_v41  ;;  %v704_v22 = vld [vmem:[#allocation5 + $0xf40] sm:$0xff]  ;;  %v577_v41 = vld [vmem:[#allocation5 + $0xb48] sm:$0xff]  ;;  %v10460_v38 = vcombine.low %v318_v17, %v446_v18  ;;  %v10462_v51 = vcombine.low %v319_v7, %v447_v23  ;;  %v1235_v3 = vrot.slane %v11950_v12, %v11462_v5  ;;  %v707_v17 = vld [vmem:[#allocation5 + $0xf58] sm:$0xff] }
 0x1e9   : > { %v6720_v50 = vpop.f32.mrf.mxu0  ;;  %10866 = vmatmul.mubr.msk.bf16.vlgmr.msra.gmra.mxu0 %vm4632_vm0, %v11281_v26  ;;  %v6761_v6 = vpop.f32.mrf.mxu1  ;;  %10867 = vmatmul.mubr.msk.bf16.vlgmr.msra.gmra.mxu1 %vm4632_vm0, %v11281_v26 }
 0x1ea   : > { %v6721_v4 = vadd.f32 %v6720_v50, %v1195_v34  ;;  %8749 = vmatpush1.bf16.msra.mxu0 %v10712_v52  ;;  %v6762_v57 = vadd.f32 %v6761_v6, %v1203_v54  ;;  %8790 = vmatpush1.bf16.msra.mxu1 %v10714_v55  ;;  %v10721_v34 = vcombine.high %v576_v35, %v704_v22  ;;  %v320_v55 = vld [vmem:[#allocation5 + $0x340] sm:$0xff] }
 0x1eb   : > { %v6722_v11 = vpop.f32.mrf.mxu0  ;;  %8750 = vmatprep.subr.bf16.mxu0 %v10457_v56  ;;  %v6763_v14 = vpop.f32.mrf.mxu1  ;;  %8791 = vmatprep.subr.bf16.mxu1 %v10459_v60  ;;  %v10723_v54 = vcombine.high %v577_v41, %v705_v43  ;;  %v448_v56 = vld [vmem:[#allocation5 + $0x740] sm:$0xff]  ;;  %v321_v60 = vld [vmem:[#allocation5 + $0x348] sm:$0xff]  ;;  %v1227_v50 = vrot.slane %v11950_v12, %v11459_v1 }
 0x1ec   : > { %9984 = vst [vmem:[%s11467_s20 + $0x320] sm:$0xff] %v6721_v4  ;;  %v6723_v61 = vadd.f32 %v6722_v11, %v1199_v46  ;;  %8768 = vmatprep.mubr.bf16.mxu0 %v11127_v0  ;;  %9986 = vst [vmem:[%s11467_s20 + $0x330] sm:$0xff] %v6762_v57  ;;  %v6764_v19 = vadd.f32 %v6763_v14, %v1207_v63  ;;  %8809 = vmatprep.mubr.bf16.mxu1 %v11127_v0 }
 0x1ed   : > { %v6724_v21 = vpop.f32.mrf.mxu0  ;;  %v6765_v9 = vpop.f32.mrf.mxu1  ;;  %v10720_v63 = vcombine.low %v576_v35, %v704_v22  ;;  %v10722_v4 = vcombine.low %v577_v41, %v705_v43  ;;  %v10465_v6 = vcombine.high %v320_v55, %v448_v56  ;;  %v1231_v57 = vrot.slane %v11950_v12, %v11472_v10  ;;  %v451_v35 = vld [vmem:[#allocation5 + $0x758] sm:$0xff] }
 0x1ee   : > { %9985 = vst [vmem:[%s11467_s20 + $0x328] sm:$0xff] %v6723_v61  ;;  %8751 = vmatpush1.bf16.msra.mxu0 %v10456_v8  ;;  %9987 = vst [vmem:[%s11467_s20 + $0x338] sm:$0xff] %v6764_v19  ;;  %8792 = vmatpush1.bf16.msra.mxu1 %v10458_v59  ;;  %v10467_v11 = vcombine.high %v321_v60, %v449_v48  ;;  %v578_v59 = vld [vmem:[#allocation5 + $0xb50] sm:$0xff]  ;;  %v1239_v14 = vrot.slane %v11950_v12, %v11477_v15 }
 0x1ef   : > { %v6725_v27 = vpop.f32.mrf.mxu0  ;;  %8830 = vmatprep.subr.bf16.mxu0 %v10717_v13  ;;  %v6766_v31 = vpop.f32.mrf.mxu1  ;;  %8871 = vmatprep.subr.bf16.mxu1 %v10719_v16  ;;  %v706_v13 = vld [vmem:[#allocation5 + $0xf50] sm:$0xff]  ;;  %v579_v16 = vld [vmem:[#allocation5 + $0xb58] sm:$0xff]  ;;  %v10464_v21 = vcombine.low %v320_v55, %v448_v56  ;;  %v10466_v9 = vcombine.low %v321_v60, %v449_v48  ;;  %v709_v55 = vld [vmem:[#allocation5 + $0xf68] sm:$0xff] }
 0x1f1   : > { %v6802_v37 = vpop.f32.mrf.mxu0  ;;  %10868 = vmatmul.mubr.msk.bf16.vlgmr.msra.gmra.mxu0 %vm4632_vm0, %v11281_v26  ;;  %v6843_v47 = vpop.f32.mrf.mxu1  ;;  %10869 = vmatmul.mubr.msk.bf16.vlgmr.msra.gmra.mxu1 %vm4632_vm0, %v11281_v26 }
 0x1f2   : > { %v6803_v44 = vadd.f32 %v6802_v37, %v1211_v24  ;;  %8831 = vmatpush1.bf16.msra.mxu0 %v10716_v25  ;;  %v6844_v49 = vadd.f32 %v6843_v47, %v1219_v28  ;;  %8872 = vmatpush1.bf16.msra.mxu1 %v10718_v29  ;;  %v11988_v24 = vld [vmem:[#allocation7 + $0x70] sm:$0xff]  ;;  %v10725_v25 = vcombine.high %v578_v59, %v706_v13 }
 0x1f3   : > { %v6804_v32 = vpop.f32.mrf.mxu0  ;;  %8832 = vmatprep.subr.bf16.mxu0 %v10461_v30  ;;  %v6845_v53 = vpop.f32.mrf.mxu1  ;;  %8873 = vmatprep.subr.bf16.mxu1 %v10463_v20  ;;  %v10727_v28 = vcombine.high %v579_v16, %v707_v17  ;;  %v322_v29 = vld [vmem:[#allocation5 + $0x350] sm:$0xff]  ;;  %v323_v20 = vld [vmem:[#allocation5 + $0x358] sm:$0xff]  ;;  %v1243_v37 = vrot.slane %v11988_v24, %v11428_v36  ;;  %v1251_v43 = vrot.slane %v11988_v24, %v11433_v39 }
 0x1f4   : > { %9988 = vst [vmem:[%s11467_s20 + $0x340] sm:$0xff] %v6803_v44  ;;  %v6805_v52 = vadd.f32 %v6804_v32, %v1215_v33  ;;  %8850 = vmatprep.mubr.bf16.mxu0 %v11127_v0  ;;  %9990 = vst [vmem:[%s11467_s20 + $0x350] sm:$0xff] %v6844_v49  ;;  %v6846_v58 = vadd.f32 %v6845_v53, %v1223_v40  ;;  %8891 = vmatprep.mubr.bf16.mxu1 %v11127_v0  ;;  %v450_v30 = vld [vmem:[#allocation5 + $0x750] sm:$0xff] }
 0x1f5   : > { %v6806_v46 = vpop.f32.mrf.mxu0  ;;  %v6847_v62 = vpop.f32.mrf.mxu1  ;;  %v10724_v40 = vcombine.low %v578_v59, %v706_v13  ;;  %v10726_v44 = vcombine.low %v579_v16, %v707_v17  ;;  %v10469_v47 = vcombine.high %v322_v29, %v450_v30  ;;  %v1247_v49 = vrot.slane %v11988_v24, %v11437_v42  ;;  %v453_v59 = vld [vmem:[#allocation5 + $0x768] sm:$0xff] }
 0x1f6   : > { %9989 = vst [vmem:[%s11467_s20 + $0x348] sm:$0xff] %v6805_v52  ;;  %8833 = vmatpush1.bf16.msra.mxu0 %v10460_v38  ;;  %9991 = vst [vmem:[%s11467_s20 + $0x358] sm:$0xff] %v6846_v58  ;;  %8874 = vmatpush1.bf16.msra.mxu1 %v10462_v51  ;;  %v10471_v32 = vcombine.high %v323_v20, %v451_v35  ;;  %v580_v51 = vld [vmem:[#allocation5 + $0xb60] sm:$0xff]  ;;  %v1255_v53 = vrot.slane %v11988_v24, %v11441_v45 }
 0x1f7   : > { %v6807_v2 = vpop.f32.mrf.mxu0  ;;  %8912 = vmatprep.subr.bf16.mxu0 %v10721_v34  ;;  %v6848_v8 = vpop.f32.mrf.mxu1  ;;  %8953 = vmatprep.subr.bf16.mxu1 %v10723_v54  ;;  %v708_v34 = vld [vmem:[#allocation5 + $0xf60] sm:$0xff]  ;;  %v581_v54 = vld [vmem:[#allocation5 + $0xb68] sm:$0xff]  ;;  %v10468_v46 = vcombine.low %v322_v29, %v450_v30  ;;  %v10470_v62 = vcombine.low %v323_v20, %v451_v35  ;;  %v1267_v17 = vrot.slane %v11988_v24, %v11462_v5  ;;  %v711_v29 = vld [vmem:[#allocation5 + $0xf78] sm:$0xff] }
 0x1f9   : > { %v6884_v61 = vpop.f32.mrf.mxu0  ;;  %10870 = vmatmul.mubr.msk.bf16.vlgmr.msra.gmra.mxu0 %vm4632_vm0, %v11281_v26  ;;  %v6925_v19 = vpop.f32.mrf.mxu1  ;;  %10871 = vmatmul.mubr.msk.bf16.vlgmr.msra.gmra.mxu1 %vm4632_vm0, %v11281_v26 }
 0x1fa   : > { %v6885_v18 = vadd.f32 %v6884_v61, %v1227_v50  ;;  %8913 = vmatpush1.bf16.msra.mxu0 %v10720_v63  ;;  %v6926_v7 = vadd.f32 %v6925_v19, %v1235_v3  ;;  %8954 = vmatpush1.bf16.msra.mxu1 %v10722_v4  ;;  %v10729_v50 = vcombine.high %v580_v51, %v708_v34  ;;  %v324_v4 = vld [vmem:[#allocation5 + $0x360] sm:$0xff] }
 0x1fb   : > { %v6886_v23 = vpop.f32.mrf.mxu0  ;;  %8914 = vmatprep.subr.bf16.mxu0 %v10465_v6  ;;  %v6927_v27 = vpop.f32.mrf.mxu1  ;;  %8955 = vmatprep.subr.bf16.mxu1 %v10467_v11  ;;  %v10731_v3 = vcombine.high %v581_v54, %v709_v55  ;;  %v452_v6 = vld [vmem:[#allocation5 + $0x760] sm:$0xff]  ;;  %v325_v11 = vld [vmem:[#allocation5 + $0x368] sm:$0xff]  ;;  %v1259_v61 = vrot.slane %v11988_v24, %v11459_v1 }
 0x1fc   : > { %9992 = vst [vmem:[%s11467_s20 + $0x360] sm:$0xff] %v6885_v18  ;;  %v6887_v12 = vadd.f32 %v6886_v23, %v1231_v57  ;;  %8932 = vmatprep.mubr.bf16.mxu0 %v11127_v0  ;;  %9994 = vst [vmem:[%s11467_s20 + $0x370] sm:$0xff] %v6926_v7  ;;  %v6928_v31 = vadd.f32 %v6927_v27, %v1239_v14  ;;  %8973 = vmatprep.mubr.bf16.mxu1 %v11127_v0 }
 0x1fd   : > { %v6888_v33 = vpop.f32.mrf.mxu0  ;;  %v6929_v22 = vpop.f32.mrf.mxu1  ;;  %v10728_v14 = vcombine.low %v580_v51, %v708_v34  ;;  %v10730_v18 = vcombine.low %v581_v54, %v709_v55  ;;  %v10473_v19 = vcombine.high %v324_v4, %v452_v6  ;;  %v1263_v7 = vrot.slane %v11988_v24, %v11472_v10  ;;  %v455_v51 = vld [vmem:[#allocation5 + $0x778] sm:$0xff] }
 0x1fe   : > { %9993 = vst [vmem:[%s11467_s20 + $0x368] sm:$0xff] %v6887_v12  ;;  %8915 = vmatpush1.bf16.msra.mxu0 %v10464_v21  ;;  %9995 = vst [vmem:[%s11467_s20 + $0x378] sm:$0xff] %v6928_v31  ;;  %8956 = vmatpush1.bf16.msra.mxu1 %v10466_v9  ;;  %v10475_v23 = vcombine.high %v325_v11, %v453_v59  ;;  %v582_v9 = vld [vmem:[#allocation5 + $0xb70] sm:$0xff]  ;;  %v1271_v27 = vrot.slane %v11988_v24, %v11477_v15 }
 0x1ff   : > { %v6889_v41 = vpop.f32.mrf.mxu0  ;;  %8994 = vmatprep.subr.bf16.mxu0 %v10725_v25  ;;  %v6930_v38 = vpop.f32.mrf.mxu1  ;;  %9035 = vmatprep.subr.bf16.mxu1 %v10727_v28  ;;  %v710_v25 = vld [vmem:[#allocation5 + $0xf70] sm:$0xff]  ;;  %v583_v28 = vld [vmem:[#allocation5 + $0xb78] sm:$0xff]  ;;  %v10472_v33 = vcombine.low %v324_v4, %v452_v6  ;;  %v10474_v22 = vcombine.low %v325_v11, %v453_v59  ;;  %v713_v4 = vld [vmem:[#allocation5 + $0xf88] sm:$0xff] }
 0x201   : > { %v6966_v52 = vpop.f32.mrf.mxu0  ;;  %10872 = vmatmul.mubr.msk.bf16.vlgmr.msra.gmra.mxu0 %vm4632_vm0, %v11281_v26  ;;  %v7007_v58 = vpop.f32.mrf.mxu1  ;;  %10873 = vmatmul.mubr.msk.bf16.vlgmr.msra.gmra.mxu1 %vm4632_vm0, %v11281_v26 }
 0x202   : > { %v6967_v56 = vadd.f32 %v6966_v52, %v1243_v37  ;;  %8995 = vmatpush1.bf16.msra.mxu0 %v10724_v40  ;;  %v7008_v60 = vadd.f32 %v7007_v58, %v1251_v43  ;;  %9036 = vmatpush1.bf16.msra.mxu1 %v10726_v44  ;;  %v12026_v37 = vld [vmem:[#allocation7 + $0x78] sm:$0xff]  ;;  %v10733_v40 = vcombine.high %v582_v9, %v710_v25  ;;  %v326_v44 = vld [vmem:[#allocation5 + $0x370] sm:$0xff] }
 0x203   : > { %v6968_v48 = vpop.f32.mrf.mxu0  ;;  %8996 = vmatprep.subr.bf16.mxu0 %v10469_v47  ;;  %v7009_v2 = vpop.f32.mrf.mxu1  ;;  %9037 = vmatprep.subr.bf16.mxu1 %v10471_v32  ;;  %v10735_v43 = vcombine.high %v583_v28, %v711_v29  ;;  %v454_v47 = vld [vmem:[#allocation5 + $0x770] sm:$0xff]  ;;  %v327_v32 = vld [vmem:[#allocation5 + $0x378] sm:$0xff]  ;;  %v1275_v52 = vrot.slane %v12026_v37, %v11428_v36  ;;  %v1283_v55 = vrot.slane %v12026_v37, %v11433_v39 }
 0x204   : > { %9996 = vst [vmem:[%s11467_s20 + $0x380] sm:$0xff] %v6967_v56  ;;  %v6969_v63 = vadd.f32 %v6968_v48, %v1247_v49  ;;  %9014 = vmatprep.mubr.bf16.mxu0 %v11127_v0  ;;  %9998 = vst [vmem:[%s11467_s20 + $0x390] sm:$0xff] %v7008_v60  ;;  %v7010_v8 = vadd.f32 %v7009_v2, %v1255_v53  ;;  %9055 = vmatprep.mubr.bf16.mxu1 %v11127_v0 }
 0x205   : > { %v6970_v57 = vpop.f32.mrf.mxu0  ;;  %v7011_v13 = vpop.f32.mrf.mxu1  ;;  %v10732_v53 = vcombine.low %v582_v9, %v710_v25  ;;  %v10734_v56 = vcombine.low %v583_v28, %v711_v29  ;;  %v10477_v58 = vcombine.high %v326_v44, %v454_v47  ;;  %v1279_v60 = vrot.slane %v12026_v37, %v11437_v42  ;;  %v457_v9 = vld [vmem:[#allocation5 + $0x788] sm:$0xff] }
 0x206   : > { %9997 = vst [vmem:[%s11467_s20 + $0x388] sm:$0xff] %v6969_v63  ;;  %8997 = vmatpush1.bf16.msra.mxu0 %v10468_v46  ;;  %9999 = vst [vmem:[%s11467_s20 + $0x398] sm:$0xff] %v7010_v8  ;;  %9038 = vmatpush1.bf16.msra.mxu1 %v10470_v62  ;;  %v10479_v48 = vcombine.high %v327_v32, %v455_v51  ;;  %v584_v62 = vld [vmem:[#allocation5 + $0xb80] sm:$0xff]  ;;  %v1287_v2 = vrot.slane %v12026_v37, %v11441_v45 }
 0x207   : > { %v6971_v16 = vpop.f32.mrf.mxu0  ;;  %9076 = vmatprep.subr.bf16.mxu0 %v10729_v50  ;;  %v7012_v21 = vpop.f32.mrf.mxu1  ;;  %9117 = vmatprep.subr.bf16.mxu1 %v10731_v3  ;;  %v712_v50 = vld [vmem:[#allocation5 + $0xf80] sm:$0xff]  ;;  %v585_v3 = vld [vmem:[#allocation5 + $0xb88] sm:$0xff]  ;;  %v10476_v57 = vcombine.low %v326_v44, %v454_v47  ;;  %v10478_v13 = vcombine.low %v327_v32, %v455_v51  ;;  %v1299_v29 = vrot.slane %v12026_v37, %v11462_v5  ;;  %v715_v44 = vld [vmem:[#allocation5 + $0xf98] sm:$0xff] }
 0x209   : > { %v7048_v12 = vpop.f32.mrf.mxu0  ;;  %10874 = vmatmul.mubr.msk.bf16.vlgmr.msra.gmra.mxu0 %vm4632_vm0, %v11281_v26  ;;  %v7089_v31 = vpop.f32.mrf.mxu1  ;;  %10875 = vmatmul.mubr.msk.bf16.vlgmr.msra.gmra.mxu1 %vm4632_vm0, %v11281_v26 }
 0x20a   : > { %v7049_v30 = vadd.f32 %v7048_v12, %v1259_v61  ;;  %9077 = vmatpush1.bf16.msra.mxu0 %v10728_v14  ;;  %v7090_v20 = vadd.f32 %v7089_v31, %v1267_v17  ;;  %9118 = vmatpush1.bf16.msra.mxu1 %v10730_v18  ;;  %v10737_v61 = vcombine.high %v584_v62, %v712_v50  ;;  %v328_v18 = vld [vmem:[#allocation5 + $0x380] sm:$0xff] }
 0x20b   : > { %v7050_v35 = vpop.f32.mrf.mxu0  ;;  %9078 = vmatprep.subr.bf16.mxu0 %v10473_v19  ;;  %v7091_v41 = vpop.f32.mrf.mxu1  ;;  %9119 = vmatprep.subr.bf16.mxu1 %v10475_v23  ;;  %v10739_v17 = vcombine.high %v585_v3, %v713_v4  ;;  %v456_v19 = vld [vmem:[#allocation5 + $0x780] sm:$0xff]  ;;  %v329_v23 = vld [vmem:[#allocation5 + $0x388] sm:$0xff]  ;;  %v1291_v12 = vrot.slane %v12026_v37, %v11459_v1 }
 0x20c   : > { %10000 = vst [vmem:[%s11467_s20 + $0x3a0] sm:$0xff] %v7049_v30  ;;  %v7051_v24 = vadd.f32 %v7050_v35, %v1263_v7  ;;  %9096 = vmatprep.mubr.bf16.mxu0 %v11127_v0  ;;  %10002 = vst [vmem:[%s11467_s20 + $0x3b0] sm:$0xff] %v7090_v20  ;;  %v7092_v38 = vadd.f32 %v7091_v41, %v1271_v27  ;;  %9137 = vmatprep.mubr.bf16.mxu1 %v11127_v0 }
 0x20d   : > { %v7052_v49 = vpop.f32.mrf.mxu0  ;;  %v7093_v34 = vpop.f32.mrf.mxu1  ;;  %v10736_v27 = vcombine.low %v584_v62, %v712_v50  ;;  %v10738_v30 = vcombine.low %v585_v3, %v713_v4  ;;  %v10481_v31 = vcombine.high %v328_v18, %v456_v19  ;;  %v1295_v20 = vrot.slane %v12026_v37, %v11472_v10  ;;  %v459_v62 = vld [vmem:[#allocation5 + $0x798] sm:$0xff] }
 0x20e   : > { %10001 = vst [vmem:[%s11467_s20 + $0x3a8] sm:$0xff] %v7051_v24  ;;  %9079 = vmatpush1.bf16.msra.mxu0 %v10472_v33  ;;  %10003 = vst [vmem:[%s11467_s20 + $0x3b8] sm:$0xff] %v7092_v38  ;;  %9120 = vmatpush1.bf16.msra.mxu1 %v10474_v22  ;;  %v10483_v35 = vcombine.high %v329_v23, %v457_v9  ;;  %v586_v22 = vld [vmem:[#allocation5 + $0xb90] sm:$0xff]  ;;  %v1303_v41 = vrot.slane %v12026_v37, %v11477_v15 }
 0x20f   : > { %v7053_v54 = vpop.f32.mrf.mxu0  ;;  %9158 = vmatprep.subr.bf16.mxu0 %v10733_v40  ;;  %v7094_v46 = vpop.f32.mrf.mxu1  ;;  %9199 = vmatprep.subr.bf16.mxu1 %v10735_v43  ;;  %v714_v40 = vld [vmem:[#allocation5 + $0xf90] sm:$0xff]  ;;  %v587_v43 = vld [vmem:[#allocation5 + $0xb98] sm:$0xff]  ;;  %v10480_v49 = vcombine.low %v328_v18, %v456_v19  ;;  %v10482_v34 = vcombine.low %v329_v23, %v457_v9  ;;  %v717_v18 = vld [vmem:[#allocation5 + $0xfa8] sm:$0xff] }
 0x211   : > { %v7130_v63 = vpop.f32.mrf.mxu0  ;;  %10876 = vmatmul.mubr.msk.bf16.vlgmr.msra.gmra.mxu0 %vm4632_vm0, %v11281_v26  ;;  %v7171_v8 = vpop.f32.mrf.mxu1  ;;  %10877 = vmatmul.mubr.msk.bf16.vlgmr.msra.gmra.mxu1 %vm4632_vm0, %v11281_v26 }
 0x212   : > { %v7131_v6 = vadd.f32 %v7130_v63, %v1275_v52  ;;  %9159 = vmatpush1.bf16.msra.mxu0 %v10732_v53  ;;  %v7172_v11 = vadd.f32 %v7171_v8, %v1283_v55  ;;  %9200 = vmatpush1.bf16.msra.mxu1 %v10734_v56  ;;  %v12064_v52 = vld [vmem:[#allocation7 + $0x80] sm:$0xff]  ;;  %v10741_v53 = vcombine.high %v586_v22, %v714_v40  ;;  %v330_v56 = vld [vmem:[#allocation5 + $0x390] sm:$0xff] }
 0x213   : > { %v7132_v59 = vpop.f32.mrf.mxu0  ;;  %9160 = vmatprep.subr.bf16.mxu0 %v10477_v58  ;;  %v7173_v16 = vpop.f32.mrf.mxu1  ;;  %9201 = vmatprep.subr.bf16.mxu1 %v10479_v48  ;;  %v10743_v55 = vcombine.high %v587_v43, %v715_v44  ;;  %v458_v58 = vld [vmem:[#allocation5 + $0x790] sm:$0xff]  ;;  %v331_v48 = vld [vmem:[#allocation5 + $0x398] sm:$0xff]  ;;  %v1307_v63 = vrot.slane %v12064_v52, %v11428_v36  ;;  %v1315_v4 = vrot.slane %v12064_v52, %v11433_v39 }
 0x214   : > { %10004 = vst [vmem:[%s11467_s20 + $0x3c0] sm:$0xff] %v7131_v6  ;;  %v7133_v14 = vadd.f32 %v7132_v59, %v1279_v60  ;;  %9178 = vmatprep.mubr.bf16.mxu0 %v11127_v0  ;;  %10006 = vst [vmem:[%s11467_s20 + $0x3d0] sm:$0xff] %v7172_v11  ;;  %v7174_v21 = vadd.f32 %v7173_v16, %v1287_v2  ;;  %9219 = vmatprep.mubr.bf16.mxu1 %v11127_v0 }
 0x215   : > { %v7134_v7 = vpop.f32.mrf.mxu0  ;;  %v7175_v25 = vpop.f32.mrf.mxu1  ;;  %v10740_v2 = vcombine.low %v586_v22, %v714_v40  ;;  %v10742_v6 = vcombine.low %v587_v43, %v715_v44  ;;  %v10485_v8 = vcombine.high %v330_v56, %v458_v58  ;;  %v1311_v11 = vrot.slane %v12064_v52, %v11437_v42  ;;  %v461_v22 = vld [vmem:[#allocation5 + $0x7a8] sm:$0xff] }
 0x216   : > { %10005 = vst [vmem:[%s11467_s20 + $0x3c8] sm:$0xff] %v7133_v14  ;;  %9161 = vmatpush1.bf16.msra.mxu0 %v10476_v57  ;;  %10007 = vst [vmem:[%s11467_s20 + $0x3d8] sm:$0xff] %v7174_v21  ;;  %9202 = vmatpush1.bf16.msra.mxu1 %v10478_v13  ;;  %v10487_v59 = vcombine.high %v331_v48, %v459_v62  ;;  %v588_v13 = vld [vmem:[#allocation5 + $0xba0] sm:$0xff]  ;;  %v1319_v16 = vrot.slane %v12064_v52, %v11441_v45 }
 0x217   : > { %v7135_v28 = vpop.f32.mrf.mxu0  ;;  %9240 = vmatprep.subr.bf16.mxu0 %v10737_v61  ;;  %v7176_v33 = vpop.f32.mrf.mxu1  ;;  %9281 = vmatprep.subr.bf16.mxu1 %v10739_v17  ;;  %v716_v61 = vld [vmem:[#allocation5 + $0xfa0] sm:$0xff]  ;;  %v589_v17 = vld [vmem:[#allocation5 + $0xba8] sm:$0xff]  ;;  %v10484_v7 = vcombine.low %v330_v56, %v458_v58  ;;  %v10486_v25 = vcombine.low %v331_v48, %v459_v62  ;;  %v1331_v44 = vrot.slane %v12064_v52, %v11462_v5  ;;  %v719_v56 = vld [vmem:[#allocation5 + $0xfb8] sm:$0xff] }
 0x219   : > { %v7212_v24 = vpop.f32.mrf.mxu0  ;;  %10878 = vmatmul.mubr.msk.bf16.vlgmr.msra.gmra.mxu0 %vm4632_vm0, %v11281_v26  ;;  %v7253_v38 = vpop.f32.mrf.mxu1  ;;  %10879 = vmatmul.mubr.msk.bf16.vlgmr.msra.gmra.mxu1 %vm4632_vm0, %v11281_v26 }
 0x21a   : > { %v7213_v47 = vadd.f32 %v7212_v24, %v1291_v12  ;;  %9241 = vmatpush1.bf16.msra.mxu0 %v10736_v27  ;;  %v7254_v32 = vadd.f32 %v7253_v38, %v1299_v29  ;;  %9282 = vmatpush1.bf16.msra.mxu1 %v10738_v30  ;;  %v10745_v12 = vcombine.high %v588_v13, %v716_v61  ;;  %v332_v30 = vld [vmem:[#allocation5 + $0x3a0] sm:$0xff] }
 0x21b   : > { %v7214_v51 = vpop.f32.mrf.mxu0  ;;  %9242 = vmatprep.subr.bf16.mxu0 %v10481_v31  ;;  %v7255_v54 = vpop.f32.mrf.mxu1  ;;  %9283 = vmatprep.subr.bf16.mxu1 %v10483_v35  ;;  %v10747_v29 = vcombine.high %v589_v17, %v717_v18  ;;  %v460_v31 = vld [vmem:[#allocation5 + $0x7a0] sm:$0xff]  ;;  %v333_v35 = vld [vmem:[#allocation5 + $0x3a8] sm:$0xff]  ;;  %v1323_v24 = vrot.slane %v12064_v52, %v11459_v1 }
 0x21c   : > { %10008 = vst [vmem:[%s11467_s20 + $0x3e0] sm:$0xff] %v7213_v47  ;;  %v7215_v37 = vadd.f32 %v7214_v51, %v1295_v20  ;;  %9260 = vmatprep.mubr.bf16.mxu0 %v11127_v0  ;;  %10010 = vst [vmem:[%s11467_s20 + $0x3f0] sm:$0xff] %v7254_v32  ;;  %v7256_v46 = vadd.f32 %v7255_v54, %v1303_v41  ;;  %9301 = vmatprep.mubr.bf16.mxu1 %v11127_v0 }
 0x21d   : > { %v7216_v60 = vpop.f32.mrf.mxu0  ;;  %v7257_v50 = vpop.f32.mrf.mxu1  ;;  %v10744_v41 = vcombine.low %v588_v13, %v716_v61  ;;  %v10746_v47 = vcombine.low %v589_v17, %v717_v18  ;;  %v10489_v38 = vcombine.high %v332_v30, %v460_v31  ;;  %v1327_v32 = vrot.slane %v12064_v52, %v11472_v10  ;;  %v463_v13 = vld [vmem:[#allocation5 + $0x7b8] sm:$0xff] }
 0x21e   : > { %10009 = vst [vmem:[%s11467_s20 + $0x3e8] sm:$0xff] %v7215_v37  ;;  %9243 = vmatpush1.bf16.msra.mxu0 %v10480_v49  ;;  %10011 = vst [vmem:[%s11467_s20 + $0x3f8] sm:$0xff] %v7256_v46  ;;  %9284 = vmatpush1.bf16.msra.mxu1 %v10482_v34  ;;  %v10491_v51 = vcombine.high %v333_v35, %v461_v22  ;;  %v590_v34 = vld [vmem:[#allocation5 + $0xbb0] sm:$0xff]  ;;  %v1335_v54 = vrot.slane %v12064_v52, %v11477_v15 }
 0x21f   : > { %v7217_v3 = vpop.f32.mrf.mxu0  ;;  %9322 = vmatprep.subr.bf16.mxu0 %v10741_v53  ;;  %v7258_v57 = vpop.f32.mrf.mxu1  ;;  %9363 = vmatprep.subr.bf16.mxu1 %v10743_v55  ;;  %v718_v53 = vld [vmem:[#allocation5 + $0xfb0] sm:$0xff]  ;;  %v591_v55 = vld [vmem:[#allocation5 + $0xbb8] sm:$0xff]  ;;  %v10488_v60 = vcombine.low %v332_v30, %v460_v31  ;;  %v10490_v50 = vcombine.low %v333_v35, %v461_v22  ;;  %v721_v30 = vld [vmem:[#allocation5 + $0xfc8] sm:$0xff] }
 0x221   : > { %v7294_v14 = vpop.f32.mrf.mxu0  ;;  %10880 = vmatmul.mubr.msk.bf16.vlgmr.msra.gmra.mxu0 %vm4632_vm0, %v11281_v26  ;;  %v7335_v21 = vpop.f32.mrf.mxu1  ;;  %10881 = vmatmul.mubr.msk.bf16.vlgmr.msra.gmra.mxu1 %vm4632_vm0, %v11281_v26 }
 0x222   : > { %v7295_v19 = vadd.f32 %v7294_v14, %v1307_v63  ;;  %9323 = vmatpush1.bf16.msra.mxu0 %v10740_v2  ;;  %v7336_v23 = vadd.f32 %v7335_v21, %v1315_v4  ;;  %9364 = vmatpush1.bf16.msra.mxu1 %v10742_v6  ;;  %v12102_v63 = vld [vmem:[#allocation7 + $0x88] sm:$0xff]  ;;  %v10749_v2 = vcombine.high %v590_v34, %v718_v53  ;;  %v334_v6 = vld [vmem:[#allocation5 + $0x3b0] sm:$0xff] }
 0x223   : > { %v7296_v9 = vpop.f32.mrf.mxu0  ;;  %9324 = vmatprep.subr.bf16.mxu0 %v10485_v8  ;;  %v7337_v28 = vpop.f32.mrf.mxu1  ;;  %9365 = vmatprep.subr.bf16.mxu1 %v10487_v59  ;;  %v10751_v4 = vcombine.high %v591_v55, %v719_v56  ;;  %v462_v8 = vld [vmem:[#allocation5 + $0x7b0] sm:$0xff]  ;;  %v335_v59 = vld [vmem:[#allocation5 + $0x3b8] sm:$0xff]  ;;  %v1339_v14 = vrot.slane %v12102_v63, %v11428_v36  ;;  %v1347_v18 = vrot.slane %v12102_v63, %v11433_v39 }
 0x224   : > { %10012 = vst [vmem:[%s11467_s20 + $0x400] sm:$0xff] %v7295_v19  ;;  %v7297_v27 = vadd.f32 %v7296_v9, %v1311_v11  ;;  %9342 = vmatprep.mubr.bf16.mxu0 %v11127_v0  ;;  %10014 = vst [vmem:[%s11467_s20 + $0x410] sm:$0xff] %v7336_v23  ;;  %v7338_v33 = vadd.f32 %v7337_v28, %v1319_v16  ;;  %9383 = vmatprep.mubr.bf16.mxu1 %v11127_v0 }
 0x225   : > { %v7298_v20 = vpop.f32.mrf.mxu0  ;;  %v7339_v40 = vpop.f32.mrf.mxu1  ;;  %v10748_v16 = vcombine.low %v590_v34, %v718_v53  ;;  %v10750_v19 = vcombine.low %v591_v55, %v719_v56  ;;  %v10493_v21 = vcombine.high %v334_v6, %v462_v8  ;;  %v1343_v23 = vrot.slane %v12102_v63, %v11437_v42  ;;  %v465_v34 = vld [vmem:[#allocation5 + $0x7c8] sm:$0xff] }
 0x226   : > { %10013 = vst [vmem:[%s11467_s20 + $0x408] sm:$0xff] %v7297_v27  ;;  %9325 = vmatpush1.bf16.msra.mxu0 %v10484_v7  ;;  %10015 = vst [vmem:[%s11467_s20 + $0x418] sm:$0xff] %v7338_v33  ;;  %9366 = vmatpush1.bf16.msra.mxu1 %v10486_v25  ;;  %v10495_v9 = vcombine.high %v335_v59, %v463_v13  ;;  %v592_v25 = vld [vmem:[#allocation5 + $0xbc0] sm:$0xff]  ;;  %v1351_v28 = vrot.slane %v12102_v63, %v11441_v45 }
 0x227   : > { %v7299_v43 = vpop.f32.mrf.mxu0  ;;  %9404 = vmatprep.subr.bf16.mxu0 %v10745_v12  ;;  %v7340_v49 = vpop.f32.mrf.mxu1  ;;  %9445 = vmatprep.subr.bf16.mxu1 %v10747_v29  ;;  %v720_v12 = vld [vmem:[#allocation5 + $0xfc0] sm:$0xff]  ;;  %v593_v29 = vld [vmem:[#allocation5 + $0xbc8] sm:$0xff]  ;;  %v10492_v20 = vcombine.low %v334_v6, %v462_v8  ;;  %v10494_v40 = vcombine.low %v335_v59, %v463_v13  ;;  %v1363_v56 = vrot.slane %v12102_v63, %v11462_v5  ;;  %v723_v6 = vld [vmem:[#allocation5 + $0xfd8] sm:$0xff] }
 0x229   : > { %v7376_v37 = vpop.f32.mrf.mxu0  ;;  %10882 = vmatmul.mubr.msk.bf16.vlgmr.msra.gmra.mxu0 %vm4632_vm0, %v11281_v26  ;;  %v7417_v46 = vpop.f32.mrf.mxu1  ;;  %10883 = vmatmul.mubr.msk.bf16.vlgmr.msra.gmra.mxu1 %vm4632_vm0, %v11281_v26 }
 0x22a   : > { %v7377_v58 = vadd.f32 %v7376_v37, %v1323_v24  ;;  %9405 = vmatpush1.bf16.msra.mxu0 %v10744_v41  ;;  %v7418_v48 = vadd.f32 %v7417_v46, %v1331_v44  ;;  %9446 = vmatpush1.bf16.msra.mxu1 %v10746_v47  ;;  %v10753_v24 = vcombine.high %v592_v25, %v720_v12  ;;  %v336_v47 = vld [vmem:[#allocation5 + $0x3c0] sm:$0xff] }
 0x22b   : > { %v7378_v62 = vpop.f32.mrf.mxu0  ;;  %9406 = vmatprep.subr.bf16.mxu0 %v10489_v38  ;;  %v7419_v3 = vpop.f32.mrf.mxu1  ;;  %9447 = vmatprep.subr.bf16.mxu1 %v10491_v51  ;;  %v10755_v44 = vcombine.high %v593_v29, %v721_v30  ;;  %v464_v38 = vld [vmem:[#allocation5 + $0x7c0] sm:$0xff]  ;;  %v337_v51 = vld [vmem:[#allocation5 + $0x3c8] sm:$0xff]  ;;  %v1355_v37 = vrot.slane %v12102_v63, %v11459_v1 }
 0x22c   : > { %10016 = vst [vmem:[%s11467_s20 + $0x420] sm:$0xff] %v7377_v58  ;;  %v7379_v52 = vadd.f32 %v7378_v62, %v1327_v32  ;;  %9424 = vmatprep.mubr.bf16.mxu0 %v11127_v0  ;;  %10018 = vst [vmem:[%s11467_s20 + $0x430] sm:$0xff] %v7418_v48  ;;  %v7420_v57 = vadd.f32 %v7419_v3, %v1335_v54  ;;  %9465 = vmatprep.mubr.bf16.mxu1 %v11127_v0 }
 0x22d   : > { %v7380_v11 = vpop.f32.mrf.mxu0  ;;  %v7421_v61 = vpop.f32.mrf.mxu1  ;;  %v10752_v54 = vcombine.low %v592_v25, %v720_v12  ;;  %v10754_v58 = vcombine.low %v593_v29, %v721_v30  ;;  %v10497_v46 = vcombine.high %v336_v47, %v464_v38  ;;  %v1359_v48 = vrot.slane %v12102_v63, %v11472_v10  ;;  %v467_v25 = vld [vmem:[#allocation5 + $0x7d8] sm:$0xff] }
 0x22e   : > { %10017 = vst [vmem:[%s11467_s20 + $0x428] sm:$0xff] %v7379_v52  ;;  %9407 = vmatpush1.bf16.msra.mxu0 %v10488_v60  ;;  %10019 = vst [vmem:[%s11467_s20 + $0x438] sm:$0xff] %v7420_v57  ;;  %9448 = vmatpush1.bf16.msra.mxu1 %v10490_v50  ;;  %v10499_v62 = vcombine.high %v337_v51, %v465_v34  ;;  %v594_v50 = vld [vmem:[#allocation5 + $0xbd0] sm:$0xff]  ;;  %v1367_v3 = vrot.slane %v12102_v63, %v11477_v15 }
 0x22f   : > { %v7381_v17 = vpop.f32.mrf.mxu0  ;;  %9486 = vmatprep.subr.bf16.mxu0 %v10749_v2  ;;  %v7422_v7 = vpop.f32.mrf.mxu1  ;;  %9527 = vmatprep.subr.bf16.mxu1 %v10751_v4  ;;  %v722_v2 = vld [vmem:[#allocation5 + $0xfd0] sm:$0xff]  ;;  %v595_v4 = vld [vmem:[#allocation5 + $0xbd8] sm:$0xff]  ;;  %v10496_v11 = vcombine.low %v336_v47, %v464_v38  ;;  %v10498_v61 = vcombine.low %v337_v51, %v465_v34  ;;  %v725_v47 = vld [vmem:[#allocation5 + $0xfe8] sm:$0xff] }
 0x231   : > { %v7458_v27 = vpop.f32.mrf.mxu0  ;;  %10884 = vmatmul.mubr.msk.bf16.vlgmr.msra.gmra.mxu0 %vm4632_vm0, %v11281_v26  ;;  %v7499_v33 = vpop.f32.mrf.mxu1  ;;  %10885 = vmatmul.mubr.msk.bf16.vlgmr.msra.gmra.mxu1 %vm4632_vm0, %v11281_v26 }
 0x232   : > { %v7459_v31 = vadd.f32 %v7458_v27, %v1339_v14  ;;  %9487 = vmatpush1.bf16.msra.mxu0 %v10748_v16  ;;  %v7500_v35 = vadd.f32 %v7499_v33, %v1347_v18  ;;  %9528 = vmatpush1.bf16.msra.mxu1 %v10750_v19  ;;  %v12140_v14 = vld [vmem:[#allocation7 + $0x90] sm:$0xff]  ;;  %v10757_v16 = vcombine.high %v594_v50, %v722_v2 }
 0x233   : > { %v7460_v22 = vpop.f32.mrf.mxu0  ;;  %9488 = vmatprep.subr.bf16.mxu0 %v10493_v21  ;;  %v7501_v43 = vpop.f32.mrf.mxu1  ;;  %9529 = vmatprep.subr.bf16.mxu1 %v10495_v9  ;;  %v10759_v18 = vcombine.high %v595_v4, %v723_v6  ;;  %v338_v19 = vld [vmem:[#allocation5 + $0x3d0] sm:$0xff]  ;;  %v339_v9 = vld [vmem:[#allocation5 + $0x3d8] sm:$0xff]  ;;  %v1371_v27 = vrot.slane %v12140_v14, %v11428_v36  ;;  %v1379_v30 = vrot.slane %v12140_v14, %v11433_v39 }
 0x234   : > { %10020 = vst [vmem:[%s11467_s20 + $0x440] sm:$0xff] %v7459_v31  ;;  %v7461_v41 = vadd.f32 %v7460_v22, %v1343_v23  ;;  %9506 = vmatprep.mubr.bf16.mxu0 %v11127_v0  ;;  %10022 = vst [vmem:[%s11467_s20 + $0x450] sm:$0xff] %v7500_v35  ;;  %v7502_v49 = vadd.f32 %v7501_v43, %v1351_v28  ;;  %9547 = vmatprep.mubr.bf16.mxu1 %v11127_v0  ;;  %v466_v21 = vld [vmem:[#allocation5 + $0x7d0] sm:$0xff] }
 0x235   : > { %v7462_v32 = vpop.f32.mrf.mxu0  ;;  %v7503_v53 = vpop.f32.mrf.mxu1  ;;  %v10756_v28 = vcombine.low %v594_v50, %v722_v2  ;;  %v10758_v31 = vcombine.low %v595_v4, %v723_v6  ;;  %v10501_v33 = vcombine.high %v338_v19, %v466_v21  ;;  %v1375_v35 = vrot.slane %v12140_v14, %v11437_v42  ;;  %v469_v50 = vld [vmem:[#allocation5 + $0x7e8] sm:$0xff] }
 0x236   : > { %10021 = vst [vmem:[%s11467_s20 + $0x448] sm:$0xff] %v7461_v41  ;;  %9489 = vmatpush1.bf16.msra.mxu0 %v10492_v20  ;;  %10023 = vst [vmem:[%s11467_s20 + $0x458] sm:$0xff] %v7502_v49  ;;  %9530 = vmatpush1.bf16.msra.mxu1 %v10494_v40  ;;  %v10503_v22 = vcombine.high %v339_v9, %v467_v25  ;;  %v596_v40 = vld [vmem:[#allocation5 + $0xbe0] sm:$0xff]  ;;  %v1383_v43 = vrot.slane %v12140_v14, %v11441_v45 }
 0x237   : > { %v7463_v55 = vpop.f32.mrf.mxu0  ;;  %9568 = vmatprep.subr.bf16.mxu0 %v10753_v24  ;;  %v7504_v60 = vpop.f32.mrf.mxu1  ;;  %9609 = vmatprep.subr.bf16.mxu1 %v10755_v44  ;;  %v724_v24 = vld [vmem:[#allocation5 + $0xfe0] sm:$0xff]  ;;  %v597_v44 = vld [vmem:[#allocation5 + $0xbe8] sm:$0xff]  ;;  %v10500_v32 = vcombine.low %v338_v19, %v466_v21  ;;  %v10502_v53 = vcombine.low %v339_v9, %v467_v25  ;;  %v1395_v6 = vrot.slane %v12140_v14, %v11462_v5  ;;  %v727_v19 = vld [vmem:[#allocation5 + $0xff8] sm:$0xff] }
 0x239   : > { %v7540_v52 = vpop.f32.mrf.mxu0  ;;  %10886 = vmatmul.mubr.msk.bf16.vlgmr.msra.gmra.mxu0 %vm4632_vm0, %v11281_v26  ;;  %v7581_v57 = vpop.f32.mrf.mxu1  ;;  %10887 = vmatmul.mubr.msk.bf16.vlgmr.msra.gmra.mxu1 %vm4632_vm0, %v11281_v26 }
 0x23a   : > { %v7541_v8 = vadd.f32 %v7540_v52, %v1355_v37  ;;  %9569 = vmatpush1.bf16.msra.mxu0 %v10752_v54  ;;  %v7582_v59 = vadd.f32 %v7581_v57, %v1363_v56  ;;  %9610 = vmatpush1.bf16.msra.mxu1 %v10754_v58  ;;  %v10761_v37 = vcombine.high %v596_v40, %v724_v24  ;;  %v340_v58 = vld [vmem:[#allocation5 + $0x3e0] sm:$0xff] }
 0x23b   : > { %v7542_v13 = vpop.f32.mrf.mxu0  ;;  %9570 = vmatprep.subr.bf16.mxu0 %v10497_v46  ;;  %v7583_v17 = vpop.f32.mrf.mxu1  ;;  %9611 = vmatprep.subr.bf16.mxu1 %v10499_v62  ;;  %v10763_v56 = vcombine.high %v597_v44, %v725_v47  ;;  %v468_v46 = vld [vmem:[#allocation5 + $0x7e0] sm:$0xff]  ;;  %v341_v62 = vld [vmem:[#allocation5 + $0x3e8] sm:$0xff]  ;;  %v1387_v52 = vrot.slane %v12140_v14, %v11459_v1 }
 0x23c   : > { %10024 = vst [vmem:[%s11467_s20 + $0x460] sm:$0xff] %v7541_v8  ;;  %v7543_v63 = vadd.f32 %v7542_v13, %v1359_v48  ;;  %9588 = vmatprep.mubr.bf16.mxu0 %v11127_v0  ;;  %10026 = vst [vmem:[%s11467_s20 + $0x470] sm:$0xff] %v7582_v59  ;;  %v7584_v7 = vadd.f32 %v7583_v17, %v1367_v3  ;;  %9629 = vmatprep.mubr.bf16.mxu1 %v11127_v0 }
 0x23d   : > { %v7544_v23 = vpop.f32.mrf.mxu0  ;;  %v7585_v12 = vpop.f32.mrf.mxu1  ;;  %v10760_v3 = vcombine.low %v596_v40, %v724_v24  ;;  %v10762_v8 = vcombine.low %v597_v44, %v725_v47  ;;  %v10505_v57 = vcombine.high %v340_v58, %v468_v46  ;;  %v1391_v59 = vrot.slane %v12140_v14, %v11472_v10  ;;  %v471_v40 = vld [vmem:[#allocation5 + $0x7f8] sm:$0xff] }
 0x23e   : > { %10025 = vst [vmem:[%s11467_s20 + $0x468] sm:$0xff] %v7543_v63  ;;  %9571 = vmatpush1.bf16.msra.mxu0 %v10496_v11  ;;  %10027 = vst [vmem:[%s11467_s20 + $0x478] sm:$0xff] %v7584_v7  ;;  %9612 = vmatpush1.bf16.msra.mxu1 %v10498_v61  ;;  %v10507_v13 = vcombine.high %v341_v62, %v469_v50  ;;  %v598_v61 = vld [vmem:[#allocation5 + $0xbf0] sm:$0xff]  ;;  %v1399_v17 = vrot.slane %v12140_v14, %v11477_v15 }
 0x23f   : > { %v7545_v29 = vpop.f32.mrf.mxu0  ;;  %9650 = vmatprep.subr.bf16.mxu0 %v10757_v16  ;;  %v7586_v20 = vpop.f32.mrf.mxu1  ;;  %9691 = vmatprep.subr.bf16.mxu1 %v10759_v18  ;;  %v726_v16 = vld [vmem:[#allocation5 + $0xff0] sm:$0xff]  ;;  %v599_v18 = vld [vmem:[#allocation5 + $0xbf8] sm:$0xff]  ;;  %v10504_v23 = vcombine.low %v340_v58, %v468_v46  ;;  %v10506_v12 = vcombine.low %v341_v62, %v469_v50 }
 0x241   : > { %v7622_v41 = vpop.f32.mrf.mxu0  ;;  %10888 = vmatmul.mubr.msk.bf16.vlgmr.msra.gmra.mxu0 %vm4632_vm0, %v11281_v26  ;;  %v7663_v49 = vpop.f32.mrf.mxu1  ;;  %10889 = vmatmul.mubr.msk.bf16.vlgmr.msra.gmra.mxu1 %vm4632_vm0, %v11281_v26 }
 0x242   : > { %v7623_v38 = vadd.f32 %v7622_v41, %v1371_v27  ;;  %9651 = vmatpush1.bf16.msra.mxu0 %v10756_v28  ;;  %v7664_v51 = vadd.f32 %v7663_v49, %v1379_v30  ;;  %9692 = vmatpush1.bf16.msra.mxu1 %v10758_v31  ;;  %v12178_v27 = vld [vmem:[#allocation7 + $0x98] sm:$0xff]  ;;  %v10765_v28 = vcombine.high %v598_v61, %v726_v16  ;;  %v342_v31 = vld [vmem:[#allocation5 + $0x3f0] sm:$0xff] }
 0x243   : > { %v7624_v34 = vpop.f32.mrf.mxu0  ;;  %9652 = vmatprep.subr.bf16.mxu0 %v10501_v33  ;;  %v7665_v55 = vpop.f32.mrf.mxu1  ;;  %9693 = vmatprep.subr.bf16.mxu1 %v10503_v22  ;;  %v10767_v30 = vcombine.high %v599_v18, %v727_v19  ;;  %v470_v33 = vld [vmem:[#allocation5 + $0x7f0] sm:$0xff]  ;;  %v343_v22 = vld [vmem:[#allocation5 + $0x3f8] sm:$0xff]  ;;  %v1403_v41 = vrot.slane %v12178_v27, %v11428_v36  ;;  %v1411_v47 = vrot.slane %v12178_v27, %v11433_v39 }
 0x244   : > { %10028 = vst [vmem:[%s11467_s20 + $0x480] sm:$0xff] %v7623_v38  ;;  %v7625_v54 = vadd.f32 %v7624_v34, %v1375_v35  ;;  %9670 = vmatprep.mubr.bf16.mxu0 %v11127_v0  ;;  %10030 = vst [vmem:[%s11467_s20 + $0x490] sm:$0xff] %v7664_v51  ;;  %v7666_v60 = vadd.f32 %v7665_v55, %v1383_v43  ;;  %9711 = vmatprep.mubr.bf16.mxu1 %v11127_v0 }
 0x245   : > { %v7626_v48 = vpop.f32.mrf.mxu0  ;;  %v7667_v2 = vpop.f32.mrf.mxu1  ;;  %v10764_v43 = vcombine.low %v598_v61, %v726_v16  ;;  %v10766_v38 = vcombine.low %v599_v18, %v727_v19  ;;  %v10509_v49 = vcombine.high %v342_v31, %v470_v33  ;;  %v1407_v51 = vrot.slane %v12178_v27, %v11437_v42 }
 0x246   : > { %10029 = vst [vmem:[%s11467_s20 + $0x488] sm:$0xff] %v7625_v54  ;;  %9653 = vmatpush1.bf16.msra.mxu0 %v10500_v32  ;;  %10031 = vst [vmem:[%s11467_s20 + $0x498] sm:$0xff] %v7666_v60  ;;  %9694 = vmatpush1.bf16.msra.mxu1 %v10502_v53  ;;  %v10511_v34 = vcombine.high %v343_v22, %v471_v40  ;;  %v10510_v60 = vcombine.low %v343_v22, %v471_v40 }
 0x247   : > { %v7627_v4 = vpop.f32.mrf.mxu0  ;;  %9732 = vmatprep.subr.bf16.mxu0 %v10761_v37  ;;  %v7668_v11 = vpop.f32.mrf.mxu1  ;;  %9773 = vmatprep.subr.bf16.mxu1 %v10763_v56  ;;  %v1415_v37 = vrot.slane %v12178_v27, %v11441_v45  ;;  %v10508_v56 = vcombine.low %v342_v31, %v470_v33 }
 0x248   : > { %v1431_v11 = vrot.slane %v12178_v27, %v11477_v15 }
 0x249   : > { %v7704_v63 = vpop.f32.mrf.mxu0  ;;  %10890 = vmatmul.mubr.msk.bf16.vlgmr.msra.gmra.mxu0 %vm4632_vm0, %v11281_v26  ;;  %v7745_v7 = vpop.f32.mrf.mxu1  ;;  %10891 = vmatmul.mubr.msk.bf16.vlgmr.msra.gmra.mxu1 %vm4632_vm0, %v11281_v26 }
 0x24a   : > { %v7705_v21 = vadd.f32 %v7704_v63, %v1387_v52  ;;  %9733 = vmatpush1.bf16.msra.mxu0 %v10760_v3  ;;  %v7746_v9 = vadd.f32 %v7745_v7, %v1395_v6  ;;  %9774 = vmatpush1.bf16.msra.mxu1 %v10762_v8  ;;  %v1419_v3 = vrot.slane %v12178_v27, %v11459_v1  ;;  %v748_v63 = vld [vmem:[#allocation7 + $0xa0] sm:$0xff] }
 0x24b   : > { %v7706_v25 = vpop.f32.mrf.mxu0  ;;  %9734 = vmatprep.subr.bf16.mxu0 %v10505_v57  ;;  %v7747_v29 = vpop.f32.mrf.mxu1  ;;  %9775 = vmatprep.subr.bf16.mxu1 %v10507_v13  ;;  %v1427_v6 = vrot.slane %v12178_v27, %v11462_v5  ;;  %v1423_v57 = vrot.slane %v12178_v27, %v11472_v10 }
 0x24c   : > { %10032 = vst [vmem:[%s11467_s20 + $0x4a0] sm:$0xff] %v7705_v21  ;;  %v7707_v14 = vadd.f32 %v7706_v25, %v1391_v59  ;;  %9752 = vmatprep.mubr.bf16.mxu0 %v11127_v0  ;;  %10034 = vst [vmem:[%s11467_s20 + $0x4b0] sm:$0xff] %v7746_v9  ;;  %v7748_v20 = vadd.f32 %v7747_v29, %v1399_v17  ;;  %9793 = vmatprep.mubr.bf16.mxu1 %v11127_v0 }
 0x24d   : > { %v7708_v35 = vpop.f32.mrf.mxu0  ;;  %v7749_v24 = vpop.f32.mrf.mxu1 }
 0x24e   : > { %10033 = vst [vmem:[%s11467_s20 + $0x4a8] sm:$0xff] %v7707_v14  ;;  %9735 = vmatpush1.bf16.msra.mxu0 %v10504_v23  ;;  %10035 = vst [vmem:[%s11467_s20 + $0x4b8] sm:$0xff] %v7748_v20  ;;  %9776 = vmatpush1.bf16.msra.mxu1 %v10506_v12  ;;  %v1435_v23 = vrot.slane %v748_v63, %v11428_v36  ;;  %v1439_v12 = vrot.slane %v748_v63, %v11437_v42 }
 0x24f   : > { %v7709_v44 = vpop.f32.mrf.mxu0  ;;  %9814 = vmatprep.subr.bf16.mxu0 %v10765_v28  ;;  %v7750_v32 = vpop.f32.mrf.mxu1  ;;  %9855 = vmatprep.subr.bf16.mxu1 %v10767_v30  ;;  %v1447_v28 = vrot.slane %v748_v63, %v11441_v45  ;;  %v1451_v24 = vrot.slane %v748_v63, %v11459_v1 }
 0x251   : > { %v7786_v53 = vpop.f32.mrf.mxu0  ;;  %10892 = vmatmul.mubr.msk.bf16.vlgmr.msra.gmra.mxu0 %vm4632_vm0, %v11281_v26  ;;  %v7827_v55 = vpop.f32.mrf.mxu1  ;;  %10893 = vmatmul.mubr.msk.bf16.vlgmr.msra.gmra.mxu1 %vm4632_vm0, %v11281_v26 }
 0x252   : > { %v7787_v54 = vadd.f32 %v7786_v53, %v1403_v41  ;;  %9815 = vmatpush1.bf16.msra.mxu0 %v10764_v43  ;;  %v7828_v58 = vadd.f32 %v7827_v55, %v1411_v47  ;;  %9856 = vmatpush1.bf16.msra.mxu1 %v10766_v38  ;;  %v1459_v43 = vrot.slane %v748_v63, %v11462_v5 }
 0x253   : > { %v7788_v46 = vpop.f32.mrf.mxu0  ;;  %9816 = vmatprep.subr.bf16.mxu0 %v10509_v49  ;;  %v7829_v62 = vpop.f32.mrf.mxu1  ;;  %9857 = vmatprep.subr.bf16.mxu1 %v10511_v34  ;;  %v1455_v47 = vrot.slane %v748_v63, %v11472_v10  ;;  %v1463_v49 = vrot.slane %v748_v63, %v11477_v15 }
 0x254   : > { %10036 = vst [vmem:[%s11467_s20 + $0x4c0] sm:$0xff] %v7787_v54  ;;  %v7789_v48 = vadd.f32 %v7788_v46, %v1407_v51  ;;  %9834 = vmatprep.mubr.bf16.mxu0 %v11127_v0  ;;  %10038 = vst [vmem:[%s11467_s20 + $0x4d0] sm:$0xff] %v7828_v58  ;;  %v7830_v50 = vadd.f32 %v7829_v62, %v1415_v37  ;;  %9875 = vmatprep.mubr.bf16.mxu1 %v11127_v0  ;;  %v749_v37 = vld [vmem:[#allocation7 + $0xa8] sm:$0xff] }
 0x255   : > { %v7790_v2 = vpop.f32.mrf.mxu0  ;;  %v7831_v52 = vpop.f32.mrf.mxu1  ;;  %v1475_v62 = vrot.slane %v749_v37, %v11433_v39 }
 0x256   : > { %10037 = vst [vmem:[%s11467_s20 + $0x4c8] sm:$0xff] %v7789_v48  ;;  %9817 = vmatpush1.bf16.msra.mxu0 %v10508_v56  ;;  %10039 = vst [vmem:[%s11467_s20 + $0x4d8] sm:$0xff] %v7830_v50  ;;  %9858 = vmatpush1.bf16.msra.mxu1 %v10510_v60  ;;  %v1467_v60 = vrot.slane %v749_v37, %v11428_v36  ;;  %v1471_v2 = vrot.slane %v749_v37, %v11437_v42 }
 0x257   : > { %v7791_v4 = vpop.f32.mrf.mxu0  ;;  %v7832_v8 = vpop.f32.mrf.mxu1 }
 0x259   : > { %v7868_v0 = vpop.f32.mrf.mxu0  ;;  %10894 = vmatmul.mubr.msk.bf16.vlgmr.msra.gmra.mxu0 %vm4632_vm0, %v11281_v26  ;;  %v7909_v13 = vpop.f32.mrf.mxu1  ;;  %10895 = vmatmul.mubr.msk.bf16.vlgmr.msra.gmra.mxu1 %vm4632_vm0, %v11281_v26  ;;  %v1443_v26 = vrot.slane %v748_v63, %v11433_v39 }
 0x25a   : > { %v7869_v59 = vadd.f32 %v7868_v0, %v1419_v3  ;;  %v7910_v61 = vadd.f32 %v7909_v13, %v1427_v6  ;;  %v1479_v3 = vrot.slane %v749_v37, %v11441_v45 }
 0x25b   : > { %v7870_v16 = vpop.f32.mrf.mxu0  ;;  %v7911_v18 = vpop.f32.mrf.mxu1 }
 0x25c   : > { %10040 = vst [vmem:[%s11467_s20 + $0x4e0] sm:$0xff] %v7869_v59  ;;  %v7871_v17 = vadd.f32 %v7870_v16, %v1423_v57  ;;  %10042 = vst [vmem:[%s11467_s20 + $0x4f0] sm:$0xff] %v7910_v61  ;;  %v7912_v19 = vadd.f32 %v7911_v18, %v1431_v11  ;;  %v1483_v16 = vrot.slane %v749_v37, %v11459_v1 }
 0x25d   : > { %v7872_v21 = vpop.f32.mrf.mxu0  ;;  %v7913_v7 = vpop.f32.mrf.mxu1 }
 0x25e   : > { %10041 = vst [vmem:[%s11467_s20 + $0x4e8] sm:$0xff] %v7871_v17  ;;  %10043 = vst [vmem:[%s11467_s20 + $0x4f8] sm:$0xff] %v7912_v19  ;;  %v1491_v17 = vrot.slane %v749_v37, %v11462_v5  ;;  %v1487_v19 = vrot.slane %v749_v37, %v11472_v10  ;;  %v1495_v7 = vrot.slane %v749_v37, %v11477_v15 }
 0x25f   : > { %v7873_v9 = vpop.f32.mrf.mxu0  ;;  %v7914_v25 = vpop.f32.mrf.mxu1 }
 0x261   : > { %v7950_v27 = vpop.f32.mrf.mxu0  ;;  %v7991_v29 = vpop.f32.mrf.mxu1 }
 0x262   : > { %v7951_v14 = vadd.f32 %v7950_v27, %v1435_v23  ;;  %v7992_v30 = vadd.f32 %v7991_v29, %v1443_v26 }
 0x263   : > { %v7952_v31 = vpop.f32.mrf.mxu0  ;;  %v7993_v20 = vpop.f32.mrf.mxu1 }
 0x264   : > { %10044 = vst [vmem:[%s11467_s20 + $0x500] sm:$0xff] %v7951_v14  ;;  %v7953_v33 = vadd.f32 %v7952_v31, %v1439_v12  ;;  %10046 = vst [vmem:[%s11467_s20 + $0x510] sm:$0xff] %v7992_v30  ;;  %v7994_v35 = vadd.f32 %v7993_v20, %v1447_v28  ;;  %v750_v12 = vld [vmem:[#allocation7 + $0xb0] sm:$0xff] }
 0x265   : > { %v7954_v22 = vpop.f32.mrf.mxu0  ;;  %v7995_v40 = vpop.f32.mrf.mxu1  ;;  %v1499_v31 = vrot.slane %v750_v12, %v11428_v36  ;;  %v1507_v20 = vrot.slane %v750_v12, %v11433_v39 }
 0x266   : > { %10045 = vst [vmem:[%s11467_s20 + $0x508] sm:$0xff] %v7953_v33  ;;  %10047 = vst [vmem:[%s11467_s20 + $0x518] sm:$0xff] %v7994_v35  ;;  %v1503_v22 = vrot.slane %v750_v12, %v11437_v42 }
 0x267   : > { %v7955_v41 = vpop.f32.mrf.mxu0  ;;  %v7996_v44 = vpop.f32.mrf.mxu1 }
 0x269   : > { %v8032_v38 = vpop.f32.mrf.mxu0  ;;  %v8073_v51 = vpop.f32.mrf.mxu1 }
 0x26a   : > { %v8033_v32 = vadd.f32 %v8032_v38, %v1451_v24  ;;  %v8074_v34 = vadd.f32 %v8073_v51, %v1459_v43  ;;  %v1511_v24 = vrot.slane %v750_v12, %v11441_v45 }
 0x26b   : > { %v8034_v53 = vpop.f32.mrf.mxu0  ;;  %v8075_v55 = vpop.f32.mrf.mxu1 }
 0x26c   : > { %10048 = vst [vmem:[%s11467_s20 + $0x520] sm:$0xff] %v8033_v32  ;;  %v8035_v54 = vadd.f32 %v8034_v53, %v1455_v47  ;;  %10050 = vst [vmem:[%s11467_s20 + $0x530] sm:$0xff] %v8074_v34  ;;  %v8076_v56 = vadd.f32 %v8075_v55, %v1463_v49  ;;  %v1515_v53 = vrot.slane %v750_v12, %v11459_v1 }
 0x26d   : > { %v8036_v58 = vpop.f32.mrf.mxu0  ;;  %v8077_v46 = vpop.f32.mrf.mxu1 }
 0x26e   : > { %10049 = vst [vmem:[%s11467_s20 + $0x528] sm:$0xff] %v8035_v54  ;;  %10051 = vst [vmem:[%s11467_s20 + $0x538] sm:$0xff] %v8076_v56  ;;  %v1523_v54 = vrot.slane %v750_v12, %v11462_v5  ;;  %v1519_v56 = vrot.slane %v750_v12, %v11472_v10  ;;  %v1527_v46 = vrot.slane %v750_v12, %v11477_v15 }
 0x26f   : > { %v8037_v48 = vpop.f32.mrf.mxu0  ;;  %v8078_v50 = vpop.f32.mrf.mxu1 }
 0x271   : > { %v8114_v52 = vpop.f32.mrf.mxu0  ;;  %v8155_v6 = vpop.f32.mrf.mxu1 }
 0x272   : > { %v8115_v4 = vadd.f32 %v8114_v52, %v1467_v60  ;;  %v8156_v8 = vadd.f32 %v8155_v6, %v1475_v62 }
 0x273   : > { %v8116_v57 = vpop.f32.mrf.mxu0  ;;  %v8157_v11 = vpop.f32.mrf.mxu1 }
 0x274   : > { %10052 = vst [vmem:[%s11467_s20 + $0x540] sm:$0xff] %v8115_v4  ;;  %v8117_v0 = vadd.f32 %v8116_v57, %v1471_v2  ;;  %10054 = vst [vmem:[%s11467_s20 + $0x550] sm:$0xff] %v8156_v8  ;;  %v8158_v59 = vadd.f32 %v8157_v11, %v1479_v3  ;;  %v751_v2 = vld [vmem:[#allocation7 + $0xb8] sm:$0xff] }
 0x275   : > { %v8118_v13 = vpop.f32.mrf.mxu0  ;;  %v8159_v61 = vpop.f32.mrf.mxu1  ;;  %v1531_v57 = vrot.slane %v751_v2, %v11428_v36  ;;  %v1539_v11 = vrot.slane %v751_v2, %v11433_v39 }
 0x276   : > { %10053 = vst [vmem:[%s11467_s20 + $0x548] sm:$0xff] %v8117_v0  ;;  %10055 = vst [vmem:[%s11467_s20 + $0x558] sm:$0xff] %v8158_v59  ;;  %v1535_v13 = vrot.slane %v751_v2, %v11437_v42 }
 0x277   : > { %v8119_v63 = vpop.f32.mrf.mxu0  ;;  %v8160_v18 = vpop.f32.mrf.mxu1 }
 0x279   : > { %v8196_v21 = vpop.f32.mrf.mxu0  ;;  %v8237_v9 = vpop.f32.mrf.mxu1 }
 0x27a   : > { %v8197_v23 = vadd.f32 %v8196_v21, %v1483_v16  ;;  %v8238_v26 = vadd.f32 %v8237_v9, %v1491_v17  ;;  %v1543_v16 = vrot.slane %v751_v2, %v11441_v45 }
 0x27b   : > { %v8198_v25 = vpop.f32.mrf.mxu0  ;;  %v8239_v28 = vpop.f32.mrf.mxu1 }
 0x27c   : > { %10056 = vst [vmem:[%s11467_s20 + $0x560] sm:$0xff] %v8197_v23  ;;  %v8199_v27 = vadd.f32 %v8198_v25, %v1487_v19  ;;  %10058 = vst [vmem:[%s11467_s20 + $0x570] sm:$0xff] %v8238_v26  ;;  %v8240_v14 = vadd.f32 %v8239_v28, %v1495_v7  ;;  %v1547_v25 = vrot.slane %v751_v2, %v11459_v1 }
 0x27d   : > { %v8200_v29 = vpop.f32.mrf.mxu0  ;;  %v8241_v30 = vpop.f32.mrf.mxu1 }
 0x27e   : > { %10057 = vst [vmem:[%s11467_s20 + $0x568] sm:$0xff] %v8199_v27  ;;  %10059 = vst [vmem:[%s11467_s20 + $0x578] sm:$0xff] %v8240_v14  ;;  %v1555_v27 = vrot.slane %v751_v2, %v11462_v5  ;;  %v1551_v14 = vrot.slane %v751_v2, %v11472_v10  ;;  %v1559_v30 = vrot.slane %v751_v2, %v11477_v15 }
 0x27f   : > { %v8201_v33 = vpop.f32.mrf.mxu0  ;;  %v8242_v35 = vpop.f32.mrf.mxu1 }
 0x281   : > { %v8278_v40 = vpop.f32.mrf.mxu0  ;;  %v8319_v43 = vpop.f32.mrf.mxu1 }
 0x282   : > { %v8279_v41 = vadd.f32 %v8278_v40, %v1499_v31  ;;  %v8320_v44 = vadd.f32 %v8319_v43, %v1507_v20 }
 0x283   : > { %v8280_v47 = vpop.f32.mrf.mxu0  ;;  %v8321_v49 = vpop.f32.mrf.mxu1 }
 0x284   : > { %10060 = vst [vmem:[%s11467_s20 + $0x580] sm:$0xff] %v8279_v41  ;;  %v8281_v38 = vadd.f32 %v8280_v47, %v1503_v22  ;;  %10062 = vst [vmem:[%s11467_s20 + $0x590] sm:$0xff] %v8320_v44  ;;  %v8322_v32 = vadd.f32 %v8321_v49, %v1511_v24  ;;  %v752_v22 = vld [vmem:[#allocation7 + $0xc0] sm:$0xff] }
 0x285   : > { %v8282_v51 = vpop.f32.mrf.mxu0  ;;  %v8323_v34 = vpop.f32.mrf.mxu1  ;;  %v1563_v47 = vrot.slane %v752_v22, %v11428_v36  ;;  %v1571_v49 = vrot.slane %v752_v22, %v11433_v39 }
 0x286   : > { %10061 = vst [vmem:[%s11467_s20 + $0x588] sm:$0xff] %v8281_v38  ;;  %10063 = vst [vmem:[%s11467_s20 + $0x598] sm:$0xff] %v8322_v32  ;;  %v1567_v51 = vrot.slane %v752_v22, %v11437_v42 }
 0x287   : > { %v8283_v37 = vpop.f32.mrf.mxu0  ;;  %v8324_v55 = vpop.f32.mrf.mxu1 }
 0x289   : > { %v8360_v58 = vpop.f32.mrf.mxu0  ;;  %v8401_v48 = vpop.f32.mrf.mxu1 }
 0x28a   : > { %v8361_v60 = vadd.f32 %v8360_v58, %v1515_v53  ;;  %v8402_v62 = vadd.f32 %v8401_v48, %v1523_v54  ;;  %v1575_v53 = vrot.slane %v752_v22, %v11441_v45 }
 0x28b   : > { %v8362_v50 = vpop.f32.mrf.mxu0  ;;  %v8403_v3 = vpop.f32.mrf.mxu1 }
 0x28c   : > { %10064 = vst [vmem:[%s11467_s20 + $0x5a0] sm:$0xff] %v8361_v60  ;;  %v8363_v52 = vadd.f32 %v8362_v50, %v1519_v56  ;;  %10066 = vst [vmem:[%s11467_s20 + $0x5b0] sm:$0xff] %v8402_v62  ;;  %v8404_v4 = vadd.f32 %v8403_v3, %v1527_v46  ;;  %v1579_v50 = vrot.slane %v752_v22, %v11459_v1 }
 0x28d   : > { %v8364_v6 = vpop.f32.mrf.mxu0  ;;  %v8405_v8 = vpop.f32.mrf.mxu1 }
 0x28e   : > { %10065 = vst [vmem:[%s11467_s20 + $0x5a8] sm:$0xff] %v8363_v52  ;;  %10067 = vst [vmem:[%s11467_s20 + $0x5b8] sm:$0xff] %v8404_v4  ;;  %v1587_v52 = vrot.slane %v752_v22, %v11462_v5  ;;  %v1583_v4 = vrot.slane %v752_v22, %v11472_v10  ;;  %v1591_v8 = vrot.slane %v752_v22, %v11477_v15 }
 0x28f   : > { %v8365_v0 = vpop.f32.mrf.mxu0  ;;  %v8406_v59 = vpop.f32.mrf.mxu1 }
 0x291   : > { %v8442_v61 = vpop.f32.mrf.mxu0  ;;  %v8483_v17 = vpop.f32.mrf.mxu1 }
 0x292   : > { %v8443_v63 = vadd.f32 %v8442_v61, %v1531_v57  ;;  %v8484_v18 = vadd.f32 %v8483_v17, %v1539_v11 }
 0x293   : > { %v8444_v19 = vpop.f32.mrf.mxu0  ;;  %v8485_v7 = vpop.f32.mrf.mxu1 }
 0x294   : > { %10068 = vst [vmem:[%s11467_s20 + $0x5c0] sm:$0xff] %v8443_v63  ;;  %v8445_v21 = vadd.f32 %v8444_v19, %v1535_v13  ;;  %10070 = vst [vmem:[%s11467_s20 + $0x5d0] sm:$0xff] %v8484_v18  ;;  %v8486_v23 = vadd.f32 %v8485_v7, %v1543_v16  ;;  %v753_v13 = vld [vmem:[#allocation7 + $0xc8] sm:$0xff] }
 0x295   : > { %v8446_v9 = vpop.f32.mrf.mxu0  ;;  %v8487_v26 = vpop.f32.mrf.mxu1  ;;  %v1595_v19 = vrot.slane %v753_v13, %v11428_v36  ;;  %v1603_v7 = vrot.slane %v753_v13, %v11433_v39 }
 0x296   : > { %10069 = vst [vmem:[%s11467_s20 + $0x5c8] sm:$0xff] %v8445_v21  ;;  %10071 = vst [vmem:[%s11467_s20 + $0x5d8] sm:$0xff] %v8486_v23  ;;  %v1599_v9 = vrot.slane %v753_v13, %v11437_v42 }
 0x297   : > { %v8447_v12 = vpop.f32.mrf.mxu0  ;;  %v8488_v28 = vpop.f32.mrf.mxu1 }
 0x299   : > { %v8524_v29 = vpop.f32.mrf.mxu0  ;;  %v8565_v33 = vpop.f32.mrf.mxu1 }
 0x29a   : > { %v8525_v31 = vadd.f32 %v8524_v29, %v1547_v25  ;;  %v8566_v20 = vadd.f32 %v8565_v33, %v1555_v27  ;;  %v1607_v25 = vrot.slane %v753_v13, %v11441_v45 }
 0x29b   : > { %v8526_v35 = vpop.f32.mrf.mxu0  ;;  %v8567_v24 = vpop.f32.mrf.mxu1 }
 0x29c   : > { %10072 = vst [vmem:[%s11467_s20 + $0x5e0] sm:$0xff] %v8525_v31  ;;  %v8527_v40 = vadd.f32 %v8526_v35, %v1551_v14  ;;  %10074 = vst [vmem:[%s11467_s20 + $0x5f0] sm:$0xff] %v8566_v20  ;;  %v8568_v41 = vadd.f32 %v8567_v24, %v1559_v30  ;;  %v1611_v35 = vrot.slane %v753_v13, %v11459_v1 }
 0x29d   : > { %v8528_v43 = vpop.f32.mrf.mxu0  ;;  %v8569_v44 = vpop.f32.mrf.mxu1 }
 0x29e   : > { %10073 = vst [vmem:[%s11467_s20 + $0x5e8] sm:$0xff] %v8527_v40  ;;  %10075 = vst [vmem:[%s11467_s20 + $0x5f8] sm:$0xff] %v8568_v41  ;;  %v1619_v40 = vrot.slane %v753_v13, %v11462_v5  ;;  %v1615_v41 = vrot.slane %v753_v13, %v11472_v10  ;;  %v1623_v44 = vrot.slane %v753_v13, %v11477_v15 }
 0x29f   : > { %v8529_v38 = vpop.f32.mrf.mxu0  ;;  %v8570_v32 = vpop.f32.mrf.mxu1 }
 0x2a1   : > { %v8606_v34 = vpop.f32.mrf.mxu0  ;;  %v8647_v54 = vpop.f32.mrf.mxu1 }
 0x2a2   : > { %v8607_v37 = vadd.f32 %v8606_v34, %v1563_v47  ;;  %v8648_v55 = vadd.f32 %v8647_v54, %v1571_v49 }
 0x2a3   : > { %v8608_v56 = vpop.f32.mrf.mxu0  ;;  %v8649_v46 = vpop.f32.mrf.mxu1 }
 0x2a4   : > { %10076 = vst [vmem:[%s11467_s20 + $0x600] sm:$0xff] %v8607_v37  ;;  %v8609_v58 = vadd.f32 %v8608_v56, %v1567_v51  ;;  %10078 = vst [vmem:[%s11467_s20 + $0x610] sm:$0xff] %v8648_v55  ;;  %v8650_v60 = vadd.f32 %v8649_v46, %v1575_v53  ;;  %v754_v51 = vld [vmem:[#allocation7 + $0xd0] sm:$0xff] }
 0x2a5   : > { %v8610_v48 = vpop.f32.mrf.mxu0  ;;  %v8651_v62 = vpop.f32.mrf.mxu1  ;;  %v1627_v56 = vrot.slane %v754_v51, %v11428_v36  ;;  %v1635_v46 = vrot.slane %v754_v51, %v11433_v39 }
 0x2a6   : > { %10077 = vst [vmem:[%s11467_s20 + $0x608] sm:$0xff] %v8609_v58  ;;  %10079 = vst [vmem:[%s11467_s20 + $0x618] sm:$0xff] %v8650_v60  ;;  %v1631_v48 = vrot.slane %v754_v51, %v11437_v42 }
 0x2a7   : > { %v8611_v2 = vpop.f32.mrf.mxu0  ;;  %v8652_v3 = vpop.f32.mrf.mxu1 }
 0x2a9   : > { %v8688_v6 = vpop.f32.mrf.mxu0  ;;  %v8729_v0 = vpop.f32.mrf.mxu1 }
 0x2aa   : > { %v8689_v57 = vadd.f32 %v8688_v6, %v1579_v50  ;;  %v8730_v11 = vadd.f32 %v8729_v0, %v1587_v52  ;;  %v1639_v50 = vrot.slane %v754_v51, %v11441_v45 }
 0x2ab   : > { %v8690_v59 = vpop.f32.mrf.mxu0  ;;  %v8731_v16 = vpop.f32.mrf.mxu1 }
 0x2ac   : > { %10080 = vst [vmem:[%s11467_s20 + $0x620] sm:$0xff] %v8689_v57  ;;  %v8691_v61 = vadd.f32 %v8690_v59, %v1583_v4  ;;  %10082 = vst [vmem:[%s11467_s20 + $0x630] sm:$0xff] %v8730_v11  ;;  %v8732_v63 = vadd.f32 %v8731_v16, %v1591_v8  ;;  %v1643_v59 = vrot.slane %v754_v51, %v11459_v1 }
 0x2ad   : > { %v8692_v17 = vpop.f32.mrf.mxu0  ;;  %v8733_v18 = vpop.f32.mrf.mxu1 }
 0x2ae   : > { %10081 = vst [vmem:[%s11467_s20 + $0x628] sm:$0xff] %v8691_v61  ;;  %10083 = vst [vmem:[%s11467_s20 + $0x638] sm:$0xff] %v8732_v63  ;;  %v1651_v61 = vrot.slane %v754_v51, %v11462_v5  ;;  %v1647_v63 = vrot.slane %v754_v51, %v11472_v10  ;;  %v1655_v18 = vrot.slane %v754_v51, %v11477_v15 }
 0x2af   : > { %v8693_v21 = vpop.f32.mrf.mxu0  ;;  %v8734_v23 = vpop.f32.mrf.mxu1 }
 0x2b1   : > { %v8770_v26 = vpop.f32.mrf.mxu0  ;;  %v8811_v27 = vpop.f32.mrf.mxu1 }
 0x2b2   : > { %v8771_v12 = vadd.f32 %v8770_v26, %v1595_v19  ;;  %v8812_v28 = vadd.f32 %v8811_v27, %v1603_v7 }
 0x2b3   : > { %v8772_v14 = vpop.f32.mrf.mxu0  ;;  %v8813_v30 = vpop.f32.mrf.mxu1 }
 0x2b4   : > { %10084 = vst [vmem:[%s11467_s20 + $0x640] sm:$0xff] %v8771_v12  ;;  %v8773_v29 = vadd.f32 %v8772_v14, %v1599_v9  ;;  %10086 = vst [vmem:[%s11467_s20 + $0x650] sm:$0xff] %v8812_v28  ;;  %v8814_v31 = vadd.f32 %v8813_v30, %v1607_v25  ;;  %v755_v9 = vld [vmem:[#allocation7 + $0xd8] sm:$0xff] }
 0x2b5   : > { %v8774_v33 = vpop.f32.mrf.mxu0  ;;  %v8815_v20 = vpop.f32.mrf.mxu1  ;;  %v1659_v14 = vrot.slane %v755_v9, %v11428_v36  ;;  %v1667_v30 = vrot.slane %v755_v9, %v11433_v39 }
 0x2b6   : > { %10085 = vst [vmem:[%s11467_s20 + $0x648] sm:$0xff] %v8773_v29  ;;  %10087 = vst [vmem:[%s11467_s20 + $0x658] sm:$0xff] %v8814_v31  ;;  %v1663_v33 = vrot.slane %v755_v9, %v11437_v42 }
 0x2b7   : > { %v8775_v22 = vpop.f32.mrf.mxu0  ;;  %v8816_v24 = vpop.f32.mrf.mxu1 }
 0x2b9   : > { %v8852_v43 = vpop.f32.mrf.mxu0  ;;  %v8893_v38 = vpop.f32.mrf.mxu1 }
 0x2ba   : > { %v8853_v47 = vadd.f32 %v8852_v43, %v1611_v35  ;;  %v8894_v49 = vadd.f32 %v8893_v38, %v1619_v40  ;;  %v1671_v35 = vrot.slane %v755_v9, %v11441_v45 }
 0x2bb   : > { %v8854_v32 = vpop.f32.mrf.mxu0  ;;  %v8895_v53 = vpop.f32.mrf.mxu1 }
 0x2bc   : > { %10088 = vst [vmem:[%s11467_s20 + $0x660] sm:$0xff] %v8853_v47  ;;  %v8855_v34 = vadd.f32 %v8854_v32, %v1615_v41  ;;  %10090 = vst [vmem:[%s11467_s20 + $0x670] sm:$0xff] %v8894_v49  ;;  %v8896_v37 = vadd.f32 %v8895_v53, %v1623_v44  ;;  %v1675_v32 = vrot.slane %v755_v9, %v11459_v1 }
 0x2bd   : > { %v8856_v54 = vpop.f32.mrf.mxu0  ;;  %v8897_v55 = vpop.f32.mrf.mxu1 }
 0x2be   : > { %10089 = vst [vmem:[%s11467_s20 + $0x668] sm:$0xff] %v8855_v34  ;;  %10091 = vst [vmem:[%s11467_s20 + $0x678] sm:$0xff] %v8896_v37  ;;  %v1683_v34 = vrot.slane %v755_v9, %v11462_v5  ;;  %v1679_v37 = vrot.slane %v755_v9, %v11472_v10  ;;  %v1687_v55 = vrot.slane %v755_v9, %v11477_v15 }
 0x2bf   : > { %v8857_v58 = vpop.f32.mrf.mxu0  ;;  %v8898_v60 = vpop.f32.mrf.mxu1 }
 0x2c1   : > { %v8934_v62 = vpop.f32.mrf.mxu0  ;;  %v8975_v52 = vpop.f32.mrf.mxu1 }
 0x2c2   : > { %v8935_v2 = vadd.f32 %v8934_v62, %v1627_v56  ;;  %v8976_v3 = vadd.f32 %v8975_v52, %v1635_v46 }
 0x2c3   : > { %v8936_v4 = vpop.f32.mrf.mxu0  ;;  %v8977_v8 = vpop.f32.mrf.mxu1 }
 0x2c4   : > { %10092 = vst [vmem:[%s11467_s20 + $0x680] sm:$0xff] %v8935_v2  ;;  %v8937_v6 = vadd.f32 %v8936_v4, %v1631_v48  ;;  %10094 = vst [vmem:[%s11467_s20 + $0x690] sm:$0xff] %v8976_v3  ;;  %v8978_v57 = vadd.f32 %v8977_v8, %v1639_v50  ;;  %v756_v48 = vld [vmem:[#allocation7 + $0xe0] sm:$0xff] }
 0x2c5   : > { %v8938_v0 = vpop.f32.mrf.mxu0  ;;  %v8979_v11 = vpop.f32.mrf.mxu1  ;;  %v1691_v4 = vrot.slane %v756_v48, %v11428_v36  ;;  %v1699_v8 = vrot.slane %v756_v48, %v11433_v39 }
 0x2c6   : > { %10093 = vst [vmem:[%s11467_s20 + $0x688] sm:$0xff] %v8937_v6  ;;  %10095 = vst [vmem:[%s11467_s20 + $0x698] sm:$0xff] %v8978_v57  ;;  %v1695_v0 = vrot.slane %v756_v48, %v11437_v42 }
 0x2c7   : > { %v8939_v13 = vpop.f32.mrf.mxu0  ;;  %v8980_v16 = vpop.f32.mrf.mxu1 }
 0x2c9   : > { %v9016_v17 = vpop.f32.mrf.mxu0  ;;  %v9057_v21 = vpop.f32.mrf.mxu1 }
 0x2ca   : > { %v9017_v19 = vadd.f32 %v9016_v17, %v1643_v59  ;;  %v9058_v7 = vadd.f32 %v9057_v21, %v1651_v61  ;;  %v1703_v59 = vrot.slane %v756_v48, %v11441_v45 }
 0x2cb   : > { %v9018_v23 = vpop.f32.mrf.mxu0  ;;  %v9059_v25 = vpop.f32.mrf.mxu1 }
 0x2cc   : > { %10096 = vst [vmem:[%s11467_s20 + $0x6a0] sm:$0xff] %v9017_v19  ;;  %v9019_v26 = vadd.f32 %v9018_v23, %v1647_v63  ;;  %10098 = vst [vmem:[%s11467_s20 + $0x6b0] sm:$0xff] %v9058_v7  ;;  %v9060_v12 = vadd.f32 %v9059_v25, %v1655_v18  ;;  %v1707_v23 = vrot.slane %v756_v48, %v11459_v1 }
 0x2cd   : > { %v9020_v27 = vpop.f32.mrf.mxu0  ;;  %v9061_v28 = vpop.f32.mrf.mxu1 }
 0x2ce   : > { %10097 = vst [vmem:[%s11467_s20 + $0x6a8] sm:$0xff] %v9019_v26  ;;  %10099 = vst [vmem:[%s11467_s20 + $0x6b8] sm:$0xff] %v9060_v12  ;;  %v1715_v26 = vrot.slane %v756_v48, %v11462_v5  ;;  %v1711_v12 = vrot.slane %v756_v48, %v11472_v10  ;;  %v1719_v28 = vrot.slane %v756_v48, %v11477_v15 }
 0x2cf   : > { %v9021_v29 = vpop.f32.mrf.mxu0  ;;  %v9062_v31 = vpop.f32.mrf.mxu1 }
 0x2d1   : > { %v9098_v20 = vpop.f32.mrf.mxu0  ;;  %v9139_v40 = vpop.f32.mrf.mxu1 }
 0x2d2   : > { %v9099_v22 = vadd.f32 %v9098_v20, %v1659_v14  ;;  %v9140_v24 = vadd.f32 %v9139_v40, %v1667_v30 }
 0x2d3   : > { %v9100_v41 = vpop.f32.mrf.mxu0  ;;  %v9141_v44 = vpop.f32.mrf.mxu1 }
 0x2d4   : > { %10100 = vst [vmem:[%s11467_s20 + $0x6c0] sm:$0xff] %v9099_v22  ;;  %v9101_v43 = vadd.f32 %v9100_v41, %v1663_v33  ;;  %10102 = vst [vmem:[%s11467_s20 + $0x6d0] sm:$0xff] %v9140_v24  ;;  %v9142_v47 = vadd.f32 %v9141_v44, %v1671_v35  ;;  %v757_v33 = vld [vmem:[#allocation7 + $0xe8] sm:$0xff] }
 0x2d5   : > { %v9102_v38 = vpop.f32.mrf.mxu0  ;;  %v9143_v49 = vpop.f32.mrf.mxu1  ;;  %v1723_v41 = vrot.slane %v757_v33, %v11428_v36  ;;  %v1731_v44 = vrot.slane %v757_v33, %v11433_v39 }
 0x2d6   : > { %10101 = vst [vmem:[%s11467_s20 + $0x6c8] sm:$0xff] %v9101_v43  ;;  %10103 = vst [vmem:[%s11467_s20 + $0x6d8] sm:$0xff] %v9142_v47  ;;  %v1727_v38 = vrot.slane %v757_v33, %v11437_v42 }
 0x2d7   : > { %v9103_v51 = vpop.f32.mrf.mxu0  ;;  %v9144_v53 = vpop.f32.mrf.mxu1 }
 0x2d9   : > { %v9180_v54 = vpop.f32.mrf.mxu0  ;;  %v9221_v58 = vpop.f32.mrf.mxu1 }
 0x2da   : > { %v9181_v56 = vadd.f32 %v9180_v54, %v1675_v32  ;;  %v9222_v46 = vadd.f32 %v9221_v58, %v1683_v34  ;;  %v1735_v32 = vrot.slane %v757_v33, %v11441_v45 }
 0x2db   : > { %v9182_v60 = vpop.f32.mrf.mxu0  ;;  %v9223_v50 = vpop.f32.mrf.mxu1 }
 0x2dc   : > { %10104 = vst [vmem:[%s11467_s20 + $0x6e0] sm:$0xff] %v9181_v56  ;;  %v9183_v62 = vadd.f32 %v9182_v60, %v1679_v37  ;;  %10106 = vst [vmem:[%s11467_s20 + $0x6f0] sm:$0xff] %v9222_v46  ;;  %v9224_v2 = vadd.f32 %v9223_v50, %v1687_v55  ;;  %v1739_v60 = vrot.slane %v757_v33, %v11459_v1 }
 0x2dd   : > { %v9184_v52 = vpop.f32.mrf.mxu0  ;;  %v9225_v3 = vpop.f32.mrf.mxu1 }
 0x2de   : > { %10105 = vst [vmem:[%s11467_s20 + $0x6e8] sm:$0xff] %v9183_v62  ;;  %10107 = vst [vmem:[%s11467_s20 + $0x6f8] sm:$0xff] %v9224_v2  ;;  %v1747_v62 = vrot.slane %v757_v33, %v11462_v5  ;;  %v1743_v2 = vrot.slane %v757_v33, %v11472_v10  ;;  %v1751_v3 = vrot.slane %v757_v33, %v11477_v15 }
 0x2df   : > { %v9185_v6 = vpop.f32.mrf.mxu0  ;;  %v9226_v57 = vpop.f32.mrf.mxu1 }
 0x2e1   : > { %v9262_v11 = vpop.f32.mrf.mxu0  ;;  %v9303_v61 = vpop.f32.mrf.mxu1 }
 0x2e2   : > { %v9263_v13 = vadd.f32 %v9262_v11, %v1691_v4  ;;  %v9304_v16 = vadd.f32 %v9303_v61, %v1699_v8 }
 0x2e3   : > { %v9264_v63 = vpop.f32.mrf.mxu0  ;;  %v9305_v18 = vpop.f32.mrf.mxu1 }
 0x2e4   : > { %10108 = vst [vmem:[%s11467_s20 + $0x700] sm:$0xff] %v9263_v13  ;;  %v9265_v17 = vadd.f32 %v9264_v63, %v1695_v0  ;;  %10110 = vst [vmem:[%s11467_s20 + $0x710] sm:$0xff] %v9304_v16  ;;  %v9306_v19 = vadd.f32 %v9305_v18, %v1703_v59  ;;  %v758_v0 = vld [vmem:[#allocation7 + $0xf0] sm:$0xff] }
 0x2e5   : > { %v9266_v21 = vpop.f32.mrf.mxu0  ;;  %v9307_v7 = vpop.f32.mrf.mxu1  ;;  %v1755_v63 = vrot.slane %v758_v0, %v11428_v36  ;;  %v1763_v18 = vrot.slane %v758_v0, %v11433_v39 }
 0x2e6   : > { %10109 = vst [vmem:[%s11467_s20 + $0x708] sm:$0xff] %v9265_v17  ;;  %10111 = vst [vmem:[%s11467_s20 + $0x718] sm:$0xff] %v9306_v19  ;;  %v1759_v21 = vrot.slane %v758_v0, %v11437_v42 }
 0x2e7   : > { %v9267_v9 = vpop.f32.mrf.mxu0  ;;  %v9308_v25 = vpop.f32.mrf.mxu1 }
 0x2e9   : > { %v9344_v27 = vpop.f32.mrf.mxu0  ;;  %v9385_v29 = vpop.f32.mrf.mxu1 }
 0x2ea   : > { %v9345_v14 = vadd.f32 %v9344_v27, %v1707_v23  ;;  %v9386_v30 = vadd.f32 %v9385_v29, %v1715_v26  ;;  %v1767_v23 = vrot.slane %v758_v0, %v11441_v45 }
 0x2eb   : > { %v9346_v31 = vpop.f32.mrf.mxu0  ;;  %v9387_v35 = vpop.f32.mrf.mxu1 }
 0x2ec   : > { %10112 = vst [vmem:[%s11467_s20 + $0x720] sm:$0xff] %v9345_v14  ;;  %v9347_v20 = vadd.f32 %v9346_v31, %v1711_v12  ;;  %10114 = vst [vmem:[%s11467_s20 + $0x730] sm:$0xff] %v9386_v30  ;;  %v9388_v22 = vadd.f32 %v9387_v35, %v1719_v28  ;;  %v1771_v31 = vrot.slane %v758_v0, %v11459_v1 }
 0x2ed   : > { %v9348_v40 = vpop.f32.mrf.mxu0  ;;  %v9389_v24 = vpop.f32.mrf.mxu1 }
 0x2ee   : > { %10113 = vst [vmem:[%s11467_s20 + $0x728] sm:$0xff] %v9347_v20  ;;  %10115 = vst [vmem:[%s11467_s20 + $0x738] sm:$0xff] %v9388_v22  ;;  %v1779_v20 = vrot.slane %v758_v0, %v11462_v5  ;;  %v1775_v22 = vrot.slane %v758_v0, %v11472_v10  ;;  %v1783_v24 = vrot.slane %v758_v0, %v11477_v15 }
 0x2ef   : > { %v9349_v43 = vpop.f32.mrf.mxu0  ;;  %v9390_v47 = vpop.f32.mrf.mxu1 }
 0x2f1   : > { %v9426_v49 = vpop.f32.mrf.mxu0  ;;  %v9467_v34 = vpop.f32.mrf.mxu1 }
 0x2f2   : > { %v9427_v51 = vadd.f32 %v9426_v49, %v1723_v41  ;;  %v9468_v53 = vadd.f32 %v9467_v34, %v1731_v44 }
 0x2f3   : > { %v9428_v37 = vpop.f32.mrf.mxu0  ;;  %v9469_v55 = vpop.f32.mrf.mxu1 }
 0x2f4   : > { %10116 = vst [vmem:[%s11467_s20 + $0x740] sm:$0xff] %v9427_v51  ;;  %v9429_v54 = vadd.f32 %v9428_v37, %v1727_v38  ;;  %10118 = vst [vmem:[%s11467_s20 + $0x750] sm:$0xff] %v9468_v53  ;;  %v9470_v56 = vadd.f32 %v9469_v55, %v1735_v32  ;;  %v759_v38 = vld [vmem:[#allocation7 + $0xf8] sm:$0xff] }
 0x2f5   : > { %v9430_v58 = vpop.f32.mrf.mxu0  ;;  %v9471_v46 = vpop.f32.mrf.mxu1  ;;  %v1787_v37 = vrot.slane %v759_v38, %v11428_v36  ;;  %v1795_v55 = vrot.slane %v759_v38, %v11433_v39 }
 0x2f6   : > { %10117 = vst [vmem:[%s11467_s20 + $0x748] sm:$0xff] %v9429_v54  ;;  %10119 = vst [vmem:[%s11467_s20 + $0x758] sm:$0xff] %v9470_v56  ;;  %v1791_v58 = vrot.slane %v759_v38, %v11437_v42  ;;  %v1803_v42 = vrot.slane %v759_v38, %v11459_v1 }
 0x2f7   : > { %v9431_v48 = vpop.f32.mrf.mxu0  ;;  %v9472_v50 = vpop.f32.mrf.mxu1 }
 0x2f9   : > { %v9508_v52 = vpop.f32.mrf.mxu0  ;;  %v9549_v6 = vpop.f32.mrf.mxu1 }
 0x2fa   : > { %v9509_v4 = vadd.f32 %v9508_v52, %v1739_v60  ;;  %v9550_v8 = vadd.f32 %v9549_v6, %v1747_v62  ;;  %v1799_v60 = vrot.slane %v759_v38, %v11441_v45  ;;  %v1811_v6 = vrot.slane %v759_v38, %v11462_v5 }
 0x2fb   : > { %v9510_v57 = vpop.f32.mrf.mxu0  ;;  %v9551_v59 = vpop.f32.mrf.mxu1 }
 0x2fc   : > { %10120 = vst [vmem:[%s11467_s20 + $0x760] sm:$0xff] %v9509_v4  ;;  %v9511_v11 = vadd.f32 %v9510_v57, %v1743_v2  ;;  %10122 = vst [vmem:[%s11467_s20 + $0x770] sm:$0xff] %v9550_v8  ;;  %v9552_v13 = vadd.f32 %v9551_v59, %v1751_v3  ;;  %v1807_v57 = vrot.slane %v759_v38, %v11472_v10 }
 0x2fd   : > { %v9512_v61 = vpop.f32.mrf.mxu0  ;;  %v9553_v16 = vpop.f32.mrf.mxu1 }
 0x2fe   : > { %10121 = vst [vmem:[%s11467_s20 + $0x768] sm:$0xff] %v9511_v11  ;;  %10123 = vst [vmem:[%s11467_s20 + $0x778] sm:$0xff] %v9552_v13  ;;  %v1815_v11 = vrot.slane %v759_v38, %v11477_v15 }
 0x2ff   : > { %v9513_v17 = vpop.f32.mrf.mxu0  ;;  %v9554_v19 = vpop.f32.mrf.mxu1 }
 0x301   : > { %v9590_v7 = vpop.f32.mrf.mxu0  ;;  %v9631_v26 = vpop.f32.mrf.mxu1 }
 0x302   : > { %v9591_v9 = vadd.f32 %v9590_v7, %v1755_v63  ;;  %v9632_v25 = vadd.f32 %v9631_v26, %v1763_v18 }
 0x303   : > { %v9592_v12 = vpop.f32.mrf.mxu0  ;;  %v9633_v28 = vpop.f32.mrf.mxu1 }
 0x304   : > { %10124 = vst [vmem:[%s11467_s20 + $0x780] sm:$0xff] %v9591_v9  ;;  %v9593_v27 = vadd.f32 %v9592_v12, %v1759_v21  ;;  %10126 = vst [vmem:[%s11467_s20 + $0x790] sm:$0xff] %v9632_v25  ;;  %v9634_v14 = vadd.f32 %v9633_v28, %v1767_v23 }
 0x305   : > { %v9594_v29 = vpop.f32.mrf.mxu0  ;;  %v9635_v30 = vpop.f32.mrf.mxu1 }
 0x306   : > { %10125 = vst [vmem:[%s11467_s20 + $0x788] sm:$0xff] %v9593_v27  ;;  %10127 = vst [vmem:[%s11467_s20 + $0x798] sm:$0xff] %v9634_v14 }
 0x307   : > { %v9595_v33 = vpop.f32.mrf.mxu0  ;;  %v9636_v35 = vpop.f32.mrf.mxu1 }
 0x309   : > { %v9672_v40 = vpop.f32.mrf.mxu0  ;;  %v9713_v43 = vpop.f32.mrf.mxu1 }
 0x30a   : > { %v9673_v41 = vadd.f32 %v9672_v40, %v1771_v31  ;;  %v9714_v44 = vadd.f32 %v9713_v43, %v1779_v20 }
 0x30b   : > { %v9674_v47 = vpop.f32.mrf.mxu0  ;;  %v9715_v32 = vpop.f32.mrf.mxu1 }
 0x30c   : > { %10128 = vst [vmem:[%s11467_s20 + $0x7a0] sm:$0xff] %v9673_v41  ;;  %v9675_v49 = vadd.f32 %v9674_v47, %v1775_v22  ;;  %10130 = vst [vmem:[%s11467_s20 + $0x7b0] sm:$0xff] %v9714_v44  ;;  %v9716_v51 = vadd.f32 %v9715_v32, %v1783_v24 }
 0x30d   : > { %v9676_v34 = vpop.f32.mrf.mxu0  ;;  %v9717_v53 = vpop.f32.mrf.mxu1 }
 0x30e   : > { %10129 = vst [vmem:[%s11467_s20 + $0x7a8] sm:$0xff] %v9675_v49  ;;  %10131 = vst [vmem:[%s11467_s20 + $0x7b8] sm:$0xff] %v9716_v51 }
 0x30f   : > { %v9677_v54 = vpop.f32.mrf.mxu0  ;;  %v9718_v56 = vpop.f32.mrf.mxu1 }
 0x311   : > { %v9754_v46 = vpop.f32.mrf.mxu0  ;;  %v9795_v62 = vpop.f32.mrf.mxu1 }
 0x312   : > { %v9755_v48 = vadd.f32 %v9754_v46, %v1787_v37  ;;  %v9796_v50 = vadd.f32 %v9795_v62, %v1795_v55 }
 0x313   : > { %v9756_v2 = vpop.f32.mrf.mxu0  ;;  %v9797_v3 = vpop.f32.mrf.mxu1 }
 0x314   : > { %10132 = vst [vmem:[%s11467_s20 + $0x7c0] sm:$0xff] %v9755_v48  ;;  %v9757_v52 = vadd.f32 %v9756_v2, %v1791_v58  ;;  %10134 = vst [vmem:[%s11467_s20 + $0x7d0] sm:$0xff] %v9796_v50  ;;  %v9798_v36 = vadd.f32 %v9797_v3, %v1799_v60 }
 0x315   : > { %v9758_v4 = vpop.f32.mrf.mxu0  ;;  %v9799_v39 = vpop.f32.mrf.mxu1 }
 0x316   : > { %10133 = vst [vmem:[%s11467_s20 + $0x7c8] sm:$0xff] %v9757_v52  ;;  %10135 = vst [vmem:[%s11467_s20 + $0x7d8] sm:$0xff] %v9798_v36 }
 0x317   : > { %v9759_v45 = vpop.f32.mrf.mxu0  ;;  %v9800_v8 = vpop.f32.mrf.mxu1 }
 0x319   : > { %v9836_v0 = vpop.f32.mrf.mxu0  ;;  %v9877_v13 = vpop.f32.mrf.mxu1 }
 0x31a   : > { %v9837_v59 = vadd.f32 %v9836_v0, %v1803_v42  ;;  %v9878_v61 = vadd.f32 %v9877_v13, %v1811_v6 }
 0x31b   : > { %v9838_v1 = vpop.f32.mrf.mxu0  ;;  %v9879_v63 = vpop.f32.mrf.mxu1 }
 0x31c   : > { %10136 = vst [vmem:[%s11467_s20 + $0x7e0] sm:$0xff] %v9837_v59  ;;  %v9839_v16 = vadd.f32 %v9838_v1, %v1807_v57  ;;  %10138 = vst [vmem:[%s11467_s20 + $0x7f0] sm:$0xff] %v9878_v61  ;;  %v9880_v5 = vadd.f32 %v9879_v63, %v1815_v11 }
 0x31d   : > { %v9840_v17 = vpop.f32.mrf.mxu0  ;;  %v9881_v10 = vpop.f32.mrf.mxu1 }
 0x31e   : > { %10137 = vst [vmem:[%s11467_s20 + $0x7e8] sm:$0xff] %v9839_v16  ;;  %10139 = vst [vmem:[%s11467_s20 + $0x7f8] sm:$0xff] %v9880_v5 }
 0x31f   : > { %v9841_v15 = vpop.f32.mrf.mxu0  ;;  %v9882_v18 = vpop.f32.mrf.mxu1 }
 0x320   : > { %11065 = shalt.err (!%p11062_p9)
}
 0x321   : > { %s11066_s17 = scalar_lea.hbm %s12415_s5, 32768  ;;  %s11070_s24 = scalar_lea.hbm %s12463_s3, 65536 }
 0x322   : > { %p11067_p13 = scmp.ne.s32.totalorder %s12415_s5, %s11066_s17  ;;  %p11071_p0 = scmp.lt.s32.totalorder %s12415_s5, %s12463_s3 }
 0x323   : > { %p11072_p4 = scmp.lt.s32.totalorder %s11070_s24, %s11066_s17 }
 0x324   : > { %p11068_p5 = pnand %p11067_p13, %p12479_p11 }
 0x325   : > { %p11073_p8 = por %p11072_p4, %p11071_p0 }
 0x326   : > { %p11069_p10 = pneg %p11068_p5 }
 0x328   : > { %p11074_p3 = pnand %p11073_p8, %p11069_p10 }
 0x32a   : > { %11077 = shalt.err (!%p11074_p3)
}
 0x32b   : > { %10912 = dma.vmem_to_hbm [thread:$0]  (%p12479_p11), %s12417_s27, 32768, %s12415_s5, %s10141_s16  }
 0x32c PF: > { %s10167_s4 = sand.u32 1, %s11108_s12   ;;  %p12480_p1 = scmp.ne.s32.totalorder %s12469_s19, 0 }
 0x32d   : > { %p12481_p2 = scmp.ge.s32.totalorder %s11120_s15, 2  ;;  %s10168_s18 = scalar_lea.sflag [#allocation4], %s10167_s4 }
 0x32f   : > { %p10926_p6 = pnand %p12481_p2, %p12480_p1 }
 0x331   : > { %p10927_p12 = pneg %p10926_p6 }
 0x333   : > { %11103 = dma.done.wait (%p10927_p12), %s10168_s18, 32768  }
 0x334   : > { %11105 = vsyncadd (%p10927_p12), %s10168_s18, 4294934528  ;;  %p17_p7 = scmp.ge.s32.totalorder %s11221_s7, 4   ;;  %s12482_s12 = smov %s11112_s13 }
 0x335   : > { %s12483_s13 = smov %s11116_s14  ;;  %s12484_s14 = smov %s11237_s11 }
 0x336   : > { %s12485_s15 = smov %s11221_s7  ;;  %19 = sbr.rel (!%p17_p7) target bundleno = 6 (0x6), region = 85 }
 0x33b   :  { %10173 = vsyncpa [#allocation3], 1 }
 0x33c   :  { %10175 = vsyncpa [#allocation3 + $0x1], 1 }
 0x33d   :  { %10176 = vsyncpa [#allocation6], 1 }
 0x33e   :  { %10177 = vsyncpa [#allocation4], 1 }
 0x33f   :  { %10179 = vsyncpa [#allocation4 + $0x1], 1 }

</bundles_post_ra>
